<compile_context>
chip_gen: v7x
topology: tpu7x:2x2x1
jax: 0.10.0
libtpu: 0.0.40
codegen_flags: <defaults>
</compile_context>

<pallas_src>
import jax
import jax.numpy as jnp
from jax import lax
from jax.experimental import pallas as pl
from jax.experimental.pallas import tpu as pltpu


# ----------------------------------------------------------------------------
# Fused Positioning kernel
# ----------------------------------------------------------------------------
def _flat_pad(W):
    # Left/right zero padding (in flattened H*W index space) covering the
    # largest |di*W + dj| shift of an 11x11 window, rounded up to a lane tile
    # so the central scratch write is tile-aligned.
    return ((5 * W + 5 + 127) // 128) * 128


def _make_positioning_kernel(C, H, W, use_channel_attn):
    HW = H * W
    PAD = _flat_pad(W)
    K = 11
    R = K // 2  # 5

    def kernel(x_ref, maug_ref, wvaug_ref, wmapt_ref, scal_ref,
               sab_ref, sum_ref, glob_ref, xaug_ref, pad_ref):
        f32 = jnp.float32
        x = x_ref[0]                                               # (C, HW)

        # ------------------- CA block (channel attention) -------------------
        if use_channel_attn:
            e_c = lax.dot_general(x, x, (((1,), (1,)), ((), ())),
                                  preferred_element_type=f32)      # (C, C)
            # deferred softmax normalization: scale the (C,HW) result, not the
            # (C,C) attention.
            p_c = jnp.exp(e_c - jnp.max(e_c, axis=-1, keepdims=True))
            inv_c = pl.reciprocal(jnp.sum(p_c, axis=-1, keepdims=True),
                                  approx=True)                     # (C, 1)
            out_c = jnp.dot(p_c, x, preferred_element_type=f32) * inv_c
            x = scal_ref[0] * out_c + x

        # ------------------- SA block (spatial attention) -------------------
        # x_aug = [x; 1] so the q/k/v biases fold into K=C+1 MXU contractions.
        xaug_ref[:C, :] = x
        xaug_ref[C:C + 1, :] = jnp.ones((1, HW), f32)
        x_aug = xaug_ref[...]                                      # (C+1, HW)

        mx = jnp.dot(maug_ref[...], x_aug, preferred_element_type=f32)  # (C+1, HW)
        energy = lax.dot_general(x_aug, mx, (((0,), (0,)), ((), ())),
                                 preferred_element_type=f32)       # (HW, HW)
        # unnormalized softmax numerator; normalization deferred to out_aug.
        p = jnp.exp(energy - jnp.max(energy, axis=-1, keepdims=True))

        v_aug = jnp.dot(wvaug_ref[...], x_aug, preferred_element_type=f32)  # (C+1, HW)
        # out_aug[c, i] = sum_j v_aug[c, j] * p[i, j]; row C (ones row of
        # v_aug) yields the softmax row-sums already laid out as (1, HW).
        out_aug = lax.dot_general(v_aug, p, (((1,), (1,)), ((), ())),
                                  preferred_element_type=f32)      # (C+1, HW)
        inv_s = pl.reciprocal(out_aug[C:C + 1, :], approx=True)    # (1, HW)
        sab = scal_ref[1] * (out_aug[:C, :] * inv_s) + x
        sab_ref[0] = sab

        # -------- 11x11, 1-output-channel `map` conv ------------------------
        # Channel reduction on the MXU: t[tap, p] = sum_c wmap[c, tap]*sab[c, p].
        t = jnp.dot(wmapt_ref[...], sab, preferred_element_type=f32)  # (121, HW)
        # Zero only the gutters (center fully rewritten below).
        pad_ref[:, :PAD] = jnp.zeros((K * K, PAD), f32)
        pad_ref[:, PAD + HW:PAD + HW + PAD] = jnp.zeros((K * K, PAD), f32)
        pad_ref[:, PAD:PAD + HW] = t

        # Accumulate the 121 lane-shifted (1,HW) rows.  Vertical overreach
        # lands in the zero gutters; the column mask (row-wrap exclusion)
        # depends only on dj, so it is applied once per dj.
        col = lax.broadcasted_iota(jnp.int32, (1, HW), 1) % W      # output col j
        g = jnp.zeros((1, HW), f32)
        for dj in range(-R, R + 1):
            jj = col + dj
            mask = jnp.logical_and(jj >= 0, jj < W)                # (1, HW)
            acc = jnp.zeros((1, HW), f32)
            for di in range(-R, R + 1):
                tap = (di + R) * K + (dj + R)
                start = PAD + di * W + dj                          # static offset
                acc = acc + pad_ref[tap:tap + 1, start:start + HW]
            g = g + jnp.where(mask, acc, 0.0)
        g = g + scal_ref[2]                                        # (1, HW)
        glob_ref[0] = g
        sum_ref[0] = sab + g

    return kernel


def positioning_forward(x, params, use_channel_attn=True):
    """x: (B, C, H, W) float32 -> (sab, sab + global_sab, global_sab)."""
    B, C, H, W = x.shape
    HW = H * W
    x_flat = x.reshape(B, C, HW)

    # Host-side (tiny) precompute: fold the q/k 1x1-conv weights + biases into
    # a single (C+1, C+1) bilinear form; append bias column + ones row to the
    # v weights so all biases (and the softmax row-sum) ride the MXU.
    wq_aug = jnp.concatenate([params["sa_wq"], params["sa_bq"]], axis=1)   # (C/8, C+1)
    wk_aug = jnp.concatenate([params["sa_wk"], params["sa_bk"]], axis=1)   # (C/8, C+1)
    m_aug = wq_aug.T @ wk_aug                                              # (C+1, C+1)
    wv_aug = jnp.concatenate([params["sa_wv"], params["sa_bv"]], axis=1)   # (C, C+1)
    ones_row = jnp.zeros((1, C + 1), jnp.float32).at[0, C].set(1.0)
    wv_aug2 = jnp.concatenate([wv_aug, ones_row], axis=0)                  # (C+1, C+1)
    wmap_t = params["map_w"].reshape(C, 11 * 11).T                         # (121, C)

    ca_gamma = params["ca_gamma"] if use_channel_attn else jnp.ones((1,), jnp.float32)
    scal = jnp.concatenate([ca_gamma, params["sa_gamma"],
                            params["map_b"]]).astype(jnp.float32)          # (3,)

    PAD = _flat_pad(W)
    kernel = _make_positioning_kernel(C, H, W, use_channel_attn)

    sab_flat, sum_flat, glob_flat = pl.pallas_call(
        kernel,
        out_shape=(jax.ShapeDtypeStruct((B, C, HW), jnp.float32),
                   jax.ShapeDtypeStruct((B, C, HW), jnp.float32),
                   jax.ShapeDtypeStruct((B, 1, HW), jnp.float32)),
        grid=(B,),
        in_specs=[
            pl.BlockSpec((1, C, HW), lambda b: (b, 0, 0)),
            pl.BlockSpec((C + 1, C + 1), lambda b: (0, 0)),     # m_aug
            pl.BlockSpec((C + 1, C + 1), lambda b: (0, 0)),     # wv_aug2
            pl.BlockSpec((11 * 11, C), lambda b: (0, 0)),       # wmap^T
            pl.BlockSpec(memory_space=pltpu.MemorySpace.SMEM),  # [ca_g, sa_g, map_b]
        ],
        out_specs=[
            pl.BlockSpec((1, C, HW), lambda b: (b, 0, 0)),
            pl.BlockSpec((1, C, HW), lambda b: (b, 0, 0)),
            pl.BlockSpec((1, 1, HW), lambda b: (b, 0, 0)),
        ],
        scratch_shapes=[
            pltpu.VMEM((C + 1, HW), jnp.float32),               # x_aug
            pltpu.VMEM((11 * 11, HW + 2 * PAD), jnp.float32),   # conv taps
        ],
        compiler_params=pltpu.CompilerParams(
            dimension_semantics=("parallel",)),      # B across v7x TensorCores
    )(x_flat, m_aug, wv_aug2, wmap_t, scal)

    return (sab_flat.reshape(B, C, H, W),
            sum_flat.reshape(B, C, H, W),
            glob_flat.reshape(B, 1, H, W))


# ----------------------------------------------------------------------------
# Parameter init (deterministic, synthetic)
# ----------------------------------------------------------------------------
def init_params(key, channel, use_channel_attn):
    C = channel
    C8 = C // 8
    ks = jax.random.split(key, 8)
    p = {}
    if use_channel_attn:
        p["ca_gamma"] = jnp.ones((1,), jnp.float32)            # torch.ones(1)
    p["sa_wq"] = 0.1 * jax.random.normal(ks[0], (C8, C), jnp.float32)
    p["sa_bq"] = 0.1 * jax.random.normal(ks[1], (C8, 1), jnp.float32)
    p["sa_wk"] = 0.1 * jax.random.normal(ks[2], (C8, C), jnp.float32)
    p["sa_bk"] = 0.1 * jax.random.normal(ks[3], (C8, 1), jnp.float32)
    p["sa_wv"] = 0.1 * jax.random.normal(ks[4], (C, C), jnp.float32)
    p["sa_bv"] = 0.1 * jax.random.normal(ks[5], (C, 1), jnp.float32)
    p["sa_gamma"] = jnp.ones((1,), jnp.float32)                # torch.ones(1)
    p["map_w"] = 0.05 * jax.random.normal(ks[6], (1, C, 11, 11), jnp.float32)
    p["map_b"] = 0.05 * jax.random.normal(ks[7], (1,), jnp.float32)
    return p


# ----------------------------------------------------------------------------
# Pure-JAX reference (for correctness check only)
# ----------------------------------------------------------------------------
def reference_forward(x, params, use_channel_attn=True):
    B, C, H, W = x.shape
    HW = H * W
    xf = x.reshape(B, C, HW)
    if use_channel_attn:
        energy = jnp.einsum('bci,bdi->bcd', xf, xf)
        attn = jax.nn.softmax(energy, axis=-1)
        out = jnp.einsum('bcd,bdi->bci', attn, xf)
        xf = params["ca_gamma"][0] * out + xf
    q = jnp.einsum('oc,bci->boi', params["sa_wq"], xf) + params["sa_bq"][None]
    k = jnp.einsum('oc,bci->boi', params["sa_wk"], xf) + params["sa_bk"][None]
    v = jnp.einsum('oc,bci->boi', params["sa_wv"], xf) + params["sa_bv"][None]
    energy = jnp.einsum('boi,boj->bij', q, k)
    attn = jax.nn.softmax(energy, axis=-1)
    out = jnp.einsum('bcj,bij->bci', v, attn)
    sabf = params["sa_gamma"][0] * out + xf
    sab = sabf.reshape(B, C, H, W)
    g = lax.conv_general_dilated(
        sab, params["map_w"], window_strides=(1, 1),
        padding=[(5, 5), (5, 5)],
        dimension_numbers=('NCHW', 'OIHW', 'NCHW')) + params["map_b"][0]
    return sab, sab + g, g


if __name__ == "__main__":
    key = jax.random.PRNGKey(0)
    k_x, k_p = jax.random.split(key)

    B, C, H, W = 2, 32, 16, 16
    x = jax.random.normal(k_x, (B, C, H, W), jnp.float32)
    params = init_params(k_p, C, use_channel_attn=True)

    def _check(a, b, name):
        err = float(jnp.max(jnp.abs(a - b)))
        scale = float(jnp.max(jnp.abs(b))) + 1.0
        assert err < 2e-2 * scale, f"{name} mismatch: max abs err {err} (scale {scale})"

    for use_ca in (True, False):
        sab, sab_sum, global_sab = positioning_forward(x, params, use_channel_attn=use_ca)
        jax.block_until_ready((sab, sab_sum, global_sab))

        r_sab, r_sum, r_glob = reference_forward(x, params, use_channel_attn=use_ca)

        assert sab.shape == (B, C, H, W)
        assert sab_sum.shape == (B, C, H, W)
        assert global_sab.shape == (B, 1, H, W)
        _check(sab, r_sab, f"sab(ca={use_ca})")
        _check(sab_sum, r_sum, f"sab+global_sab(ca={use_ca})")
        _check(global_sab, r_glob, f"global_sab(ca={use_ca})")

    print("KERNEL_OK")
</pallas_src>

<mosaic_0001>
module attributes {stable_mosaic.version = 11 : i64} {
  func.func @kernel(%arg0: i32, %arg1: memref<1x32x256xf32, #tpu.memory_space<vmem>>, %arg2: memref<33x33xf32, #tpu.memory_space<vmem>>, %arg3: memref<33x33xf32, #tpu.memory_space<vmem>>, %arg4: memref<121x32xf32, #tpu.memory_space<vmem>>, %arg5: memref<3xf32, #tpu.memory_space<smem>>, %arg6: memref<1x32x256xf32, #tpu.memory_space<vmem>>, %arg7: memref<1x32x256xf32, #tpu.memory_space<vmem>>, %arg8: memref<1x1x256xf32, #tpu.memory_space<vmem>>, %arg9: memref<33x256xf32, #tpu.memory_space<vmem>>, %arg10: memref<121x512xf32, #tpu.memory_space<vmem>>) attributes {dimension_semantics = [#tpu.dimension_semantics<parallel>], iteration_bounds = array<i64: 2>, scalar_prefetch = 0 : i64, scratch_operands = 2 : i64, tpu.core_type = #tpu.core_type<tc>, window_params = [{transform_indices = @transform_0, window_bounds = array<i64: 1, 32, 256>}, {pipeline_mode = #tpu.pipeline_mode<synchronous>, transform_indices = @transform_1, window_bounds = array<i64: 33, 33>}, {pipeline_mode = #tpu.pipeline_mode<synchronous>, transform_indices = @transform_2, window_bounds = array<i64: 33, 33>}, {pipeline_mode = #tpu.pipeline_mode<synchronous>, transform_indices = @transform_3, window_bounds = array<i64: 121, 32>}, {transform_indices = @transform_4, window_bounds = array<i64: 3>}, {transform_indices = @transform_5, window_bounds = array<i64: 1, 32, 256>}, {transform_indices = @transform_6, window_bounds = array<i64: 1, 32, 256>}, {transform_indices = @transform_7, window_bounds = array<i64: 1, 1, 256>}]} {
    %c0 = arith.constant 0 : index
    %c0_0 = arith.constant 0 : index
    %c0_1 = arith.constant 0 : index
    %0 = vector.load %arg1[%c0, %c0_0, %c0_1] : memref<1x32x256xf32, #tpu.memory_space<vmem>>, vector<1x32x256xf32>
    %1 = vector.shape_cast %0 : vector<1x32x256xf32> to vector<32x256xf32>
    %cst = arith.constant dense<0.000000e+00> : vector<32x32xf32>
    %2 = tpu.matmul %1, %1, %cst {dimension_numbers = #tpu.dot_dimension_numbers<[1], [1], [0], [0], [0, 0, 1, 0], [], []>} : vector<32x256xf32>, vector<32x256xf32>, vector<32x32xf32> -> vector<32x32xf32>
    %cst_2 = arith.constant dense<0xFF800000> : vector<32xf32>
    %3 = vector.multi_reduction <maximumf>, %2, %cst_2 [1] : vector<32x32xf32> to vector<32xf32>
    %4 = vector.shape_cast %3 : vector<32xf32> to vector<32x1xf32>
    %5 = vector.broadcast %4 : vector<32x1xf32> to vector<32x32xf32>
    %6 = arith.subf %2, %5 : vector<32x32xf32>
    %7 = math.exp %6 : vector<32x32xf32>
    %cst_3 = arith.constant dense<0.000000e+00> : vector<32xf32>
    %8 = vector.multi_reduction <add>, %7, %cst_3 [1] : vector<32x32xf32> to vector<32xf32>
    %9 = vector.shape_cast %8 : vector<32xf32> to vector<32x1xf32>
    %10 = tpu.reciprocal %9 {approx = true} : vector<32x1xf32> -> vector<32x1xf32>
    %cst_4 = arith.constant dense<0.000000e+00> : vector<32x256xf32>
    %11 = tpu.matmul %7, %1, %cst_4 {dimension_numbers = #tpu.dot_dimension_numbers<[1], [0], [0], [1], [0, 0, 1, 1], [], []>} : vector<32x32xf32>, vector<32x256xf32>, vector<32x256xf32> -> vector<32x256xf32>
    %12 = vector.broadcast %10 : vector<32x1xf32> to vector<32x256xf32>
    %13 = arith.mulf %11, %12 : vector<32x256xf32>
    %c0_5 = arith.constant 0 : index
    %14 = memref.load %arg5[%c0_5] : memref<3xf32, #tpu.memory_space<smem>>
    %15 = vector.broadcast %14 : f32 to vector<32x256xf32>
    %16 = arith.mulf %15, %13 : vector<32x256xf32>
    %17 = arith.addf %16, %1 : vector<32x256xf32>
    %c0_6 = arith.constant 0 : index
    %c0_7 = arith.constant 0 : index
    %18 = vector.load %arg9[%c0_6, %c0_7] : memref<33x256xf32, #tpu.memory_space<vmem>>, vector<32x256xf32>
    tpu.vector_store %arg9[%c0_6, %c0_7], %17 {strides = array<i32>} : memref<33x256xf32, #tpu.memory_space<vmem>>, vector<32x256xf32>,
    %cst_8 = arith.constant 1.000000e+00 : f32
    %19 = vector.broadcast %cst_8 : f32 to vector<1x256xf32>
    %c32 = arith.constant 32 : index
    %c0_9 = arith.constant 0 : index
    %20 = vector.load %arg9[%c32, %c0_9] : memref<33x256xf32, #tpu.memory_space<vmem>>, vector<1x256xf32>
    tpu.vector_store %arg9[%c32, %c0_9], %19 {strides = array<i32>} : memref<33x256xf32, #tpu.memory_space<vmem>>, vector<1x256xf32>,
    %c0_10 = arith.constant 0 : index
    %c0_11 = arith.constant 0 : index
    %21 = vector.load %arg9[%c0_10, %c0_11] : memref<33x256xf32, #tpu.memory_space<vmem>>, vector<33x256xf32>
    %c0_12 = arith.constant 0 : index
    %c0_13 = arith.constant 0 : index
    %22 = vector.load %arg2[%c0_12, %c0_13] : memref<33x33xf32, #tpu.memory_space<vmem>>, vector<33x33xf32>
    %cst_14 = arith.constant dense<0.000000e+00> : vector<33x256xf32>
    %23 = tpu.matmul %22, %21, %cst_14 {dimension_numbers = #tpu.dot_dimension_numbers<[1], [0], [0], [1], [0, 0, 1, 1], [], []>} : vector<33x33xf32>, vector<33x256xf32>, vector<33x256xf32> -> vector<33x256xf32>
    %cst_15 = arith.constant dense<0.000000e+00> : vector<256x256xf32>
    %24 = tpu.matmul %21, %23, %cst_15 {dimension_numbers = #tpu.dot_dimension_numbers<[0], [0], [1], [1], [0, 1, 1, 1], [], []>} : vector<33x256xf32>, vector<33x256xf32>, vector<256x256xf32> -> vector<256x256xf32>
    %cst_16 = arith.constant dense<0xFF800000> : vector<256xf32>
    %25 = vector.multi_reduction <maximumf>, %24, %cst_16 [1] : vector<256x256xf32> to vector<256xf32>
    %26 = vector.shape_cast %25 : vector<256xf32> to vector<256x1xf32>
    %27 = vector.broadcast %26 : vector<256x1xf32> to vector<256x256xf32>
    %28 = arith.subf %24, %27 : vector<256x256xf32>
    %29 = math.exp %28 : vector<256x256xf32>
    %c0_17 = arith.constant 0 : index
    %c0_18 = arith.constant 0 : index
    %30 = vector.load %arg3[%c0_17, %c0_18] : memref<33x33xf32, #tpu.memory_space<vmem>>, vector<33x33xf32>
    %cst_19 = arith.constant dense<0.000000e+00> : vector<33x256xf32>
    %31 = tpu.matmul %30, %21, %cst_19 {dimension_numbers = #tpu.dot_dimension_numbers<[1], [0], [0], [1], [0, 0, 1, 1], [], []>} : vector<33x33xf32>, vector<33x256xf32>, vector<33x256xf32> -> vector<33x256xf32>
    %cst_20 = arith.constant dense<0.000000e+00> : vector<33x256xf32>
    %32 = tpu.matmul %31, %29, %cst_20 {dimension_numbers = #tpu.dot_dimension_numbers<[1], [1], [0], [0], [0, 0, 1, 0], [], []>} : vector<33x256xf32>, vector<256x256xf32>, vector<33x256xf32> -> vector<33x256xf32>
    %33 = vector.extract_strided_slice %32 {offsets = [32, 0], sizes = [1, 256], strides = [1, 1]} : vector<33x256xf32> to vector<1x256xf32>
    %34 = tpu.reciprocal %33 {approx = true} : vector<1x256xf32> -> vector<1x256xf32>
    %c1 = arith.constant 1 : index
    %35 = memref.load %arg5[%c1] : memref<3xf32, #tpu.memory_space<smem>>
    %36 = vector.extract_strided_slice %32 {offsets = [0, 0], sizes = [32, 256], strides = [1, 1]} : vector<33x256xf32> to vector<32x256xf32>
    %37 = vector.broadcast %34 : vector<1x256xf32> to vector<32x256xf32>
    %38 = arith.mulf %36, %37 : vector<32x256xf32>
    %39 = vector.broadcast %35 : f32 to vector<32x256xf32>
    %40 = arith.mulf %39, %38 : vector<32x256xf32>
    %41 = arith.addf %40, %17 : vector<32x256xf32>
    %c0_21 = arith.constant 0 : index
    %c0_22 = arith.constant 0 : index
    %c0_23 = arith.constant 0 : index
    %42 = vector.load %arg6[%c0_21, %c0_22, %c0_23] : memref<1x32x256xf32, #tpu.memory_space<vmem>>, vector<1x32x256xf32>
    %43 = vector.shape_cast %42 : vector<1x32x256xf32> to vector<32x256xf32>
    %44 = vector.shape_cast %41 : vector<32x256xf32> to vector<1x32x256xf32>
    tpu.vector_store %arg6[%c0_21, %c0_22, %c0_23], %44 {strides = array<i32>} : memref<1x32x256xf32, #tpu.memory_space<vmem>>, vector<1x32x256xf32>,
    %c0_24 = arith.constant 0 : index
    %c0_25 = arith.constant 0 : index
    %45 = vector.load %arg4[%c0_24, %c0_25] : memref<121x32xf32, #tpu.memory_space<vmem>>, vector<121x32xf32>
    %cst_26 = arith.constant dense<0.000000e+00> : vector<121x256xf32>
    %46 = tpu.matmul %45, %41, %cst_26 {dimension_numbers = #tpu.dot_dimension_numbers<[1], [0], [0], [1], [0, 0, 1, 1], [], []>} : vector<121x32xf32>, vector<32x256xf32>, vector<121x256xf32> -> vector<121x256xf32>
    %cst_27 = arith.constant 0.000000e+00 : f32
    %47 = vector.broadcast %cst_27 : f32 to vector<121x128xf32>
    %c0_28 = arith.constant 0 : index
    %c0_29 = arith.constant 0 : index
    %48 = vector.load %arg10[%c0_28, %c0_29] : memref<121x512xf32, #tpu.memory_space<vmem>>, vector<121x128xf32>
    tpu.vector_store %arg10[%c0_28, %c0_29], %47 {strides = array<i32>} : memref<121x512xf32, #tpu.memory_space<vmem>>, vector<121x128xf32>,
    %cst_30 = arith.constant 0.000000e+00 : f32
    %49 = vector.broadcast %cst_30 : f32 to vector<121x128xf32>
    %c0_31 = arith.constant 0 : index
    %c384 = arith.constant 384 : index
    %50 = vector.load %arg10[%c0_31, %c384] : memref<121x512xf32, #tpu.memory_space<vmem>>, vector<121x128xf32>
    tpu.vector_store %arg10[%c0_31, %c384], %49 {strides = array<i32>} : memref<121x512xf32, #tpu.memory_space<vmem>>, vector<121x128xf32>,
    %c0_32 = arith.constant 0 : index
    %c128 = arith.constant 128 : index
    %51 = vector.load %arg10[%c0_32, %c128] : memref<121x512xf32, #tpu.memory_space<vmem>>, vector<121x256xf32>
    tpu.vector_store %arg10[%c0_32, %c128], %46 {strides = array<i32>} : memref<121x512xf32, #tpu.memory_space<vmem>>, vector<121x256xf32>,
    %52 = tpu.iota {dimensions = array<i32: 1>} : vector<1x256xi32>
    %c16_i32 = arith.constant 16 : i32
    %c0_i32 = arith.constant 0 : i32
    %53 = arith.cmpi eq, %c16_i32, %c0_i32 : i32
    %c1_i32 = arith.constant 1 : i32
    %54 = arith.select %53, %c1_i32, %c16_i32 : i32
    %55 = vector.broadcast %54 : i32 to vector<1x256xi32>
    %56 = arith.remsi %52, %55 : vector<1x256xi32>
    %c0_i32_33 = arith.constant 0 : i32
    %57 = vector.broadcast %c0_i32_33 : i32 to vector<1x256xi32>
    %58 = arith.cmpi ne, %56, %57 : vector<1x256xi32>
    %c0_i32_34 = arith.constant 0 : i32
    %59 = vector.broadcast %c0_i32_34 : i32 to vector<1x256xi32>
    %60 = arith.cmpi slt, %56, %59 : vector<1x256xi32>
    %c0_i32_35 = arith.constant 0 : i32
    %61 = arith.cmpi slt, %54, %c0_i32_35 : i32
    %62 = vector.broadcast %61 : i1 to vector<1x256xi1>
    %63 = vector.broadcast %62 : vector<1x256xi1> to vector<1x256xi1>
    %64 = arith.xori %60, %63 : vector<1x256xi1>
    %65 = arith.andi %64, %58 : vector<1x256xi1>
    %66 = vector.broadcast %54 : i32 to vector<1x256xi32>
    %67 = arith.addi %56, %66 : vector<1x256xi32>
    %68 = arith.select %65, %67, %56 : vector<1x256xi1>, vector<1x256xi32>
    %cst_36 = arith.constant 0.000000e+00 : f32
    %69 = vector.broadcast %cst_36 : f32 to vector<1x256xf32>
    %c-5_i32 = arith.constant -5 : i32
    %70 = vector.broadcast %c-5_i32 : i32 to vector<1x256xi32>
    %71 = arith.addi %68, %70 : vector<1x256xi32>
    %c0_i32_37 = arith.constant 0 : i32
    %72 = vector.broadcast %c0_i32_37 : i32 to vector<1x256xi32>
    %73 = arith.cmpi sge, %71, %72 : vector<1x256xi32>
    %c16_i32_38 = arith.constant 16 : i32
    %74 = vector.broadcast %c16_i32_38 : i32 to vector<1x256xi32>
    %75 = arith.cmpi slt, %71, %74 : vector<1x256xi32>
    %76 = arith.andi %73, %75 : vector<1x256xi1>
    %cst_39 = arith.constant 0.000000e+00 : f32
    %77 = vector.broadcast %cst_39 : f32 to vector<1x256xf32>
    %c0_40 = arith.constant 0 : index
    %c43 = arith.constant 43 : index
    %78 = vector.load %arg10[%c0_40, %c43] : memref<121x512xf32, #tpu.memory_space<vmem>>, vector<1x256xf32>
    %79 = arith.addf %77, %78 : vector<1x256xf32>
    %c11 = arith.constant 11 : index
    %c59 = arith.constant 59 : index
    %80 = vector.load %arg10[%c11, %c59] : memref<121x512xf32, #tpu.memory_space<vmem>>, vector<1x256xf32>
    %81 = arith.addf %79, %80 : vector<1x256xf32>
    %c22 = arith.constant 22 : index
    %c75 = arith.constant 75 : index
    %82 = vector.load %arg10[%c22, %c75] : memref<121x512xf32, #tpu.memory_space<vmem>>, vector<1x256xf32>
    %83 = arith.addf %81, %82 : vector<1x256xf32>
    %c33 = arith.constant 33 : index
    %c91 = arith.constant 91 : index
    %84 = vector.load %arg10[%c33, %c91] : memref<121x512xf32, #tpu.memory_space<vmem>>, vector<1x256xf32>
    %85 = arith.addf %83, %84 : vector<1x256xf32>
    %c44 = arith.constant 44 : index
    %c107 = arith.constant 107 : index
    %86 = vector.load %arg10[%c44, %c107] : memref<121x512xf32, #tpu.memory_space<vmem>>, vector<1x256xf32>
    %87 = arith.addf %85, %86 : vector<1x256xf32>
    %c55 = arith.constant 55 : index
    %c123 = arith.constant 123 : index
    %88 = vector.load %arg10[%c55, %c123] : memref<121x512xf32, #tpu.memory_space<vmem>>, vector<1x256xf32>
    %89 = arith.addf %87, %88 : vector<1x256xf32>
    %c66 = arith.constant 66 : index
    %c139 = arith.constant 139 : index
    %90 = vector.load %arg10[%c66, %c139] : memref<121x512xf32, #tpu.memory_space<vmem>>, vector<1x256xf32>
    %91 = arith.addf %89, %90 : vector<1x256xf32>
    %c77 = arith.constant 77 : index
    %c155 = arith.constant 155 : index
    %92 = vector.load %arg10[%c77, %c155] : memref<121x512xf32, #tpu.memory_space<vmem>>, vector<1x256xf32>
    %93 = arith.addf %91, %92 : vector<1x256xf32>
    %c88 = arith.constant 88 : index
    %c171 = arith.constant 171 : index
    %94 = vector.load %arg10[%c88, %c171] : memref<121x512xf32, #tpu.memory_space<vmem>>, vector<1x256xf32>
    %95 = arith.addf %93, %94 : vector<1x256xf32>
    %c99 = arith.constant 99 : index
    %c187 = arith.constant 187 : index
    %96 = vector.load %arg10[%c99, %c187] : memref<121x512xf32, #tpu.memory_space<vmem>>, vector<1x256xf32>
    %97 = arith.addf %95, %96 : vector<1x256xf32>
    %c110 = arith.constant 110 : index
    %c203 = arith.constant 203 : index
    %98 = vector.load %arg10[%c110, %c203] : memref<121x512xf32, #tpu.memory_space<vmem>>, vector<1x256xf32>
    %99 = arith.addf %97, %98 : vector<1x256xf32>
    %cst_41 = arith.constant 0.000000e+00 : f32
    %100 = vector.broadcast %cst_41 : f32 to vector<1x256xf32>
    %101 = arith.select %76, %99, %100 : vector<1x256xi1>, vector<1x256xf32>
    %102 = arith.addf %69, %101 : vector<1x256xf32>
    %c-4_i32 = arith.constant -4 : i32
    %103 = vector.broadcast %c-4_i32 : i32 to vector<1x256xi32>
    %104 = arith.addi %68, %103 : vector<1x256xi32>
    %c0_i32_42 = arith.constant 0 : i32
    %105 = vector.broadcast %c0_i32_42 : i32 to vector<1x256xi32>
    %106 = arith.cmpi sge, %104, %105 : vector<1x256xi32>
    %c16_i32_43 = arith.constant 16 : i32
    %107 = vector.broadcast %c16_i32_43 : i32 to vector<1x256xi32>
    %108 = arith.cmpi slt, %104, %107 : vector<1x256xi32>
    %109 = arith.andi %106, %108 : vector<1x256xi1>
    %cst_44 = arith.constant 0.000000e+00 : f32
    %110 = vector.broadcast %cst_44 : f32 to vector<1x256xf32>
    %c1_45 = arith.constant 1 : index
    %c44_46 = arith.constant 44 : index
    %111 = vector.load %arg10[%c1_45, %c44_46] : memref<121x512xf32, #tpu.memory_space<vmem>>, vector<1x256xf32>
    %112 = arith.addf %110, %111 : vector<1x256xf32>
    %c12 = arith.constant 12 : index
    %c60 = arith.constant 60 : index
    %113 = vector.load %arg10[%c12, %c60] : memref<121x512xf32, #tpu.memory_space<vmem>>, vector<1x256xf32>
    %114 = arith.addf %112, %113 : vector<1x256xf32>
    %c23 = arith.constant 23 : index
    %c76 = arith.constant 76 : index
    %115 = vector.load %arg10[%c23, %c76] : memref<121x512xf32, #tpu.memory_space<vmem>>, vector<1x256xf32>
    %116 = arith.addf %114, %115 : vector<1x256xf32>
    %c34 = arith.constant 34 : index
    %c92 = arith.constant 92 : index
    %117 = vector.load %arg10[%c34, %c92] : memref<121x512xf32, #tpu.memory_space<vmem>>, vector<1x256xf32>
    %118 = arith.addf %116, %117 : vector<1x256xf32>
    %c45 = arith.constant 45 : index
    %c108 = arith.constant 108 : index
    %119 = vector.load %arg10[%c45, %c108] : memref<121x512xf32, #tpu.memory_space<vmem>>, vector<1x256xf32>
    %120 = arith.addf %118, %119 : vector<1x256xf32>
    %c56 = arith.constant 56 : index
    %c124 = arith.constant 124 : index
    %121 = vector.load %arg10[%c56, %c124] : memref<121x512xf32, #tpu.memory_space<vmem>>, vector<1x256xf32>
    %122 = arith.addf %120, %121 : vector<1x256xf32>
    %c67 = arith.constant 67 : index
    %c140 = arith.constant 140 : index
    %123 = vector.load %arg10[%c67, %c140] : memref<121x512xf32, #tpu.memory_space<vmem>>, vector<1x256xf32>
    %124 = arith.addf %122, %123 : vector<1x256xf32>
    %c78 = arith.constant 78 : index
    %c156 = arith.constant 156 : index
    %125 = vector.load %arg10[%c78, %c156] : memref<121x512xf32, #tpu.memory_space<vmem>>, vector<1x256xf32>
    %126 = arith.addf %124, %125 : vector<1x256xf32>
    %c89 = arith.constant 89 : index
    %c172 = arith.constant 172 : index
    %127 = vector.load %arg10[%c89, %c172] : memref<121x512xf32, #tpu.memory_space<vmem>>, vector<1x256xf32>
    %128 = arith.addf %126, %127 : vector<1x256xf32>
    %c100 = arith.constant 100 : index
    %c188 = arith.constant 188 : index
    %129 = vector.load %arg10[%c100, %c188] : memref<121x512xf32, #tpu.memory_space<vmem>>, vector<1x256xf32>
    %130 = arith.addf %128, %129 : vector<1x256xf32>
    %c111 = arith.constant 111 : index
    %c204 = arith.constant 204 : index
    %131 = vector.load %arg10[%c111, %c204] : memref<121x512xf32, #tpu.memory_space<vmem>>, vector<1x256xf32>
    %132 = arith.addf %130, %131 : vector<1x256xf32>
    %cst_47 = arith.constant 0.000000e+00 : f32
    %133 = vector.broadcast %cst_47 : f32 to vector<1x256xf32>
    %134 = arith.select %109, %132, %133 : vector<1x256xi1>, vector<1x256xf32>
    %135 = arith.addf %102, %134 : vector<1x256xf32>
    %c-3_i32 = arith.constant -3 : i32
    %136 = vector.broadcast %c-3_i32 : i32 to vector<1x256xi32>
    %137 = arith.addi %68, %136 : vector<1x256xi32>
    %c0_i32_48 = arith.constant 0 : i32
    %138 = vector.broadcast %c0_i32_48 : i32 to vector<1x256xi32>
    %139 = arith.cmpi sge, %137, %138 : vector<1x256xi32>
    %c16_i32_49 = arith.constant 16 : i32
    %140 = vector.broadcast %c16_i32_49 : i32 to vector<1x256xi32>
    %141 = arith.cmpi slt, %137, %140 : vector<1x256xi32>
    %142 = arith.andi %139, %141 : vector<1x256xi1>
    %cst_50 = arith.constant 0.000000e+00 : f32
    %143 = vector.broadcast %cst_50 : f32 to vector<1x256xf32>
    %c2 = arith.constant 2 : index
    %c45_51 = arith.constant 45 : index
    %144 = vector.load %arg10[%c2, %c45_51] : memref<121x512xf32, #tpu.memory_space<vmem>>, vector<1x256xf32>
    %145 = arith.addf %143, %144 : vector<1x256xf32>
    %c13 = arith.constant 13 : index
    %c61 = arith.constant 61 : index
    %146 = vector.load %arg10[%c13, %c61] : memref<121x512xf32, #tpu.memory_space<vmem>>, vector<1x256xf32>
    %147 = arith.addf %145, %146 : vector<1x256xf32>
    %c24 = arith.constant 24 : index
    %c77_52 = arith.constant 77 : index
    %148 = vector.load %arg10[%c24, %c77_52] : memref<121x512xf32, #tpu.memory_space<vmem>>, vector<1x256xf32>
    %149 = arith.addf %147, %148 : vector<1x256xf32>
    %c35 = arith.constant 35 : index
    %c93 = arith.constant 93 : index
    %150 = vector.load %arg10[%c35, %c93] : memref<121x512xf32, #tpu.memory_space<vmem>>, vector<1x256xf32>
    %151 = arith.addf %149, %150 : vector<1x256xf32>
    %c46 = arith.constant 46 : index
    %c109 = arith.constant 109 : index
    %152 = vector.load %arg10[%c46, %c109] : memref<121x512xf32, #tpu.memory_space<vmem>>, vector<1x256xf32>
    %153 = arith.addf %151, %152 : vector<1x256xf32>
    %c57 = arith.constant 57 : index
    %c125 = arith.constant 125 : index
    %154 = vector.load %arg10[%c57, %c125] : memref<121x512xf32, #tpu.memory_space<vmem>>, vector<1x256xf32>
    %155 = arith.addf %153, %154 : vector<1x256xf32>
    %c68 = arith.constant 68 : index
    %c141 = arith.constant 141 : index
    %156 = vector.load %arg10[%c68, %c141] : memref<121x512xf32, #tpu.memory_space<vmem>>, vector<1x256xf32>
    %157 = arith.addf %155, %156 : vector<1x256xf32>
    %c79 = arith.constant 79 : index
    %c157 = arith.constant 157 : index
    %158 = vector.load %arg10[%c79, %c157] : memref<121x512xf32, #tpu.memory_space<vmem>>, vector<1x256xf32>
    %159 = arith.addf %157, %158 : vector<1x256xf32>
    %c90 = arith.constant 90 : index
    %c173 = arith.constant 173 : index
    %160 = vector.load %arg10[%c90, %c173] : memref<121x512xf32, #tpu.memory_space<vmem>>, vector<1x256xf32>
    %161 = arith.addf %159, %160 : vector<1x256xf32>
    %c101 = arith.constant 101 : index
    %c189 = arith.constant 189 : index
    %162 = vector.load %arg10[%c101, %c189] : memref<121x512xf32, #tpu.memory_space<vmem>>, vector<1x256xf32>
    %163 = arith.addf %161, %162 : vector<1x256xf32>
    %c112 = arith.constant 112 : index
    %c205 = arith.constant 205 : index
    %164 = vector.load %arg10[%c112, %c205] : memref<121x512xf32, #tpu.memory_space<vmem>>, vector<1x256xf32>
    %165 = arith.addf %163, %164 : vector<1x256xf32>
    %cst_53 = arith.constant 0.000000e+00 : f32
    %166 = vector.broadcast %cst_53 : f32 to vector<1x256xf32>
    %167 = arith.select %142, %165, %166 : vector<1x256xi1>, vector<1x256xf32>
    %168 = arith.addf %135, %167 : vector<1x256xf32>
    %c-2_i32 = arith.constant -2 : i32
    %169 = vector.broadcast %c-2_i32 : i32 to vector<1x256xi32>
    %170 = arith.addi %68, %169 : vector<1x256xi32>
    %c0_i32_54 = arith.constant 0 : i32
    %171 = vector.broadcast %c0_i32_54 : i32 to vector<1x256xi32>
    %172 = arith.cmpi sge, %170, %171 : vector<1x256xi32>
    %c16_i32_55 = arith.constant 16 : i32
    %173 = vector.broadcast %c16_i32_55 : i32 to vector<1x256xi32>
    %174 = arith.cmpi slt, %170, %173 : vector<1x256xi32>
    %175 = arith.andi %172, %174 : vector<1x256xi1>
    %cst_56 = arith.constant 0.000000e+00 : f32
    %176 = vector.broadcast %cst_56 : f32 to vector<1x256xf32>
    %c3 = arith.constant 3 : index
    %c46_57 = arith.constant 46 : index
    %177 = vector.load %arg10[%c3, %c46_57] : memref<121x512xf32, #tpu.memory_space<vmem>>, vector<1x256xf32>
    %178 = arith.addf %176, %177 : vector<1x256xf32>
    %c14 = arith.constant 14 : index
    %c62 = arith.constant 62 : index
    %179 = vector.load %arg10[%c14, %c62] : memref<121x512xf32, #tpu.memory_space<vmem>>, vector<1x256xf32>
    %180 = arith.addf %178, %179 : vector<1x256xf32>
    %c25 = arith.constant 25 : index
    %c78_58 = arith.constant 78 : index
    %181 = vector.load %arg10[%c25, %c78_58] : memref<121x512xf32, #tpu.memory_space<vmem>>, vector<1x256xf32>
    %182 = arith.addf %180, %181 : vector<1x256xf32>
    %c36 = arith.constant 36 : index
    %c94 = arith.constant 94 : index
    %183 = vector.load %arg10[%c36, %c94] : memref<121x512xf32, #tpu.memory_space<vmem>>, vector<1x256xf32>
    %184 = arith.addf %182, %183 : vector<1x256xf32>
    %c47 = arith.constant 47 : index
    %c110_59 = arith.constant 110 : index
    %185 = vector.load %arg10[%c47, %c110_59] : memref<121x512xf32, #tpu.memory_space<vmem>>, vector<1x256xf32>
    %186 = arith.addf %184, %185 : vector<1x256xf32>
    %c58 = arith.constant 58 : index
    %c126 = arith.constant 126 : index
    %187 = vector.load %arg10[%c58, %c126] : memref<121x512xf32, #tpu.memory_space<vmem>>, vector<1x256xf32>
    %188 = arith.addf %186, %187 : vector<1x256xf32>
    %c69 = arith.constant 69 : index
    %c142 = arith.constant 142 : index
    %189 = vector.load %arg10[%c69, %c142] : memref<121x512xf32, #tpu.memory_space<vmem>>, vector<1x256xf32>
    %190 = arith.addf %188, %189 : vector<1x256xf32>
    %c80 = arith.constant 80 : index
    %c158 = arith.constant 158 : index
    %191 = vector.load %arg10[%c80, %c158] : memref<121x512xf32, #tpu.memory_space<vmem>>, vector<1x256xf32>
    %192 = arith.addf %190, %191 : vector<1x256xf32>
    %c91_60 = arith.constant 91 : index
    %c174 = arith.constant 174 : index
    %193 = vector.load %arg10[%c91_60, %c174] : memref<121x512xf32, #tpu.memory_space<vmem>>, vector<1x256xf32>
    %194 = arith.addf %192, %193 : vector<1x256xf32>
    %c102 = arith.constant 102 : index
    %c190 = arith.constant 190 : index
    %195 = vector.load %arg10[%c102, %c190] : memref<121x512xf32, #tpu.memory_space<vmem>>, vector<1x256xf32>
    %196 = arith.addf %194, %195 : vector<1x256xf32>
    %c113 = arith.constant 113 : index
    %c206 = arith.constant 206 : index
    %197 = vector.load %arg10[%c113, %c206] : memref<121x512xf32, #tpu.memory_space<vmem>>, vector<1x256xf32>
    %198 = arith.addf %196, %197 : vector<1x256xf32>
    %cst_61 = arith.constant 0.000000e+00 : f32
    %199 = vector.broadcast %cst_61 : f32 to vector<1x256xf32>
    %200 = arith.select %175, %198, %199 : vector<1x256xi1>, vector<1x256xf32>
    %201 = arith.addf %168, %200 : vector<1x256xf32>
    %c-1_i32 = arith.constant -1 : i32
    %202 = vector.broadcast %c-1_i32 : i32 to vector<1x256xi32>
    %203 = arith.addi %68, %202 : vector<1x256xi32>
    %c0_i32_62 = arith.constant 0 : i32
    %204 = vector.broadcast %c0_i32_62 : i32 to vector<1x256xi32>
    %205 = arith.cmpi sge, %203, %204 : vector<1x256xi32>
    %c16_i32_63 = arith.constant 16 : i32
    %206 = vector.broadcast %c16_i32_63 : i32 to vector<1x256xi32>
    %207 = arith.cmpi slt, %203, %206 : vector<1x256xi32>
    %208 = arith.andi %205, %207 : vector<1x256xi1>
    %cst_64 = arith.constant 0.000000e+00 : f32
    %209 = vector.broadcast %cst_64 : f32 to vector<1x256xf32>
    %c4 = arith.constant 4 : index
    %c47_65 = arith.constant 47 : index
    %210 = vector.load %arg10[%c4, %c47_65] : memref<121x512xf32, #tpu.memory_space<vmem>>, vector<1x256xf32>
    %211 = arith.addf %209, %210 : vector<1x256xf32>
    %c15 = arith.constant 15 : index
    %c63 = arith.constant 63 : index
    %212 = vector.load %arg10[%c15, %c63] : memref<121x512xf32, #tpu.memory_space<vmem>>, vector<1x256xf32>
    %213 = arith.addf %211, %212 : vector<1x256xf32>
    %c26 = arith.constant 26 : index
    %c79_66 = arith.constant 79 : index
    %214 = vector.load %arg10[%c26, %c79_66] : memref<121x512xf32, #tpu.memory_space<vmem>>, vector<1x256xf32>
    %215 = arith.addf %213, %214 : vector<1x256xf32>
    %c37 = arith.constant 37 : index
    %c95 = arith.constant 95 : index
    %216 = vector.load %arg10[%c37, %c95] : memref<121x512xf32, #tpu.memory_space<vmem>>, vector<1x256xf32>
    %217 = arith.addf %215, %216 : vector<1x256xf32>
    %c48 = arith.constant 48 : index
    %c111_67 = arith.constant 111 : index
    %218 = vector.load %arg10[%c48, %c111_67] : memref<121x512xf32, #tpu.memory_space<vmem>>, vector<1x256xf32>
    %219 = arith.addf %217, %218 : vector<1x256xf32>
    %c59_68 = arith.constant 59 : index
    %c127 = arith.constant 127 : index
    %220 = vector.load %arg10[%c59_68, %c127] : memref<121x512xf32, #tpu.memory_space<vmem>>, vector<1x256xf32>
    %221 = arith.addf %219, %220 : vector<1x256xf32>
    %c70 = arith.constant 70 : index
    %c143 = arith.constant 143 : index
    %222 = vector.load %arg10[%c70, %c143] : memref<121x512xf32, #tpu.memory_space<vmem>>, vector<1x256xf32>
    %223 = arith.addf %221, %222 : vector<1x256xf32>
    %c81 = arith.constant 81 : index
    %c159 = arith.constant 159 : index
    %224 = vector.load %arg10[%c81, %c159] : memref<121x512xf32, #tpu.memory_space<vmem>>, vector<1x256xf32>
    %225 = arith.addf %223, %224 : vector<1x256xf32>
    %c92_69 = arith.constant 92 : index
    %c175 = arith.constant 175 : index
    %226 = vector.load %arg10[%c92_69, %c175] : memref<121x512xf32, #tpu.memory_space<vmem>>, vector<1x256xf32>
    %227 = arith.addf %225, %226 : vector<1x256xf32>
    %c103 = arith.constant 103 : index
    %c191 = arith.constant 191 : index
    %228 = vector.load %arg10[%c103, %c191] : memref<121x512xf32, #tpu.memory_space<vmem>>, vector<1x256xf32>
    %229 = arith.addf %227, %228 : vector<1x256xf32>
    %c114 = arith.constant 114 : index
    %c207 = arith.constant 207 : index
    %230 = vector.load %arg10[%c114, %c207] : memref<121x512xf32, #tpu.memory_space<vmem>>, vector<1x256xf32>
    %231 = arith.addf %229, %230 : vector<1x256xf32>
    %cst_70 = arith.constant 0.000000e+00 : f32
    %232 = vector.broadcast %cst_70 : f32 to vector<1x256xf32>
    %233 = arith.select %208, %231, %232 : vector<1x256xi1>, vector<1x256xf32>
    %234 = arith.addf %201, %233 : vector<1x256xf32>
    %c0_i32_71 = arith.constant 0 : i32
    %235 = vector.broadcast %c0_i32_71 : i32 to vector<1x256xi32>
    %236 = arith.addi %68, %235 : vector<1x256xi32>
    %c0_i32_72 = arith.constant 0 : i32
    %237 = vector.broadcast %c0_i32_72 : i32 to vector<1x256xi32>
    %238 = arith.cmpi sge, %236, %237 : vector<1x256xi32>
    %c16_i32_73 = arith.constant 16 : i32
    %239 = vector.broadcast %c16_i32_73 : i32 to vector<1x256xi32>
    %240 = arith.cmpi slt, %236, %239 : vector<1x256xi32>
    %241 = arith.andi %238, %240 : vector<1x256xi1>
    %cst_74 = arith.constant 0.000000e+00 : f32
    %242 = vector.broadcast %cst_74 : f32 to vector<1x256xf32>
    %c5 = arith.constant 5 : index
    %c48_75 = arith.constant 48 : index
    %243 = vector.load %arg10[%c5, %c48_75] : memref<121x512xf32, #tpu.memory_space<vmem>>, vector<1x256xf32>
    %244 = arith.addf %242, %243 : vector<1x256xf32>
    %c16 = arith.constant 16 : index
    %c64 = arith.constant 64 : index
    %245 = vector.load %arg10[%c16, %c64] : memref<121x512xf32, #tpu.memory_space<vmem>>, vector<1x256xf32>
    %246 = arith.addf %244, %245 : vector<1x256xf32>
    %c27 = arith.constant 27 : index
    %c80_76 = arith.constant 80 : index
    %247 = vector.load %arg10[%c27, %c80_76] : memref<121x512xf32, #tpu.memory_space<vmem>>, vector<1x256xf32>
    %248 = arith.addf %246, %247 : vector<1x256xf32>
    %c38 = arith.constant 38 : index
    %c96 = arith.constant 96 : index
    %249 = vector.load %arg10[%c38, %c96] : memref<121x512xf32, #tpu.memory_space<vmem>>, vector<1x256xf32>
    %250 = arith.addf %248, %249 : vector<1x256xf32>
    %c49 = arith.constant 49 : index
    %c112_77 = arith.constant 112 : index
    %251 = vector.load %arg10[%c49, %c112_77] : memref<121x512xf32, #tpu.memory_space<vmem>>, vector<1x256xf32>
    %252 = arith.addf %250, %251 : vector<1x256xf32>
    %c60_78 = arith.constant 60 : index
    %c128_79 = arith.constant 128 : index
    %253 = vector.load %arg10[%c60_78, %c128_79] : memref<121x512xf32, #tpu.memory_space<vmem>>, vector<1x256xf32>
    %254 = arith.addf %252, %253 : vector<1x256xf32>
    %c71 = arith.constant 71 : index
    %c144 = arith.constant 144 : index
    %255 = vector.load %arg10[%c71, %c144] : memref<121x512xf32, #tpu.memory_space<vmem>>, vector<1x256xf32>
    %256 = arith.addf %254, %255 : vector<1x256xf32>
    %c82 = arith.constant 82 : index
    %c160 = arith.constant 160 : index
    %257 = vector.load %arg10[%c82, %c160] : memref<121x512xf32, #tpu.memory_space<vmem>>, vector<1x256xf32>
    %258 = arith.addf %256, %257 : vector<1x256xf32>
    %c93_80 = arith.constant 93 : index
    %c176 = arith.constant 176 : index
    %259 = vector.load %arg10[%c93_80, %c176] : memref<121x512xf32, #tpu.memory_space<vmem>>, vector<1x256xf32>
    %260 = arith.addf %258, %259 : vector<1x256xf32>
    %c104 = arith.constant 104 : index
    %c192 = arith.constant 192 : index
    %261 = vector.load %arg10[%c104, %c192] : memref<121x512xf32, #tpu.memory_space<vmem>>, vector<1x256xf32>
    %262 = arith.addf %260, %261 : vector<1x256xf32>
    %c115 = arith.constant 115 : index
    %c208 = arith.constant 208 : index
    %263 = vector.load %arg10[%c115, %c208] : memref<121x512xf32, #tpu.memory_space<vmem>>, vector<1x256xf32>
    %264 = arith.addf %262, %263 : vector<1x256xf32>
    %cst_81 = arith.constant 0.000000e+00 : f32
    %265 = vector.broadcast %cst_81 : f32 to vector<1x256xf32>
    %266 = arith.select %241, %264, %265 : vector<1x256xi1>, vector<1x256xf32>
    %267 = arith.addf %234, %266 : vector<1x256xf32>
    %c1_i32_82 = arith.constant 1 : i32
    %268 = vector.broadcast %c1_i32_82 : i32 to vector<1x256xi32>
    %269 = arith.addi %68, %268 : vector<1x256xi32>
    %c0_i32_83 = arith.constant 0 : i32
    %270 = vector.broadcast %c0_i32_83 : i32 to vector<1x256xi32>
    %271 = arith.cmpi sge, %269, %270 : vector<1x256xi32>
    %c16_i32_84 = arith.constant 16 : i32
    %272 = vector.broadcast %c16_i32_84 : i32 to vector<1x256xi32>
    %273 = arith.cmpi slt, %269, %272 : vector<1x256xi32>
    %274 = arith.andi %271, %273 : vector<1x256xi1>
    %cst_85 = arith.constant 0.000000e+00 : f32
    %275 = vector.broadcast %cst_85 : f32 to vector<1x256xf32>
    %c6 = arith.constant 6 : index
    %c49_86 = arith.constant 49 : index
    %276 = vector.load %arg10[%c6, %c49_86] : memref<121x512xf32, #tpu.memory_space<vmem>>, vector<1x256xf32>
    %277 = arith.addf %275, %276 : vector<1x256xf32>
    %c17 = arith.constant 17 : index
    %c65 = arith.constant 65 : index
    %278 = vector.load %arg10[%c17, %c65] : memref<121x512xf32, #tpu.memory_space<vmem>>, vector<1x256xf32>
    %279 = arith.addf %277, %278 : vector<1x256xf32>
    %c28 = arith.constant 28 : index
    %c81_87 = arith.constant 81 : index
    %280 = vector.load %arg10[%c28, %c81_87] : memref<121x512xf32, #tpu.memory_space<vmem>>, vector<1x256xf32>
    %281 = arith.addf %279, %280 : vector<1x256xf32>
    %c39 = arith.constant 39 : index
    %c97 = arith.constant 97 : index
    %282 = vector.load %arg10[%c39, %c97] : memref<121x512xf32, #tpu.memory_space<vmem>>, vector<1x256xf32>
    %283 = arith.addf %281, %282 : vector<1x256xf32>
    %c50 = arith.constant 50 : index
    %c113_88 = arith.constant 113 : index
    %284 = vector.load %arg10[%c50, %c113_88] : memref<121x512xf32, #tpu.memory_space<vmem>>, vector<1x256xf32>
    %285 = arith.addf %283, %284 : vector<1x256xf32>
    %c61_89 = arith.constant 61 : index
    %c129 = arith.constant 129 : index
    %286 = vector.load %arg10[%c61_89, %c129] : memref<121x512xf32, #tpu.memory_space<vmem>>, vector<1x256xf32>
    %287 = arith.addf %285, %286 : vector<1x256xf32>
    %c72 = arith.constant 72 : index
    %c145 = arith.constant 145 : index
    %288 = vector.load %arg10[%c72, %c145] : memref<121x512xf32, #tpu.memory_space<vmem>>, vector<1x256xf32>
    %289 = arith.addf %287, %288 : vector<1x256xf32>
    %c83 = arith.constant 83 : index
    %c161 = arith.constant 161 : index
    %290 = vector.load %arg10[%c83, %c161] : memref<121x512xf32, #tpu.memory_space<vmem>>, vector<1x256xf32>
    %291 = arith.addf %289, %290 : vector<1x256xf32>
    %c94_90 = arith.constant 94 : index
    %c177 = arith.constant 177 : index
    %292 = vector.load %arg10[%c94_90, %c177] : memref<121x512xf32, #tpu.memory_space<vmem>>, vector<1x256xf32>
    %293 = arith.addf %291, %292 : vector<1x256xf32>
    %c105 = arith.constant 105 : index
    %c193 = arith.constant 193 : index
    %294 = vector.load %arg10[%c105, %c193] : memref<121x512xf32, #tpu.memory_space<vmem>>, vector<1x256xf32>
    %295 = arith.addf %293, %294 : vector<1x256xf32>
    %c116 = arith.constant 116 : index
    %c209 = arith.constant 209 : index
    %296 = vector.load %arg10[%c116, %c209] : memref<121x512xf32, #tpu.memory_space<vmem>>, vector<1x256xf32>
    %297 = arith.addf %295, %296 : vector<1x256xf32>
    %cst_91 = arith.constant 0.000000e+00 : f32
    %298 = vector.broadcast %cst_91 : f32 to vector<1x256xf32>
    %299 = arith.select %274, %297, %298 : vector<1x256xi1>, vector<1x256xf32>
    %300 = arith.addf %267, %299 : vector<1x256xf32>
    %c2_i32 = arith.constant 2 : i32
    %301 = vector.broadcast %c2_i32 : i32 to vector<1x256xi32>
    %302 = arith.addi %68, %301 : vector<1x256xi32>
    %c0_i32_92 = arith.constant 0 : i32
    %303 = vector.broadcast %c0_i32_92 : i32 to vector<1x256xi32>
    %304 = arith.cmpi sge, %302, %303 : vector<1x256xi32>
    %c16_i32_93 = arith.constant 16 : i32
    %305 = vector.broadcast %c16_i32_93 : i32 to vector<1x256xi32>
    %306 = arith.cmpi slt, %302, %305 : vector<1x256xi32>
    %307 = arith.andi %304, %306 : vector<1x256xi1>
    %cst_94 = arith.constant 0.000000e+00 : f32
    %308 = vector.broadcast %cst_94 : f32 to vector<1x256xf32>
    %c7 = arith.constant 7 : index
    %c50_95 = arith.constant 50 : index
    %309 = vector.load %arg10[%c7, %c50_95] : memref<121x512xf32, #tpu.memory_space<vmem>>, vector<1x256xf32>
    %310 = arith.addf %308, %309 : vector<1x256xf32>
    %c18 = arith.constant 18 : index
    %c66_96 = arith.constant 66 : index
    %311 = vector.load %arg10[%c18, %c66_96] : memref<121x512xf32, #tpu.memory_space<vmem>>, vector<1x256xf32>
    %312 = arith.addf %310, %311 : vector<1x256xf32>
    %c29 = arith.constant 29 : index
    %c82_97 = arith.constant 82 : index
    %313 = vector.load %arg10[%c29, %c82_97] : memref<121x512xf32, #tpu.memory_space<vmem>>, vector<1x256xf32>
    %314 = arith.addf %312, %313 : vector<1x256xf32>
    %c40 = arith.constant 40 : index
    %c98 = arith.constant 98 : index
    %315 = vector.load %arg10[%c40, %c98] : memref<121x512xf32, #tpu.memory_space<vmem>>, vector<1x256xf32>
    %316 = arith.addf %314, %315 : vector<1x256xf32>
    %c51 = arith.constant 51 : index
    %c114_98 = arith.constant 114 : index
    %317 = vector.load %arg10[%c51, %c114_98] : memref<121x512xf32, #tpu.memory_space<vmem>>, vector<1x256xf32>
    %318 = arith.addf %316, %317 : vector<1x256xf32>
    %c62_99 = arith.constant 62 : index
    %c130 = arith.constant 130 : index
    %319 = vector.load %arg10[%c62_99, %c130] : memref<121x512xf32, #tpu.memory_space<vmem>>, vector<1x256xf32>
    %320 = arith.addf %318, %319 : vector<1x256xf32>
    %c73 = arith.constant 73 : index
    %c146 = arith.constant 146 : index
    %321 = vector.load %arg10[%c73, %c146] : memref<121x512xf32, #tpu.memory_space<vmem>>, vector<1x256xf32>
    %322 = arith.addf %320, %321 : vector<1x256xf32>
    %c84 = arith.constant 84 : index
    %c162 = arith.constant 162 : index
    %323 = vector.load %arg10[%c84, %c162] : memref<121x512xf32, #tpu.memory_space<vmem>>, vector<1x256xf32>
    %324 = arith.addf %322, %323 : vector<1x256xf32>
    %c95_100 = arith.constant 95 : index
    %c178 = arith.constant 178 : index
    %325 = vector.load %arg10[%c95_100, %c178] : memref<121x512xf32, #tpu.memory_space<vmem>>, vector<1x256xf32>
    %326 = arith.addf %324, %325 : vector<1x256xf32>
    %c106 = arith.constant 106 : index
    %c194 = arith.constant 194 : index
    %327 = vector.load %arg10[%c106, %c194] : memref<121x512xf32, #tpu.memory_space<vmem>>, vector<1x256xf32>
    %328 = arith.addf %326, %327 : vector<1x256xf32>
    %c117 = arith.constant 117 : index
    %c210 = arith.constant 210 : index
    %329 = vector.load %arg10[%c117, %c210] : memref<121x512xf32, #tpu.memory_space<vmem>>, vector<1x256xf32>
    %330 = arith.addf %328, %329 : vector<1x256xf32>
    %cst_101 = arith.constant 0.000000e+00 : f32
    %331 = vector.broadcast %cst_101 : f32 to vector<1x256xf32>
    %332 = arith.select %307, %330, %331 : vector<1x256xi1>, vector<1x256xf32>
    %333 = arith.addf %300, %332 : vector<1x256xf32>
    %c3_i32 = arith.constant 3 : i32
    %334 = vector.broadcast %c3_i32 : i32 to vector<1x256xi32>
    %335 = arith.addi %68, %334 : vector<1x256xi32>
    %c0_i32_102 = arith.constant 0 : i32
    %336 = vector.broadcast %c0_i32_102 : i32 to vector<1x256xi32>
    %337 = arith.cmpi sge, %335, %336 : vector<1x256xi32>
    %c16_i32_103 = arith.constant 16 : i32
    %338 = vector.broadcast %c16_i32_103 : i32 to vector<1x256xi32>
    %339 = arith.cmpi slt, %335, %338 : vector<1x256xi32>
    %340 = arith.andi %337, %339 : vector<1x256xi1>
    %cst_104 = arith.constant 0.000000e+00 : f32
    %341 = vector.broadcast %cst_104 : f32 to vector<1x256xf32>
    %c8 = arith.constant 8 : index
    %c51_105 = arith.constant 51 : index
    %342 = vector.load %arg10[%c8, %c51_105] : memref<121x512xf32, #tpu.memory_space<vmem>>, vector<1x256xf32>
    %343 = arith.addf %341, %342 : vector<1x256xf32>
    %c19 = arith.constant 19 : index
    %c67_106 = arith.constant 67 : index
    %344 = vector.load %arg10[%c19, %c67_106] : memref<121x512xf32, #tpu.memory_space<vmem>>, vector<1x256xf32>
    %345 = arith.addf %343, %344 : vector<1x256xf32>
    %c30 = arith.constant 30 : index
    %c83_107 = arith.constant 83 : index
    %346 = vector.load %arg10[%c30, %c83_107] : memref<121x512xf32, #tpu.memory_space<vmem>>, vector<1x256xf32>
    %347 = arith.addf %345, %346 : vector<1x256xf32>
    %c41 = arith.constant 41 : index
    %c99_108 = arith.constant 99 : index
    %348 = vector.load %arg10[%c41, %c99_108] : memref<121x512xf32, #tpu.memory_space<vmem>>, vector<1x256xf32>
    %349 = arith.addf %347, %348 : vector<1x256xf32>
    %c52 = arith.constant 52 : index
    %c115_109 = arith.constant 115 : index
    %350 = vector.load %arg10[%c52, %c115_109] : memref<121x512xf32, #tpu.memory_space<vmem>>, vector<1x256xf32>
    %351 = arith.addf %349, %350 : vector<1x256xf32>
    %c63_110 = arith.constant 63 : index
    %c131 = arith.constant 131 : index
    %352 = vector.load %arg10[%c63_110, %c131] : memref<121x512xf32, #tpu.memory_space<vmem>>, vector<1x256xf32>
    %353 = arith.addf %351, %352 : vector<1x256xf32>
    %c74 = arith.constant 74 : index
    %c147 = arith.constant 147 : index
    %354 = vector.load %arg10[%c74, %c147] : memref<121x512xf32, #tpu.memory_space<vmem>>, vector<1x256xf32>
    %355 = arith.addf %353, %354 : vector<1x256xf32>
    %c85 = arith.constant 85 : index
    %c163 = arith.constant 163 : index
    %356 = vector.load %arg10[%c85, %c163] : memref<121x512xf32, #tpu.memory_space<vmem>>, vector<1x256xf32>
    %357 = arith.addf %355, %356 : vector<1x256xf32>
    %c96_111 = arith.constant 96 : index
    %c179 = arith.constant 179 : index
    %358 = vector.load %arg10[%c96_111, %c179] : memref<121x512xf32, #tpu.memory_space<vmem>>, vector<1x256xf32>
    %359 = arith.addf %357, %358 : vector<1x256xf32>
    %c107_112 = arith.constant 107 : index
    %c195 = arith.constant 195 : index
    %360 = vector.load %arg10[%c107_112, %c195] : memref<121x512xf32, #tpu.memory_space<vmem>>, vector<1x256xf32>
    %361 = arith.addf %359, %360 : vector<1x256xf32>
    %c118 = arith.constant 118 : index
    %c211 = arith.constant 211 : index
    %362 = vector.load %arg10[%c118, %c211] : memref<121x512xf32, #tpu.memory_space<vmem>>, vector<1x256xf32>
    %363 = arith.addf %361, %362 : vector<1x256xf32>
    %cst_113 = arith.constant 0.000000e+00 : f32
    %364 = vector.broadcast %cst_113 : f32 to vector<1x256xf32>
    %365 = arith.select %340, %363, %364 : vector<1x256xi1>, vector<1x256xf32>
    %366 = arith.addf %333, %365 : vector<1x256xf32>
    %c4_i32 = arith.constant 4 : i32
    %367 = vector.broadcast %c4_i32 : i32 to vector<1x256xi32>
    %368 = arith.addi %68, %367 : vector<1x256xi32>
    %c0_i32_114 = arith.constant 0 : i32
    %369 = vector.broadcast %c0_i32_114 : i32 to vector<1x256xi32>
    %370 = arith.cmpi sge, %368, %369 : vector<1x256xi32>
    %c16_i32_115 = arith.constant 16 : i32
    %371 = vector.broadcast %c16_i32_115 : i32 to vector<1x256xi32>
    %372 = arith.cmpi slt, %368, %371 : vector<1x256xi32>
    %373 = arith.andi %370, %372 : vector<1x256xi1>
    %cst_116 = arith.constant 0.000000e+00 : f32
    %374 = vector.broadcast %cst_116 : f32 to vector<1x256xf32>
    %c9 = arith.constant 9 : index
    %c52_117 = arith.constant 52 : index
    %375 = vector.load %arg10[%c9, %c52_117] : memref<121x512xf32, #tpu.memory_space<vmem>>, vector<1x256xf32>
    %376 = arith.addf %374, %375 : vector<1x256xf32>
    %c20 = arith.constant 20 : index
    %c68_118 = arith.constant 68 : index
    %377 = vector.load %arg10[%c20, %c68_118] : memref<121x512xf32, #tpu.memory_space<vmem>>, vector<1x256xf32>
    %378 = arith.addf %376, %377 : vector<1x256xf32>
    %c31 = arith.constant 31 : index
    %c84_119 = arith.constant 84 : index
    %379 = vector.load %arg10[%c31, %c84_119] : memref<121x512xf32, #tpu.memory_space<vmem>>, vector<1x256xf32>
    %380 = arith.addf %378, %379 : vector<1x256xf32>
    %c42 = arith.constant 42 : index
    %c100_120 = arith.constant 100 : index
    %381 = vector.load %arg10[%c42, %c100_120] : memref<121x512xf32, #tpu.memory_space<vmem>>, vector<1x256xf32>
    %382 = arith.addf %380, %381 : vector<1x256xf32>
    %c53 = arith.constant 53 : index
    %c116_121 = arith.constant 116 : index
    %383 = vector.load %arg10[%c53, %c116_121] : memref<121x512xf32, #tpu.memory_space<vmem>>, vector<1x256xf32>
    %384 = arith.addf %382, %383 : vector<1x256xf32>
    %c64_122 = arith.constant 64 : index
    %c132 = arith.constant 132 : index
    %385 = vector.load %arg10[%c64_122, %c132] : memref<121x512xf32, #tpu.memory_space<vmem>>, vector<1x256xf32>
    %386 = arith.addf %384, %385 : vector<1x256xf32>
    %c75_123 = arith.constant 75 : index
    %c148 = arith.constant 148 : index
    %387 = vector.load %arg10[%c75_123, %c148] : memref<121x512xf32, #tpu.memory_space<vmem>>, vector<1x256xf32>
    %388 = arith.addf %386, %387 : vector<1x256xf32>
    %c86 = arith.constant 86 : index
    %c164 = arith.constant 164 : index
    %389 = vector.load %arg10[%c86, %c164] : memref<121x512xf32, #tpu.memory_space<vmem>>, vector<1x256xf32>
    %390 = arith.addf %388, %389 : vector<1x256xf32>
    %c97_124 = arith.constant 97 : index
    %c180 = arith.constant 180 : index
    %391 = vector.load %arg10[%c97_124, %c180] : memref<121x512xf32, #tpu.memory_space<vmem>>, vector<1x256xf32>
    %392 = arith.addf %390, %391 : vector<1x256xf32>
    %c108_125 = arith.constant 108 : index
    %c196 = arith.constant 196 : index
    %393 = vector.load %arg10[%c108_125, %c196] : memref<121x512xf32, #tpu.memory_space<vmem>>, vector<1x256xf32>
    %394 = arith.addf %392, %393 : vector<1x256xf32>
    %c119 = arith.constant 119 : index
    %c212 = arith.constant 212 : index
    %395 = vector.load %arg10[%c119, %c212] : memref<121x512xf32, #tpu.memory_space<vmem>>, vector<1x256xf32>
    %396 = arith.addf %394, %395 : vector<1x256xf32>
    %cst_126 = arith.constant 0.000000e+00 : f32
    %397 = vector.broadcast %cst_126 : f32 to vector<1x256xf32>
    %398 = arith.select %373, %396, %397 : vector<1x256xi1>, vector<1x256xf32>
    %399 = arith.addf %366, %398 : vector<1x256xf32>
    %c5_i32 = arith.constant 5 : i32
    %400 = vector.broadcast %c5_i32 : i32 to vector<1x256xi32>
    %401 = arith.addi %68, %400 : vector<1x256xi32>
    %c0_i32_127 = arith.constant 0 : i32
    %402 = vector.broadcast %c0_i32_127 : i32 to vector<1x256xi32>
    %403 = arith.cmpi sge, %401, %402 : vector<1x256xi32>
    %c16_i32_128 = arith.constant 16 : i32
    %404 = vector.broadcast %c16_i32_128 : i32 to vector<1x256xi32>
    %405 = arith.cmpi slt, %401, %404 : vector<1x256xi32>
    %406 = arith.andi %403, %405 : vector<1x256xi1>
    %cst_129 = arith.constant 0.000000e+00 : f32
    %407 = vector.broadcast %cst_129 : f32 to vector<1x256xf32>
    %c10 = arith.constant 10 : index
    %c53_130 = arith.constant 53 : index
    %408 = vector.load %arg10[%c10, %c53_130] : memref<121x512xf32, #tpu.memory_space<vmem>>, vector<1x256xf32>
    %409 = arith.addf %407, %408 : vector<1x256xf32>
    %c21 = arith.constant 21 : index
    %c69_131 = arith.constant 69 : index
    %410 = vector.load %arg10[%c21, %c69_131] : memref<121x512xf32, #tpu.memory_space<vmem>>, vector<1x256xf32>
    %411 = arith.addf %409, %410 : vector<1x256xf32>
    %c32_132 = arith.constant 32 : index
    %c85_133 = arith.constant 85 : index
    %412 = vector.load %arg10[%c32_132, %c85_133] : memref<121x512xf32, #tpu.memory_space<vmem>>, vector<1x256xf32>
    %413 = arith.addf %411, %412 : vector<1x256xf32>
    %c43_134 = arith.constant 43 : index
    %c101_135 = arith.constant 101 : index
    %414 = vector.load %arg10[%c43_134, %c101_135] : memref<121x512xf32, #tpu.memory_space<vmem>>, vector<1x256xf32>
    %415 = arith.addf %413, %414 : vector<1x256xf32>
    %c54 = arith.constant 54 : index
    %c117_136 = arith.constant 117 : index
    %416 = vector.load %arg10[%c54, %c117_136] : memref<121x512xf32, #tpu.memory_space<vmem>>, vector<1x256xf32>
    %417 = arith.addf %415, %416 : vector<1x256xf32>
    %c65_137 = arith.constant 65 : index
    %c133 = arith.constant 133 : index
    %418 = vector.load %arg10[%c65_137, %c133] : memref<121x512xf32, #tpu.memory_space<vmem>>, vector<1x256xf32>
    %419 = arith.addf %417, %418 : vector<1x256xf32>
    %c76_138 = arith.constant 76 : index
    %c149 = arith.constant 149 : index
    %420 = vector.load %arg10[%c76_138, %c149] : memref<121x512xf32, #tpu.memory_space<vmem>>, vector<1x256xf32>
    %421 = arith.addf %419, %420 : vector<1x256xf32>
    %c87 = arith.constant 87 : index
    %c165 = arith.constant 165 : index
    %422 = vector.load %arg10[%c87, %c165] : memref<121x512xf32, #tpu.memory_space<vmem>>, vector<1x256xf32>
    %423 = arith.addf %421, %422 : vector<1x256xf32>
    %c98_139 = arith.constant 98 : index
    %c181 = arith.constant 181 : index
    %424 = vector.load %arg10[%c98_139, %c181] : memref<121x512xf32, #tpu.memory_space<vmem>>, vector<1x256xf32>
    %425 = arith.addf %423, %424 : vector<1x256xf32>
    %c109_140 = arith.constant 109 : index
    %c197 = arith.constant 197 : index
    %426 = vector.load %arg10[%c109_140, %c197] : memref<121x512xf32, #tpu.memory_space<vmem>>, vector<1x256xf32>
    %427 = arith.addf %425, %426 : vector<1x256xf32>
    %c120 = arith.constant 120 : index
    %c213 = arith.constant 213 : index
    %428 = vector.load %arg10[%c120, %c213] : memref<121x512xf32, #tpu.memory_space<vmem>>, vector<1x256xf32>
    %429 = arith.addf %427, %428 : vector<1x256xf32>
    %cst_141 = arith.constant 0.000000e+00 : f32
    %430 = vector.broadcast %cst_141 : f32 to vector<1x256xf32>
    %431 = arith.select %406, %429, %430 : vector<1x256xi1>, vector<1x256xf32>
    %432 = arith.addf %399, %431 : vector<1x256xf32>
    %c2_142 = arith.constant 2 : index
    %433 = memref.load %arg5[%c2_142] : memref<3xf32, #tpu.memory_space<smem>>
    %434 = vector.broadcast %433 : f32 to vector<1x256xf32>
    %435 = arith.addf %432, %434 : vector<1x256xf32>
    %c0_143 = arith.constant 0 : index
    %c0_144 = arith.constant 0 : index
    %c0_145 = arith.constant 0 : index
    %436 = vector.load %arg8[%c0_143, %c0_144, %c0_145] : memref<1x1x256xf32, #tpu.memory_space<vmem>>, vector<1x1x256xf32>
    %437 = vector.shape_cast %436 : vector<1x1x256xf32> to vector<1x256xf32>
    %438 = vector.shape_cast %435 : vector<1x256xf32> to vector<1x1x256xf32>
    tpu.vector_store %arg8[%c0_143, %c0_144, %c0_145], %438 {strides = array<i32>} : memref<1x1x256xf32, #tpu.memory_space<vmem>>, vector<1x1x256xf32>,
    %439 = vector.broadcast %435 : vector<1x256xf32> to vector<32x256xf32>
    %440 = arith.addf %41, %439 : vector<32x256xf32>
    %c0_146 = arith.constant 0 : index
    %c0_147 = arith.constant 0 : index
    %c0_148 = arith.constant 0 : index
    %441 = vector.load %arg7[%c0_146, %c0_147, %c0_148] : memref<1x32x256xf32, #tpu.memory_space<vmem>>, vector<1x32x256xf32>
    %442 = vector.shape_cast %441 : vector<1x32x256xf32> to vector<32x256xf32>
    %443 = vector.shape_cast %440 : vector<32x256xf32> to vector<1x32x256xf32>
    tpu.vector_store %arg7[%c0_146, %c0_147, %c0_148], %443 {strides = array<i32>} : memref<1x32x256xf32, #tpu.memory_space<vmem>>, vector<1x32x256xf32>,
    return
  }
  func.func @transform_0(%arg0: i32) -> (i32, i32, i32) {
    %c0_i32 = arith.constant 0 : i32
    %c0_i32_0 = arith.constant 0 : i32
    %c0_i32_1 = arith.constant 0 : i32
    return %arg0, %c0_i32, %c0_i32_0 : i32, i32, i32
  }
  func.func @transform_1(%arg0: i32) -> (i32, i32) {
    %c0_i32 = arith.constant 0 : i32
    %c0_i32_0 = arith.constant 0 : i32
    %c0_i32_1 = arith.constant 0 : i32
    return %c0_i32, %c0_i32_0 : i32, i32
  }
  func.func @transform_2(%arg0: i32) -> (i32, i32) {
    %c0_i32 = arith.constant 0 : i32
    %c0_i32_0 = arith.constant 0 : i32
    %c0_i32_1 = arith.constant 0 : i32
    return %c0_i32, %c0_i32_0 : i32, i32
  }
  func.func @transform_3(%arg0: i32) -> (i32, i32) {
    %c0_i32 = arith.constant 0 : i32
    %c0_i32_0 = arith.constant 0 : i32
    %c0_i32_1 = arith.constant 0 : i32
    return %c0_i32, %c0_i32_0 : i32, i32
  }
  func.func @transform_4(%arg0: i32) -> i32 {
    %c0_i32 = arith.constant 0 : i32
    %c0_i32_0 = arith.constant 0 : i32
    return %c0_i32 : i32
  }
  func.func @transform_5(%arg0: i32) -> (i32, i32, i32) {
    %c0_i32 = arith.constant 0 : i32
    %c0_i32_0 = arith.constant 0 : i32
    %c0_i32_1 = arith.constant 0 : i32
    return %arg0, %c0_i32, %c0_i32_0 : i32, i32, i32
  }
  func.func @transform_6(%arg0: i32) -> (i32, i32, i32) {
    %c0_i32 = arith.constant 0 : i32
    %c0_i32_0 = arith.constant 0 : i32
    %c0_i32_1 = arith.constant 0 : i32
    return %arg0, %c0_i32, %c0_i32_0 : i32, i32, i32
  }
  func.func @transform_7(%arg0: i32) -> (i32, i32, i32) {
    %c0_i32 = arith.constant 0 : i32
    %c0_i32_0 = arith.constant 0 : i32
    %c0_i32_1 = arith.constant 0 : i32
    return %arg0, %c0_i32, %c0_i32_0 : i32, i32, i32
  }
}

</mosaic_0001>

<bundles_post_ra>
// kernel: tpu_custom_call.1
= control target key start
LH: loop header
LB: loop body
LE: loop exit
PB: predicated region body
PF: predicated region fallthrough
CT: control target
= control target key end

     0   :  { %s5921_s0 = inlined_call_operand.vmem [shape: f32[2,32,256], index: 0, kind: input, shape index: {}]   ;;  %s5922_s1 = inlined_call_operand.hbm [shape: f32[33,33], index: 1, kind: input, shape index: {}]   ;;  %s5923_s2 = inlined_call_operand.hbm [shape: f32[33,33], index: 2, kind: input, shape index: {}]   ;;  %s5924_s3 = inlined_call_operand.vmem [shape: f32[121,32], index: 3, kind: input, shape index: {}]   ;;  %s5925_s4 = inlined_call_operand.vmem [shape: f32[3], index: 4, kind: input, shape index: {}]   ;;  %s5926_s5 = inlined_call_operand.hbm [shape: f32[2,32,256], index: 5, kind: output, shape index: {0}]   ;;  %s5927_s6 = inlined_call_operand.hbm [shape: f32[2,32,256], index: 6, kind: output, shape index: {1}]   ;;  %s5928_s7 = inlined_call_operand.hbm [shape: f32[2,1,256], index: 7, kind: output, shape index: {2}]  }
   0x1   :  { %5957 = sst [smem:[#allocation36_spill]] %s5925_s4 }
   0x2   :  { %13 = vsyncpa [#allocation5], 0 }
   0x3   :  { %14 = vsyncpa [#allocation9], 0 }
   0x4   :  { %15 = vsyncpa [#allocation7], 0 }
   0x5   :  { %16 = vsyncpa [#allocation6], 0 }
   0x6   :  { %18 = vsyncpa [#allocation6 + $0x1], 0 }
   0x7   :  { %19 = vsyncpa [#allocation13], 0 }
   0x8   :  { %21 = vsyncpa [#allocation13 + $0x1], 0  ;;  %s4390_s24 = smov 0   ;;  %s4392_s25 = smov 0  }
   0x9   :  { %s4394_s26 = smov 0   ;;  %s4396_s27 = smov 0  }
   0xa LB: > { %5958 = sst [smem:[#allocation20_spill]] %s4315_s26  ;;  %s4411_s28 = sadd.s32 4294967295, %s4319_s27   ;;  %s4319_s27 = sphi %s4396_s27, %s6028_s27   ;;  %s4315_s26 = sphi %s4394_s26, %s6025_s26   ;;  %s4311_s25 = sphi %s4392_s25, %s6027_s25   ;;  %s4307_s24 = sphi %s4390_s24, %s6026_s24  }
   0xb   : > { %s5929_s29 = sadd.s32 4294967294, %s4319_s27   ;;  %s4415_s30 = sadd.s32 1, %s4319_s27  }
   0xc   : > { %s144_s8 = sadd.s32 1, %s4315_s26  ;;  %s141_s9 = ssub.s32 %s4319_s27, %s4415_s30 }
   0xd   : > { %p154_p0 = scmp.ne.s32.totalorder %s4315_s26, %s4311_s25  ;;  %p142_p1 = scmp.eq.s32.totalorder %s141_s9, 0 }
   0xe   : > { %p155_p2 = scmp.eq.s32.totalorder %s4411_s28, 1  ;;  %p160_p3 = scmp.ne.s32.totalorder %s4311_s25, %s4307_s24 }
   0xf   : > { %p161_p4 = scmp.eq.s32.totalorder %s5929_s29, 1  ;;  %p3643_p7 = scmp.ge.s32.totalorder %s4319_s27, 1 }
  0x10   : > { %s4428_s10 = scalar_select %p142_p1, %s4315_s26, %s144_s8  }
  0x11   : > { %p4430_p5 = por %p155_p2, %p154_p0  ;;  %p4434_p6 = por %p161_p4, %p160_p3 }
  0x12   : > { %5959 = sst [smem:[#allocation21_spill]] %s4428_s10  ;;  %p220_p8 = scmp.lt.s32.totalorder %s4319_s27, 3 }
  0x13   : > { %s5961_s12 = scalar_select %p4434_p6, 1, 0 }
  0x14   : > { %p5930_p9 = scmp.eq.s32.totalorder %s4411_s28, 0  ;;  %p4441_p10 = pnand %p3643_p7, %p220_p8 }
  0x15   : > { %s4321_s14 = smov [#allocation4]   ;;  %s4322_s17 = smov [#allocation8]  }
  0x16   : > { %s232_s15 = sshll.u32 %s4321_s14, 4  ;;  %p3872_p11 = pneg %p4441_p10  ;;  %s4447_s15 = int_to_ptr.vmem [resolvable:$true] %s232_s15 }
  0x17   : > { %s245_s18 = sshll.u32 %s4322_s17, 4  ;;  %s5964_s4 = sld [smem:[#allocation36_spill]]  ;;  %s4455_s18 = int_to_ptr.vmem [resolvable:$true] %s245_s18 }
  0x18   : > { %p4451_p12 = pnand %p5930_p9, %p3872_p11  ;;  %s4114_s8 = scalar_lea.hbm %s5922_s1, 640 }
  0x19   : > { %p4115_p13 = scmp.ne.s32.totalorder %s5922_s1, %s4114_s8  ;;  %p4121_p3 = scmp.lt.u32.totalorder %s4114_s8, %s5922_s1 }
  0x1a   : > { %p4470_p0 = pneg %p4451_p12 }
  0x1c   : > { %p4117_p1 = pnand %p4470_p0, %p4115_p13 }
  0x1d   : > { %s262_s21 = sshll.u32 %s5964_s4, 4  ;;  %s4460_s21 = int_to_ptr.vmem [resolvable:$true] %s262_s21 }
  0x1e   : > { %p4118_p2 = pneg %p4117_p1 }
  0x20   : > { %p4123_p4 = pnand %p4121_p3, %p4118_p2 }
  0x22   : > { %4126 = shalt.err (!%p4123_p4)
}
  0x23   : > { %s4127_s20 = scalar_lea.vmem %s4447_s15, 640  ;;  %p4135_p9 = scmp.lt.s32.totalorder %s4447_s15, %s4447_s15 }
  0x24   : > { %p4128_p7 = scmp.ne.s32.totalorder %s4447_s15, %s4127_s20  ;;  %p4136_p6 = scmp.lt.s32.totalorder %s4127_s20, %s4127_s20 }
  0x26   : > { %p4130_p8 = pnand %p4128_p7, %p4470_p0  ;;  %p4137_p13 = por %p4136_p6, %p4135_p9 }
  0x28   : > { %p4131_p11 = pneg %p4130_p8 }
  0x2a   : > { %p4138_p1 = pnand %p4137_p13, %p4131_p11 }
  0x2c   : > { %4141 = shalt.err (!%p4138_p1)
}
  0x2d   : > { %s4323_s22 = smov 128   ;;  %s4324_s23 = smov 8  }
  0x2e   : > { %3875 = dma.hbm_to_vmem [thread:$0]  (!%p4451_p12), %s5922_s1, 640, %s4447_s15, [#allocation5], %s4323_s22, %s4323_s22, %s4324_s23  }
  0x2f   : > { %s4142_s19 = scalar_lea.hbm %s5923_s2, 640 }
  0x30   : > { %p4143_p6 = scmp.ne.s32.totalorder %s5923_s2, %s4142_s19  ;;  %p4149_p3 = scmp.lt.u32.totalorder %s4142_s19, %s5923_s2 }
  0x32   : > { %p4145_p9 = pnand %p4143_p6, %p4470_p0 }
  0x34   : > { %p4146_p2 = pneg %p4145_p9 }
  0x36   : > { %p4151_p4 = pnand %p4149_p3, %p4146_p2 }
  0x38   : > { %4154 = shalt.err (!%p4151_p4)
}
  0x39   : > { %s4155_s15 = scalar_lea.vmem %s4455_s18, 640  ;;  %p4163_p13 = scmp.lt.s32.totalorder %s4455_s18, %s4455_s18 }
  0x3a   : > { %p4156_p7 = scmp.ne.s32.totalorder %s4455_s18, %s4155_s15  ;;  %p4164_p1 = scmp.lt.s32.totalorder %s4155_s15, %s4155_s15 }
  0x3c   : > { %p4158_p8 = pnand %p4156_p7, %p4470_p0  ;;  %p4165_p6 = por %p4164_p1, %p4163_p13 }
  0x3e   : > { %p4159_p11 = pneg %p4158_p8 }
  0x40   : > { %p4166_p9 = pnand %p4165_p6, %p4159_p11 }
  0x42   : > { %4169 = shalt.err (!%p4166_p9)
}
  0x43   : > { %3878 = dma.hbm_to_vmem [thread:$0]  (!%p4451_p12), %s5923_s2, 640, %s4455_s18, [#allocation9], %s4323_s22, %s4323_s22, %s4324_s23  }
  0x44   : > { %s4170_s10 = scalar_lea.vmem %s4460_s21, 16  ;;  %p4178_p7 = scmp.lt.s32.totalorder %s4460_s21, %s4460_s21 }
  0x45   : > { %p4171_p2 = scmp.ne.s32.totalorder %s4460_s21, %s4170_s10  ;;  %p4179_p8 = scmp.lt.s32.totalorder %s4170_s10, %s4170_s10 }
  0x47   : > { %p4173_p3 = pnand %p4171_p2, %p4470_p0  ;;  %p4180_p11 = por %p4179_p8, %p4178_p7 }
  0x49   : > { %p4174_p4 = pneg %p4173_p3 }
  0x4b   : > { %p4181_p13 = pnand %p4180_p11, %p4174_p4 }
  0x4d   : > { %4184 = shalt.err (!%p4181_p13)
}
  0x4e   : > { %s4325_s8 = smov [#allocation10]   ;;  %283 = sbr.rel (%p4441_p10) target bundleno = 2473 (0x9a9), region = 40 }
  0x4f   : > { %3881 = dma.vmem_to_smem (!%p4451_p12), %s4460_s21, 16, %s4325_s8, [#allocation7]  }
  0x55   : > { %p5966_p1 = scmp.eq.s32.totalorder %s4411_s28, 0 }
  0x57   : > { %4286 = dma.done.wait (%p5966_p1), [#allocation5], 640   ;;  %p5967_p0 = pmov %p5966_p1 }
  0x59   : > { %4288 = vsyncadd (%p5967_p0), [#allocation5], 4294966656  ;;  %p5968_p6 = pmov %p5967_p0 }
  0x5a   : > { %p5969_p9 = pmov %p5967_p0 }
  0x5b   : > { %4290 = dma.done.wait (%p5968_p6), [#allocation9], 640  }
  0x5c   : > { %4292 = vsyncadd (%p5969_p9), [#allocation9], 4294966656  ;;  %p5970_p2 = pmov %p5967_p0 }
  0x5d   : > { %p5971_p12 = pmov %p5967_p0 }
  0x5e   : > { %4294 = dma.done.wait (%p5970_p2), [#allocation7], 16  }
  0x5f   : > { %4296 = vsyncadd (%p5971_p12), [#allocation7], 4294967280 }
  0x60   : > { %297 = sfence }
  0x61   : > { %p334_p10 = scmp.lt.s32.totalorder %s4411_s28, 1  ;;  %vm432_vm0 = vcmask 261120   ;;  %v4326_v24 = vmov 0.0   ;;  %v5932_v45 = vlaneseq  ;;  %v5972_v46 = vmov 0  ;;  %s582_s22 = sld [smem:[#allocation10]] }
  0x62   : > { %1938 = vst [vmem:[#allocation3] sm:$0xff] %v4326_v24  ;;  %1939 = vst [vmem:[#allocation3 + $0x20] sm:$0xff] %v4326_v24  ;;  %978 = vmatprep.mubr.f32.mxu0 %v4326_v24  ;;  %v4327_v47 = vmov 1.0   ;;  %vm646_vm2 = vcmask 1040384   ;;  %vm630_vm3 = vcmask 269312   ;;  %s3709_s23 = sld [smem:[#allocation10 + $0x1]] }
  0x63   : > { %s335_s29 = scalar_select %p334_p10, %s4411_s28, 1  ;;  %1940 = vst [vmem:[#allocation3 + $0x40] sm:$0xff] %v4326_v24  ;;  %1941 = vst [vmem:[#allocation3 + $0x60] sm:$0xff] %v4326_v24  ;;  %vm4610_vm1 = vcmp.lt.s32.totalorder %v5932_v45, 256  ;;  %vm2045_vm4 = vcmask 916480   ;;  %vm2055_vm5 = vcmask 785408  }
  0x64   : > { %1942 = vst [vmem:[#allocation3 + $0x80] sm:$0xff] %v4326_v24  ;;  %1943 = vst [vmem:[#allocation3 + $0xa0] sm:$0xff] %v4326_v24  ;;  %v5973_v46 = vsel %vm4610_vm1, 4294967295, %v5972_v46  ;;  %s5003_s9 = sand.u32 1, %s4311_s25   ;;  %s4328_s26 = smov 112   ;;  %vm5956_vm6 = vcmask 654336  }
  0x65   : > { %s3738_s13 = sshll.u32 %s335_s29, 6  ;;  %1944 = vst [vmem:[#allocation3 + $0xc0] sm:$0xff] %v4326_v24  ;;  %1945 = vst [vmem:[#allocation3 + $0xe0] sm:$0xff] %v4326_v24  ;;  %s3652_s14 = sshll.u32 %s5003_s9, 6  ;;  %vm2075_vm7 = vcmask 523264   ;;  %vm2085_vm8 = vcmask 392192  }
  0x66   : > { %s338_s21 = scalar_lea.vmem %s5921_s0, %s3738_s13  ;;  %1961 = vst [vmem:[#allocation3 + $0xf8] sm:$0xff] %v4326_v24  ;;  %1962 = vst [vmem:[#allocation3 + $0x118] sm:$0xff] %v4326_v24  ;;  %s5026_s17 = scalar_lea.vmem [#allocation11], %s3652_s14  ;;  %vm2104_vm9 = vcmask 130048  }
  0x67   : > { %v4542_v0 = vld [vmem:[%s338_s21 + $0x8] sm:$0xff]  ;;  %v4544_v1 = vld [vmem:[%s338_s21 + $0x18] sm:$0xff]  ;;  %v4546_v2 = vld [vmem:[%s338_s21] sm:$0xff]  ;;  %1963 = vst [vmem:[#allocation3 + $0x138] sm:$0xff] %v4326_v24  ;;  %v583_v54 = vstv %s582_s22  ;;  %s4329_s10 = smov 96   ;;  %s4330_s8 = smov 80  }
  0x68   : > { %v3742_v3 = vpack.c.bf16 %v4544_v1, %v4542_v0  ;;  %v4550_v4 = vld [vmem:[%s338_s21 + $0x10] sm:$0xff]  ;;  %v4552_v5 = vld [vmem:[%s338_s21 + $0x28] sm:$0xff]  ;;  %v4554_v6 = vld [vmem:[%s338_s21 + $0x38] sm:$0xff]  ;;  %411 = vmatprep.mubr.f32.mxu1 %v4542_v0  ;;  %1964 = vst [vmem:[#allocation3 + $0x158] sm:$0xff] %v4326_v24  ;;  %s4331_s29 = smov 64   ;;  %s4332_s13 = smov 48  }
  0x69   : > { %v3744_v7 = vpack.c.bf16 %v4550_v4, %v4546_v2  ;;  %v3746_v8 = vpack.c.bf16 %v4554_v6, %v4552_v5  ;;  %v4561_v9 = vld [vmem:[%s338_s21 + $0x20] sm:$0xff]  ;;  %v4563_v10 = vld [vmem:[%s338_s21 + $0x30] sm:$0xff]  ;;  %1965 = vst [vmem:[#allocation3 + $0x178] sm:$0xff] %v4326_v24  ;;  %1966 = vst [vmem:[#allocation3 + $0x198] sm:$0xff] %v4326_v24  ;;  %s4333_s16 = smov 32   ;;  %s4334_s18 = smov 16  }
  0x6a   : > { %3743 = vmatprep.subr.bf16.mxu1 %v3742_v3  ;;  %v3748_v11 = vpack.c.bf16 %v4563_v10, %v4561_v9  ;;  %1967 = vst [vmem:[#allocation3 + $0x1b8] sm:$0xff] %v4326_v24  ;;  %1968 = vst [vmem:[#allocation3 + $0x1d8] sm:$0xff] %v4326_v24  ;;  %s4335_s21 = smov 85   ;;  %s4336_s22 = smov 84  }
  0x6b   : > { %3745 = vmatpush1.bf16.xpose.msra.mxu1 %v3744_v7  ;;  %1969 = vst [vmem:[#allocation3 + $0x1f8] sm:$0x1] %v4326_v24  ;;  %5974 = vst [vmem:[#allocation22_spill] sm:$0xff] %v5973_v46  ;;  %s4338_s19 = smov 82   ;;  %s4339_s20 = smov 81  }
  0x6c   : > { %3747 = vmatprep.subr.bf16.mxu1 %v3746_v8  ;;  %613 = vst.msk [vmem:[#allocation2 + $0x40] ss:$8 sm:$0x3] %vm4610_vm1, %v4327_v47  ;;  %s4340_s15 = smov 79   ;;  %s4341_s4 = smov 78  }
  0x73   : > { %3749 = vmatpush1.bf16.xpose.msra.mxu1 %v3748_v11 }
  0x74   : > { %3751 = vmatprep.subr.bf16.mxu1 %v3742_v3 }
  0x7a   : > { %412 = vmatmul.mubr.f32.vlgmr.msra.gmra.mrb[0].mxu1 %v4546_v2 }
  0x7b   : > { %416 = vmatprep.mubr.f32.mxu1 %v4544_v1  ;;  %3753 = vmatpush1.bf16.msra.mxu1 %v3744_v7 }
  0x7c   : > { %3755 = vmatprep.subr.bf16.mxu1 %v3746_v8 }
  0x7e   : > { %417 = vmatmul.mubr.f32.gmra.mrb[2].mxu1 %v4550_v4 }
  0x7f   : > { %421 = vmatprep.mubr.f32.mxu1 %v4552_v5  ;;  %3757 = vmatpush1.bf16.msra.mxu1 %v3748_v11 }
  0x82   : > { %422 = vmatmul.mubr.f32.gmra.mrb[4].mxu1 %v4561_v9 }
  0x83   : > { %426 = vmatprep.mubr.f32.mxu1 %v4554_v6 }
  0x86   : > { %427 = vmatmul.mubr.f32.gmra.mrb[6].mxu1 %v4563_v10 }
  0x87   : > { %549 = vmatprep.mubr.f32.mxu1 %v4326_v24 }
 0x14d   : > { %v413_v12 = vpop.f32.mrb[0].mxu1 }
 0x14e   : > { %v415_v13 = vpop.f32.mrb[1].mxu1  ;;  %v433_v14 = vsel %vm432_vm0, %v413_v12, -inf }
 0x14f   : > { %434 = vmax.xlane.f32.xlu0 %v433_v14 }
 0x151   : > { %v418_v15 = vpop.f32.mrb[2].mxu1 }
 0x152   : > { %v420_v16 = vpop.f32.mrb[3].mxu1  ;;  %v436_v17 = vsel %vm432_vm0, %v418_v15, -inf }
 0x153   : > { %437 = vmax.xlane.f32.xlu0 %v436_v17 }
 0x155   : > { %v423_v18 = vpop.f32.mrb[4].mxu1 }
 0x156   : > { %v425_v19 = vpop.f32.mrb[5].mxu1  ;;  %v439_v20 = vsel %vm432_vm0, %v423_v18, -inf }
 0x157   : > { %440 = vmax.xlane.f32.xlu1 %v439_v20 }
 0x159   : > { %v428_v21 = vpop.f32.mrb[6].mxu1 }
 0x15a   : > { %v430_v22 = vpop.f32.mrb[7].mxu1  ;;  %v442_v23 = vsel %vm432_vm0, %v428_v21, -inf }
 0x15b   : > { %443 = vmax.xlane.f32.xlu1 %v442_v23 }
 0x1dc   : > { %v435_v25 = vpop.xlane.xlu0 %434 }
 0x1dd   : > { %v445_v26 = vsub.f32 %v413_v12, %v435_v25 }
 0x1df   : > { %v449_v27 = vmul.f32 1.442695, %v445_v26 }
 0x1e0   : > { %v438_v28 = vpop.xlane.xlu0 %437 }
 0x1e1   : > { %3957 = vpow2.f32 %v449_v27  ;;  %v446_v29 = vsub.f32 %v418_v15, %v438_v28 }
 0x1e3   : > { %v451_v30 = vmul.f32 1.442695, %v446_v29 }
 0x1e4   : > { %v441_v31 = vpop.xlane.xlu1 %440 }
 0x1e5   : > { %3959 = vpow2.f32 %v451_v30  ;;  %v447_v32 = vsub.f32 %v423_v18, %v441_v31 }
 0x1e7   : > { %v453_v33 = vmul.f32 1.442695, %v447_v32 }
 0x1e8   : > { %v444_v34 = vpop.xlane.xlu1 %443 }
 0x1e9   : > { %3961 = vpow2.f32 %v453_v33  ;;  %v448_v35 = vsub.f32 %v428_v21, %v444_v34  ;;  %v623_v33 = vld [vmem:[#allocation2 + $0x40] sm:$0x1]  ;;  %v625_v34 = vld [vmem:[#allocation4] sm:$0xff] }
 0x1eb   : > { %v3958_v36 = vpop.eup %3957  ;;  %v455_v37 = vmul.f32 1.442695, %v448_v35  ;;  %v628_v35 = vld [vmem:[#allocation4 + $0x18] sm:$0xff] }
 0x1ec   : > { %3657 = vmatmul.mubr.msk.f32.vlgmr.msra.gmra.mrb[8].mxu1 %vm432_vm0, %v3958_v36  ;;  %v457_v38 = vsel %vm432_vm0, %v3958_v36, 0.0  ;;  %v629_v36 = vld [vmem:[#allocation4 + $0x20] sm:$0x1] }
 0x1ed   : > { %3963 = vpow2.f32 %v455_v37  ;;  %458 = vadd.xlane.f32.xlu0 %v457_v38  ;;  %555 = vmatprep.mubr.f32.mxu1 %v4326_v24 }
 0x1ef   : > { %v3960_v39 = vpop.eup %3959 }
 0x1f0   : > { %3658 = vmatmul.mubr.msk.f32.gmra.mrb[10].mxu1 %vm432_vm0, %v3960_v39  ;;  %v460_v40 = vsel %vm432_vm0, %v3960_v39, 0.0 }
 0x1f1   : > { %461 = vadd.xlane.f32.xlu1 %v460_v40  ;;  %561 = vmatprep.mubr.f32.mxu1 %v4326_v24 }
 0x1f3   : > { %v3962_v41 = vpop.eup %3961 }
 0x1f4   : > { %3659 = vmatmul.mubr.msk.f32.gmra.mrb[12].mxu1 %vm432_vm0, %v3962_v41  ;;  %v463_v42 = vsel %vm432_vm0, %v3962_v41, 0.0 }
 0x1f5   : > { %464 = vadd.xlane.f32.xlu0 %v463_v42  ;;  %567 = vmatprep.mubr.f32.mxu1 %v4326_v24 }
 0x1f7   : > { %v3964_v43 = vpop.eup %3963 }
 0x1f8   : > { %3660 = vmatmul.mubr.msk.f32.gmra.mrb[14].mxu1 %vm432_vm0, %v3964_v43  ;;  %v466_v44 = vsel %vm432_vm0, %v3964_v43, 0.0 }
 0x1f9   : > { %467 = vadd.xlane.f32.xlu1 %v466_v44  ;;  %717 = vmatprep.mubr.f32.mxu1 %v4326_v24 }
 0x27a   : > { %v459_v48 = vpop.xlane.xlu0 %458 }
 0x27b   : > { %3965 = vrcp.f32 %v459_v48 }
 0x27e   : > { %v462_v49 = vpop.xlane.xlu1 %461 }
 0x27f   : > { %3967 = vrcp.f32 %v462_v49 }
 0x282   : > { %v465_v50 = vpop.xlane.xlu0 %464 }
 0x283   : > { %3969 = vrcp.f32 %v465_v50 }
 0x285   : > { %v3966_v52 = vpop.eup %3965 }
 0x286   : > { %v468_v51 = vpop.xlane.xlu1 %467 }
 0x287   : > { %3971 = vrcp.f32 %v468_v51 }
 0x289   : > { %v3968_v59 = vpop.eup %3967 }
 0x28d   : > { %v3970_v12 = vpop.eup %3969 }
 0x2bf   : > { %v551_v53 = vpop.f32.mrb[8].mxu1 }
 0x2c0   : > { %v574_v55 = vmul.f32 %v3966_v52, %v551_v53  ;;  %v553_v56 = vpop.f32.mrb[9].mxu1 }
 0x2c1   : > { %v575_v57 = vmul.f32 %v3966_v52, %v553_v56 }
 0x2c2   : > { %v584_v58 = vmul.f32 %v583_v54, %v574_v55 }
 0x2c3   : > { %v585_v60 = vmul.f32 %v583_v54, %v575_v57  ;;  %v557_v61 = vpop.f32.mrb[10].mxu1 }
 0x2c4   : > { %v592_v62 = vadd.f32 %v584_v58, %v4546_v2  ;;  %v576_v63 = vmul.f32 %v3968_v59, %v557_v61  ;;  %v559_v3 = vpop.f32.mrb[11].mxu1 }
 0x2c5   : > { %v593_v7 = vadd.f32 %v585_v60, %v4542_v0  ;;  %v577_v8 = vmul.f32 %v3968_v59, %v559_v3  ;;  %v3972_v0 = vpop.eup %3971 }
 0x2c6   : > { %600 = vst [vmem:[#allocation2] sm:$0xff] %v592_v62  ;;  %v586_v11 = vmul.f32 %v583_v54, %v576_v63  ;;  %748 = vxpose.xlu0.b32.start [1/5] (short) %v592_v62, 128 }
 0x2c7   : > { %601 = vst [vmem:[#allocation2 + $0x8] sm:$0xff] %v593_v7  ;;  %v587_v13 = vmul.f32 %v583_v54, %v577_v8  ;;  %v563_v14 = vpop.f32.mrb[12].mxu1  ;;  %780 = vxpose.xlu1.b32.start [1/5] (short) %v593_v7, 128 }
 0x2c8   : > { %v594_v15 = vadd.f32 %v586_v11, %v4550_v4  ;;  %v578_v16 = vmul.f32 %v3970_v12, %v563_v14  ;;  %v565_v17 = vpop.f32.mrb[13].mxu1 }
 0x2c9   : > { %v595_v18 = vadd.f32 %v587_v13, %v4544_v1  ;;  %v579_v2 = vmul.f32 %v3970_v12, %v565_v17 }
 0x2ca   : > { %602 = vst [vmem:[#allocation2 + $0x10] sm:$0xff] %v594_v15  ;;  %v588_v19 = vmul.f32 %v583_v54, %v578_v16  ;;  %749 = vxpose.xlu0.b32.cont [2/5] (short) %v594_v15, 128  ;;  %v3760_v27 = vpack.c.bf16 %v594_v15, %v592_v62 }
 0x2cb   : > { %603 = vst [vmem:[#allocation2 + $0x18] sm:$0xff] %v595_v18  ;;  %v589_v20 = vmul.f32 %v583_v54, %v579_v2  ;;  %v569_v21 = vpop.f32.mrb[14].mxu1  ;;  %v3758_v22 = vpack.c.bf16 %v595_v18, %v593_v7  ;;  %781 = vxpose.xlu1.b32.cont [2/5] (short) %v595_v18, 128 }
 0x2cc   : > { %v596_v23 = vadd.f32 %v588_v19, %v4561_v9  ;;  %v580_v25 = vmul.f32 %v3972_v0, %v569_v21  ;;  %v571_v26 = vpop.f32.mrb[15].mxu1 }
 0x2cd   : > { %v597_v4 = vadd.f32 %v589_v20, %v4552_v5  ;;  %v581_v28 = vmul.f32 %v3972_v0, %v571_v26  ;;  %3759 = vmatprep.subr.bf16.mxu1 %v3758_v22  ;;  %v624_v5 = vld [vmem:[#allocation2 + $0x48] sm:$0x1] }
 0x2ce   : > { %604 = vst [vmem:[#allocation2 + $0x20] sm:$0xff] %v596_v23  ;;  %v590_v1 = vmul.f32 %v583_v54, %v580_v25  ;;  %3761 = vmatpush1.bf16.msra.mxu1 %v3760_v27  ;;  %750 = vxpose.xlu0.b32.cont [3/5] (short) %v596_v23, 128 }
 0x2cf   : > { %605 = vst [vmem:[#allocation2 + $0x28] sm:$0xff] %v597_v4  ;;  %v591_v29 = vmul.f32 %v583_v54, %v581_v28  ;;  %782 = vxpose.xlu1.b32.cont [3/5] (short) %v597_v4, 128  ;;  %v1460_v28 = vld [vmem:[#allocation8 + $0x8] sm:$0xff] }
 0x2d0   : > { %v598_v30 = vadd.f32 %v590_v1, %v4563_v10  ;;  %v627_v10 = vld [vmem:[#allocation4 + $0x10] sm:$0xff]  ;;  %v1461_v1 = vld [vmem:[#allocation8 + $0x10] sm:$0xff] }
 0x2d1   : > { %v599_v31 = vadd.f32 %v591_v29, %v4554_v6  ;;  %v626_v6 = vld [vmem:[#allocation4 + $0x8] sm:$0xff]  ;;  %v1462_v29 = vld [vmem:[#allocation8 + $0x18] sm:$0xff] }
 0x2d2   : > { %606 = vst [vmem:[#allocation2 + $0x30] sm:$0xff] %v598_v30  ;;  %751 = vxpose.xlu0.b32.cont [4/5] (short) %v598_v30, 128  ;;  %v3764_v32 = vpack.c.bf16 %v598_v30, %v596_v23  ;;  %v1463_v30 = vld [vmem:[#allocation8 + $0x20] sm:$0x1] }
 0x2d3   : > { %607 = vst [vmem:[#allocation2 + $0x38] sm:$0xff] %v599_v31  ;;  %783 = vxpose.xlu1.b32.cont [4/5] (short) %v599_v31, 128  ;;  %v3762_v9 = vpack.c.bf16 %v599_v31, %v597_v4  ;;  %v1459_v4 = vld [vmem:[#allocation8] sm:$0xff] }
 0x2d5   : > { %3763 = vmatprep.subr.bf16.mxu1 %v3762_v9 }
 0x2d6   : > { %3765 = vmatpush1.bf16.msra.mxu1 %v3764_v32  ;;  %752 = vxpose.xlu0.b32.end [5/5] (short) %v623_v33, 128 }
 0x2d7   : > { %3661 = vmatprep.subr.msk.mxu1 %vm646_vm2, %v624_v5  ;;  %784 = vxpose.xlu1.b32.end [5/5] (short) %v624_v5, 128 }
 0x2da   : > { %3662 = vmatpush1.msk.msra.mxu1 %vm646_vm2, %v623_v33 }
 0x2db   : > { %3663 = vmatmul.mubr.msk.f32.vlgmr.msra.gmra.mrb[16].mxu1 %vm630_vm3, %v625_v34  ;;  %3775 = vmatprep.subr.bf16.mxu1 %v3758_v22 }
 0x2dc   : > { %3777 = vmatpush1.bf16.msra.mxu1 %v3760_v27  ;;  %723 = vmatprep.mubr.f32.mxu1 %v4326_v24 }
 0x2dd   : > { %3779 = vmatprep.subr.bf16.mxu1 %v3762_v9 }
 0x2df   : > { %3664 = vmatmul.mubr.msk.f32.gmra.mrb[18].mxu1 %vm630_vm3, %v626_v6 }
 0x2e0   : > { %3781 = vmatpush1.bf16.msra.mxu1 %v3764_v32  ;;  %729 = vmatprep.mubr.f32.mxu1 %v4326_v24 }
 0x2e1   : > { %3702 = vmatprep.subr.msk.mxu1 %vm646_vm2, %v624_v5 }
 0x2e3   : > { %3665 = vmatmul.mubr.msk.f32.gmra.mrb[20].mxu1 %vm630_vm3, %v627_v10 }
 0x2e4   : > { %735 = vmatprep.mubr.f32.mxu1 %v4326_v24  ;;  %3703 = vmatpush1.msk.msra.mxu1 %vm646_vm2, %v623_v33 }
 0x2e7   : > { %3666 = vmatmul.mubr.msk.f32.gmra.mrb[22].mxu1 %vm630_vm3, %v628_v35 }
 0x2e8   : > { %741 = vmatprep.mubr.f32.mxu1 %v4326_v24 }
 0x2eb   : > { %3667 = vmatmul.mubr.msk.f32.gmra.mrb[24].mxu1 %vm630_vm3, %v629_v36 }
 0x2ec   : > { %1543 = vmatprep.mubr.f32.mxu1 %v4326_v24 }
 0x2ef   : > { %3704 = vmatmul.mubr.msk.f32.vlgmr.msra.gmra.mrb[26].mxu1 %vm630_vm3, %v1459_v4 }
 0x2f0   : > { %1549 = vmatprep.mubr.f32.mxu1 %v4326_v24 }
 0x2f3   : > { %3705 = vmatmul.mubr.msk.f32.gmra.mrb[28].mxu1 %vm630_vm3, %v1460_v28 }
 0x2f4   : > { %1555 = vmatprep.mubr.f32.mxu1 %v4326_v24 }
 0x2f7   : > { %3706 = vmatmul.mubr.msk.f32.gmra.mrb[30].mxu1 %vm630_vm3, %v1461_v1 }
 0x2f8   : > { %1561 = vmatprep.mubr.f32.mxu1 %v4326_v24 }
 0x2fb   : > { %3707 = vmatmul.mubr.msk.f32.gmra.mrb[32].mxu1 %vm630_vm3, %v1462_v29 }
 0x2fc   : > { %1567 = vmatprep.mubr.f32.mxu1 %v4326_v24 }
 0x2ff   : > { %3708 = vmatmul.mubr.msk.f32.gmra.mrb[34].mxu1 %vm630_vm3, %v1463_v30 }
 0x300   : > { %1841 = vmatprep.mubr.f32.mxu1 %v4326_v24 }
 0x346   : > { %v764_v37 = vpop.trf.xlu0 }
 0x347   : > { %v796_v3 = vpop.trf.xlu1 }
 0x34a   : > { %v765_v38 = vpop.trf.xlu0 }
 0x34b   : > { %v797_v8 = vpop.trf.xlu1 }
 0x34e   : > { %v766_v41 = vpop.trf.xlu0 }
 0x34f   : > { %v798_v12 = vpop.trf.xlu1 }
 0x352   : > { %v767_v48 = vpop.trf.xlu0 }
 0x353   : > { %v799_v14 = vpop.trf.xlu1 }
 0x356   : > { %v768_v54 = vpop.trf.xlu0 }
 0x357   : > { %v800_v16 = vpop.trf.xlu1 }
 0x35a   : > { %v769_v58 = vpop.trf.xlu0 }
 0x35b   : > { %v801_v18 = vpop.trf.xlu1 }
 0x35e   : > { %v770_v59 = vpop.trf.xlu0 }
 0x35f   : > { %v802_v2 = vpop.trf.xlu1 }
 0x362   : > { %v771_v60 = vpop.trf.xlu0 }
 0x363   : > { %v803_v19 = vpop.trf.xlu1 }
 0x366   : > { %v772_v61 = vpop.trf.xlu0 }
 0x367   : > { %v804_v0 = vpop.trf.xlu1 }
 0x36a   : > { %v773_v62 = vpop.trf.xlu0 }
 0x36b   : > { %v805_v20 = vpop.trf.xlu1 }
 0x36e   : > { %v774_v63 = vpop.trf.xlu0 }
 0x36f   : > { %v806_v21 = vpop.trf.xlu1 }
 0x372   : > { %v775_v7 = vpop.trf.xlu0 }
 0x373   : > { %v807_v22 = vpop.trf.xlu1 }
 0x376   : > { %v776_v11 = vpop.trf.xlu0 }
 0x377   : > { %v808_v23 = vpop.trf.xlu1 }
 0x37a   : > { %v777_v13 = vpop.trf.xlu0 }
 0x37b   : > { %v809_v25 = vpop.trf.xlu1 }
 0x37e   : > { %v778_v15 = vpop.trf.xlu0 }
 0x37f   : > { %v810_v26 = vpop.trf.xlu1 }
 0x382   : > { %v779_v17 = vpop.trf.xlu0 }
 0x383   : > { %v811_v27 = vpop.trf.xlu1 }
 0x3ae   : > { %v719_v39 = vpop.f32.mrb[16].mxu1 }
 0x3af   : > { %v721_v40 = vpop.f32.mrb[17].mxu1 }
 0x3b2   : > { %v725_v42 = vpop.f32.mrb[18].mxu1 }
 0x3b3   : > { %v3768_v43 = vpack.c.bf16 %v725_v42, %v719_v39  ;;  %v727_v44 = vpop.f32.mrb[19].mxu1 }
 0x3b4   : > { %v3766_v47 = vpack.c.bf16 %v727_v44, %v721_v40 }
 0x3b6   : > { %v731_v49 = vpop.f32.mrb[20].mxu1  ;;  %3767 = vmatprep.subr.bf16.mxu0 %v3766_v47 }
 0x3b7   : > { %v733_v50 = vpop.f32.mrb[21].mxu1  ;;  %3769 = vmatpush1.bf16.msra.mxu0 %v3768_v43 }
 0x3ba   : > { %v737_v51 = vpop.f32.mrb[22].mxu1 }
 0x3bb   : > { %v3772_v52 = vpack.c.bf16 %v737_v51, %v731_v49  ;;  %v739_v53 = vpop.f32.mrb[23].mxu1 }
 0x3bc   : > { %v3770_v55 = vpack.c.bf16 %v739_v53, %v733_v50 }
 0x3be   : > { %3771 = vmatprep.subr.bf16.mxu0 %v3770_v55  ;;  %v743_v56 = vpop.f32.mrb[24].mxu1 }
 0x3bf   : > { %3773 = vmatpush1.bf16.msra.mxu0 %v3772_v52  ;;  %v745_v57 = vpop.f32.mrb[25].mxu1 }
 0x3c0   : > { %3668 = vmatprep.subr.msk.mxu0 %vm646_vm2, %v745_v57 }
 0x3c3   : > { %3669 = vmatpush1.msk.msra.mxu0 %vm646_vm2, %v743_v56 }
 0x3c4   : > { %3670 = vmatmul.mubr.msk.f32.vlgmr.msra.gmra.mrb[0].mxu0 %vm630_vm3, %v764_v37 }
 0x3c5   : > { %984 = vmatprep.mubr.f32.mxu0 %v4326_v24 }
 0x3c8   : > { %3671 = vmatmul.mubr.msk.f32.gmra.mrb[2].mxu0 %vm630_vm3, %v765_v38 }
 0x3c9   : > { %990 = vmatprep.mubr.f32.mxu0 %v4326_v24 }
 0x3cc   : > { %3672 = vmatmul.mubr.msk.f32.gmra.mrb[4].mxu0 %vm630_vm3, %v766_v41 }
 0x3cd   : > { %996 = vmatprep.mubr.f32.mxu0 %v4326_v24 }
 0x3d0   : > { %3673 = vmatmul.mubr.msk.f32.gmra.mrb[6].mxu0 %vm630_vm3, %v767_v48 }
 0x3d1   : > { %1002 = vmatprep.mubr.f32.mxu0 %v4326_v24 }
 0x3d4   : > { %3674 = vmatmul.mubr.msk.f32.gmra.mrb[8].mxu0 %vm630_vm3, %v768_v54 }
 0x3d5   : > { %1008 = vmatprep.mubr.f32.mxu0 %v4326_v24 }
 0x3d8   : > { %3675 = vmatmul.mubr.msk.f32.gmra.mrb[10].mxu0 %vm630_vm3, %v769_v58 }
 0x3d9   : > { %1014 = vmatprep.mubr.f32.mxu0 %v4326_v24 }
 0x3dc   : > { %3676 = vmatmul.mubr.msk.f32.gmra.mrb[12].mxu0 %vm630_vm3, %v770_v59 }
 0x3dd   : > { %1020 = vmatprep.mubr.f32.mxu0 %v4326_v24 }
 0x3e0   : > { %3677 = vmatmul.mubr.msk.f32.gmra.mrb[14].mxu0 %vm630_vm3, %v771_v60 }
 0x3e1   : > { %1026 = vmatprep.mubr.f32.mxu0 %v4326_v24 }
 0x3e4   : > { %3678 = vmatmul.mubr.msk.f32.gmra.mrb[16].mxu0 %vm630_vm3, %v772_v61 }
 0x3e5   : > { %1032 = vmatprep.mubr.f32.mxu0 %v4326_v24 }
 0x3e8   : > { %3679 = vmatmul.mubr.msk.f32.gmra.mrb[18].mxu0 %vm630_vm3, %v773_v62 }
 0x3e9   : > { %1038 = vmatprep.mubr.f32.mxu0 %v4326_v24 }
 0x3ec   : > { %3680 = vmatmul.mubr.msk.f32.gmra.mrb[20].mxu0 %vm630_vm3, %v774_v63 }
 0x3ed   : > { %1044 = vmatprep.mubr.f32.mxu0 %v4326_v24 }
 0x3f0   : > { %3681 = vmatmul.mubr.msk.f32.gmra.mrb[22].mxu0 %vm630_vm3, %v775_v7 }
 0x3f1   : > { %1050 = vmatprep.mubr.f32.mxu0 %v4326_v24 }
 0x3f4   : > { %3682 = vmatmul.mubr.msk.f32.gmra.mrb[24].mxu0 %vm630_vm3, %v776_v11 }
 0x3f5   : > { %1056 = vmatprep.mubr.f32.mxu0 %v4326_v24 }
 0x3f8   : > { %3683 = vmatmul.mubr.msk.f32.gmra.mrb[26].mxu0 %vm630_vm3, %v777_v13 }
 0x3f9   : > { %1062 = vmatprep.mubr.f32.mxu0 %v4326_v24 }
 0x3fc   : > { %3684 = vmatmul.mubr.msk.f32.gmra.mrb[28].mxu0 %vm630_vm3, %v778_v15 }
 0x3fd   : > { %1068 = vmatprep.mubr.f32.mxu0 %v4326_v24 }
 0x400   : > { %3685 = vmatmul.mubr.msk.f32.gmra.mrb[30].mxu0 %vm630_vm3, %v779_v17 }
 0x401   : > { %1074 = vmatprep.mubr.f32.mxu0 %v4326_v24 }
 0x404   : > { %3686 = vmatmul.mubr.msk.f32.gmra.mrb[32].mxu0 %vm630_vm3, %v796_v3 }
 0x405   : > { %1080 = vmatprep.mubr.f32.mxu0 %v4326_v24 }
 0x408   : > { %3687 = vmatmul.mubr.msk.f32.gmra.mrb[34].mxu0 %vm630_vm3, %v797_v8 }
 0x409   : > { %1086 = vmatprep.mubr.f32.mxu0 %v4326_v24 }
 0x40c   : > { %3688 = vmatmul.mubr.msk.f32.gmra.mrb[36].mxu0 %vm630_vm3, %v798_v12 }
 0x40d   : > { %1092 = vmatprep.mubr.f32.mxu0 %v4326_v24 }
 0x410   : > { %3689 = vmatmul.mubr.msk.f32.gmra.mrb[38].mxu0 %vm630_vm3, %v799_v14 }
 0x411   : > { %1098 = vmatprep.mubr.f32.mxu0 %v4326_v24 }
 0x414   : > { %3690 = vmatmul.mubr.msk.f32.gmra.mrb[40].mxu0 %vm630_vm3, %v800_v16 }
 0x415   : > { %1104 = vmatprep.mubr.f32.mxu0 %v4326_v24 }
 0x418   : > { %3691 = vmatmul.mubr.msk.f32.gmra.mrb[42].mxu0 %vm630_vm3, %v801_v18 }
 0x419   : > { %1110 = vmatprep.mubr.f32.mxu0 %v4326_v24 }
 0x41c   : > { %3692 = vmatmul.mubr.msk.f32.gmra.mrb[44].mxu0 %vm630_vm3, %v802_v2 }
 0x41d   : > { %1116 = vmatprep.mubr.f32.mxu0 %v4326_v24 }
 0x420   : > { %3693 = vmatmul.mubr.msk.f32.gmra.mrb[46].mxu0 %vm630_vm3, %v803_v19 }
 0x421   : > { %1122 = vmatprep.mubr.f32.mxu0 %v4326_v24 }
 0x424   : > { %3694 = vmatmul.mubr.msk.f32.gmra.mrb[48].mxu0 %vm630_vm3, %v804_v0 }
 0x425   : > { %1128 = vmatprep.mubr.f32.mxu0 %v4326_v24 }
 0x428   : > { %3695 = vmatmul.mubr.msk.f32.gmra.mrb[50].mxu0 %vm630_vm3, %v805_v20 }
 0x429   : > { %1134 = vmatprep.mubr.f32.mxu0 %v4326_v24 }
 0x42c   : > { %3696 = vmatmul.mubr.msk.f32.gmra.mrb[52].mxu0 %vm630_vm3, %v806_v21 }
 0x42d   : > { %1140 = vmatprep.mubr.f32.mxu0 %v4326_v24 }
 0x430   : > { %3697 = vmatmul.mubr.msk.f32.gmra.mrb[54].mxu0 %vm630_vm3, %v807_v22 }
 0x431   : > { %1146 = vmatprep.mubr.f32.mxu0 %v4326_v24 }
 0x434   : > { %3698 = vmatmul.mubr.msk.f32.gmra.mrb[56].mxu0 %vm630_vm3, %v808_v23 }
 0x435   : > { %1152 = vmatprep.mubr.f32.mxu0 %v4326_v24 }
 0x438   : > { %3699 = vmatmul.mubr.msk.f32.gmra.mrb[58].mxu0 %vm630_vm3, %v809_v25 }
 0x439   : > { %1158 = vmatprep.mubr.f32.mxu0 %v4326_v24 }
 0x43c   : > { %3700 = vmatmul.mubr.msk.f32.gmra.mrb[60].mxu0 %vm630_vm3, %v810_v26 }
 0x43d   : > { %1164 = vmatprep.mubr.f32.mxu0 %v4326_v24 }
 0x440   : > { %3701 = vmatmul.mubr.msk.f32.gmra.mrb[62].mxu0 %vm630_vm3, %v811_v27 }
 0x497   : > { %v4713_v31 = vpop.f32.mrb[0].mxu0 }
 0x498   : > { %v4715_v9 = vpop.f32.mrb[1].mxu0 }
 0x499   : > { %v1171_v32 = vmax.f32 %v4713_v31, %v4715_v9 }
 0x49b   : > { %1172 = vmax.xlane.f32.xlu0 %v1171_v32  ;;  %v4719_v5 = vpop.f32.mrb[2].mxu0 }
 0x49c   : > { %v4721_v33 = vpop.f32.mrb[3].mxu0 }
 0x49d   : > { %v1174_v34 = vmax.f32 %v4719_v5, %v4721_v33 }
 0x49f   : > { %1175 = vmax.xlane.f32.xlu1 %v1174_v34  ;;  %v4725_v6 = vpop.f32.mrb[4].mxu0 }
 0x4a0   : > { %v4727_v10 = vpop.f32.mrb[5].mxu0 }
 0x4a1   : > { %v1177_v24 = vmax.f32 %v4725_v6, %v4727_v10 }
 0x4a3   : > { %1178 = vmax.xlane.f32.xlu0 %v1177_v24  ;;  %v4731_v35 = vpop.f32.mrb[6].mxu0 }
 0x4a4   : > { %v4733_v36 = vpop.f32.mrb[7].mxu0 }
 0x4a5   : > { %v1180_v37 = vmax.f32 %v4731_v35, %v4733_v36 }
 0x4a7   : > { %1181 = vmax.xlane.f32.xlu1 %v1180_v37  ;;  %v4737_v38 = vpop.f32.mrb[8].mxu0 }
 0x4a8   : > { %v4739_v39 = vpop.f32.mrb[9].mxu0 }
 0x4a9   : > { %v1183_v40 = vmax.f32 %v4737_v38, %v4739_v39 }
 0x4ab   : > { %1184 = vmax.xlane.f32.xlu0 %v1183_v40  ;;  %v4743_v41 = vpop.f32.mrb[10].mxu0 }
 0x4ac   : > { %v4745_v42 = vpop.f32.mrb[11].mxu0 }
 0x4ad   : > { %v1186_v43 = vmax.f32 %v4743_v41, %v4745_v42 }
 0x4af   : > { %1187 = vmax.xlane.f32.xlu1 %v1186_v43  ;;  %v4749_v44 = vpop.f32.mrb[12].mxu0 }
 0x4b0   : > { %v4751_v47 = vpop.f32.mrb[13].mxu0 }
 0x4b1   : > { %v1189_v48 = vmax.f32 %v4749_v44, %v4751_v47 }
 0x4b3   : > { %1190 = vmax.xlane.f32.xlu0 %v1189_v48  ;;  %v4755_v49 = vpop.f32.mrb[14].mxu0 }
 0x4b4   : > { %v4757_v50 = vpop.f32.mrb[15].mxu0 }
 0x4b5   : > { %v1192_v51 = vmax.f32 %v4755_v49, %v4757_v50 }
 0x4b7   : > { %1193 = vmax.xlane.f32.xlu1 %v1192_v51  ;;  %v4761_v52 = vpop.f32.mrb[16].mxu0 }
 0x4b8   : > { %v4763_v53 = vpop.f32.mrb[17].mxu0 }
 0x4b9   : > { %v1195_v54 = vmax.f32 %v4761_v52, %v4763_v53 }
 0x4bb   : > { %1196 = vmax.xlane.f32.xlu0 %v1195_v54  ;;  %v4767_v55 = vpop.f32.mrb[18].mxu0 }
 0x4bc   : > { %v4769_v56 = vpop.f32.mrb[19].mxu0 }
 0x4bd   : > { %v1198_v57 = vmax.f32 %v4767_v55, %v4769_v56 }
 0x4bf   : > { %1199 = vmax.xlane.f32.xlu1 %v1198_v57  ;;  %v4773_v58 = vpop.f32.mrb[20].mxu0 }
 0x4c0   : > { %v4775_v59 = vpop.f32.mrb[21].mxu0 }
 0x4c1   : > { %v1201_v60 = vmax.f32 %v4773_v58, %v4775_v59 }
 0x4c3   : > { %1202 = vmax.xlane.f32.xlu0 %v1201_v60  ;;  %v4779_v61 = vpop.f32.mrb[22].mxu0 }
 0x4c4   : > { %v4781_v62 = vpop.f32.mrb[23].mxu0 }
 0x4c5   : > { %v1204_v63 = vmax.f32 %v4779_v61, %v4781_v62 }
 0x4c7   : > { %1205 = vmax.xlane.f32.xlu1 %v1204_v63  ;;  %v4785_v3 = vpop.f32.mrb[24].mxu0 }
 0x4c8   : > { %v4787_v7 = vpop.f32.mrb[25].mxu0 }
 0x4c9   : > { %v1207_v8 = vmax.f32 %v4785_v3, %v4787_v7 }
 0x4cb   : > { %1208 = vmax.xlane.f32.xlu0 %v1207_v8  ;;  %v4791_v11 = vpop.f32.mrb[26].mxu0 }
 0x4cc   : > { %v4793_v12 = vpop.f32.mrb[27].mxu0 }
 0x4cd   : > { %v1210_v13 = vmax.f32 %v4791_v11, %v4793_v12 }
 0x4cf   : > { %1211 = vmax.xlane.f32.xlu1 %v1210_v13  ;;  %v4797_v14 = vpop.f32.mrb[28].mxu0 }
 0x4d0   : > { %v4799_v15 = vpop.f32.mrb[29].mxu0 }
 0x4d1   : > { %v1213_v16 = vmax.f32 %v4797_v14, %v4799_v15 }
 0x4d3   : > { %1214 = vmax.xlane.f32.xlu0 %v1213_v16  ;;  %v4803_v17 = vpop.f32.mrb[30].mxu0 }
 0x4d4   : > { %v4805_v18 = vpop.f32.mrb[31].mxu0 }
 0x4d5   : > { %v1216_v2 = vmax.f32 %v4803_v17, %v4805_v18 }
 0x4d7   : > { %1217 = vmax.xlane.f32.xlu1 %v1216_v2  ;;  %v4809_v19 = vpop.f32.mrb[32].mxu0 }
 0x4d8   : > { %v4811_v0 = vpop.f32.mrb[33].mxu0 }
 0x4d9   : > { %v1219_v20 = vmax.f32 %v4809_v19, %v4811_v0 }
 0x4db   : > { %1220 = vmax.xlane.f32.xlu0 %v1219_v20  ;;  %v4815_v21 = vpop.f32.mrb[34].mxu0 }
 0x4dc   : > { %v4817_v22 = vpop.f32.mrb[35].mxu0 }
 0x4dd   : > { %v1222_v23 = vmax.f32 %v4815_v21, %v4817_v22 }
 0x4df   : > { %1223 = vmax.xlane.f32.xlu1 %v1222_v23  ;;  %v4821_v25 = vpop.f32.mrb[36].mxu0 }
 0x4e0   : > { %v4823_v26 = vpop.f32.mrb[37].mxu0 }
 0x4e1   : > { %v1225_v27 = vmax.f32 %v4821_v25, %v4823_v26 }
 0x4e3   : > { %1226 = vmax.xlane.f32.xlu0 %v1225_v27  ;;  %v4827_v4 = vpop.f32.mrb[38].mxu0 }
 0x4e4   : > { %v4829_v28 = vpop.f32.mrb[39].mxu0 }
 0x4e5   : > { %v1228_v1 = vmax.f32 %v4827_v4, %v4829_v28 }
 0x4e7   : > { %1229 = vmax.xlane.f32.xlu1 %v1228_v1  ;;  %v4833_v29 = vpop.f32.mrb[40].mxu0 }
 0x4e8   : > { %v4835_v30 = vpop.f32.mrb[41].mxu0 }
 0x4e9   : > { %v1231_v32 = vmax.f32 %v4833_v29, %v4835_v30 }
 0x4eb   : > { %1232 = vmax.xlane.f32.xlu0 %v1231_v32  ;;  %v4839_v34 = vpop.f32.mrb[42].mxu0 }
 0x4ec   : > { %v4841_v24 = vpop.f32.mrb[43].mxu0 }
 0x4ed   : > { %v1234_v37 = vmax.f32 %v4839_v34, %v4841_v24 }
 0x4ef   : > { %1235 = vmax.xlane.f32.xlu1 %v1234_v37  ;;  %v4845_v40 = vpop.f32.mrb[44].mxu0 }
 0x4f0   : > { %v4847_v43 = vpop.f32.mrb[45].mxu0 }
 0x4f1   : > { %v1237_v48 = vmax.f32 %v4845_v40, %v4847_v43 }
 0x4f3   : > { %1238 = vmax.xlane.f32.xlu0 %v1237_v48  ;;  %v4851_v51 = vpop.f32.mrb[46].mxu0 }
 0x4f4   : > { %v4853_v54 = vpop.f32.mrb[47].mxu0 }
 0x4f5   : > { %v1240_v57 = vmax.f32 %v4851_v51, %v4853_v54 }
 0x4f7   : > { %1241 = vmax.xlane.f32.xlu1 %v1240_v57  ;;  %v4857_v60 = vpop.f32.mrb[48].mxu0 }
 0x4f8   : > { %v4859_v63 = vpop.f32.mrb[49].mxu0 }
 0x4f9   : > { %v1243_v8 = vmax.f32 %v4857_v60, %v4859_v63 }
 0x4fb   : > { %1244 = vmax.xlane.f32.xlu0 %v1243_v8  ;;  %v4863_v13 = vpop.f32.mrb[50].mxu0 }
 0x4fc   : > { %5975 = vst [vmem:[#allocation23_spill] sm:$0xff] %v4863_v13  ;;  %v4865_v16 = vpop.f32.mrb[51].mxu0 }
 0x4fd   : > { %5976 = vst [vmem:[#allocation24_spill] sm:$0xff] %v4865_v16  ;;  %v1246_v2 = vmax.f32 %v4863_v13, %v4865_v16 }
 0x4ff   : > { %1247 = vmax.xlane.f32.xlu1 %v1246_v2  ;;  %v4869_v20 = vpop.f32.mrb[52].mxu0 }
 0x500   : > { %5977 = vst [vmem:[#allocation25_spill] sm:$0xff] %v4869_v20  ;;  %v4871_v23 = vpop.f32.mrb[53].mxu0 }
 0x501   : > { %5978 = vst [vmem:[#allocation26_spill] sm:$0xff] %v4871_v23  ;;  %v1249_v27 = vmax.f32 %v4869_v20, %v4871_v23 }
 0x503   : > { %1250 = vmax.xlane.f32.xlu0 %v1249_v27  ;;  %v4875_v1 = vpop.f32.mrb[54].mxu0 }
 0x504   : > { %5979 = vst [vmem:[#allocation27_spill] sm:$0xff] %v4875_v1  ;;  %v4877_v32 = vpop.f32.mrb[55].mxu0 }
 0x505   : > { %5980 = vst [vmem:[#allocation28_spill] sm:$0xff] %v4877_v32  ;;  %v1252_v37 = vmax.f32 %v4875_v1, %v4877_v32 }
 0x507   : > { %1253 = vmax.xlane.f32.xlu1 %v1252_v37  ;;  %v4881_v48 = vpop.f32.mrb[56].mxu0 }
 0x508   : > { %5981 = vst [vmem:[#allocation29_spill] sm:$0xff] %v4881_v48  ;;  %v4883_v57 = vpop.f32.mrb[57].mxu0 }
 0x509   : > { %5982 = vst [vmem:[#allocation30_spill] sm:$0xff] %v4883_v57  ;;  %v1255_v8 = vmax.f32 %v4881_v48, %v4883_v57 }
 0x50b   : > { %1256 = vmax.xlane.f32.xlu0 %v1255_v8  ;;  %v4887_v2 = vpop.f32.mrb[58].mxu0 }
 0x50c   : > { %5983 = vst [vmem:[#allocation31_spill] sm:$0xff] %v4887_v2  ;;  %v4889_v45 = vpop.f32.mrb[59].mxu0 }
 0x50d   : > { %5984 = vst [vmem:[#allocation32_spill] sm:$0xff] %v4889_v45  ;;  %v1258_v27 = vmax.f32 %v4887_v2, %v4889_v45 }
 0x50f   : > { %1259 = vmax.xlane.f32.xlu1 %v1258_v27  ;;  %v4893_v46 = vpop.f32.mrb[60].mxu0 }
 0x510   : > { %5985 = vst [vmem:[#allocation33_spill] sm:$0xff] %v4893_v46  ;;  %v4895_v32 = vpop.f32.mrb[61].mxu0 }
 0x511   : > { %5986 = vst [vmem:[#allocation34_spill] sm:$0xff] %v4895_v32  ;;  %v1261_v37 = vmax.f32 %v4893_v46, %v4895_v32 }
 0x513   : > { %1262 = vmax.xlane.f32.xlu0 %v1261_v37  ;;  %v4899_v1 = vpop.f32.mrb[62].mxu0 }
 0x514   : > { %v4901_v57 = vpop.f32.mrb[63].mxu0 }
 0x515   : > { %5987 = vst [vmem:[#allocation35_spill] sm:$0xff] %v4901_v57  ;;  %v1264_v8 = vmax.f32 %v4899_v1, %v4901_v57 }
 0x517   : > { %1265 = vmax.xlane.f32.xlu1 %v1264_v8 }
 0x528   : > { %v1173_v48 = vpop.xlane.xlu0 %1172 }
 0x529   : > { %v1267_v45 = vsub.f32 %v4713_v31, %v1173_v48  ;;  %v1268_v27 = vsub.f32 %v4715_v9, %v1173_v48 }
 0x52b   : > { %v1331_v2 = vmul.f32 1.442695, %v1267_v45  ;;  %v1333_v23 = vmul.f32 1.442695, %v1268_v27 }
 0x52c   : > { %v1176_v20 = vpop.xlane.xlu1 %1175 }
 0x52d   : > { %v1269_v16 = vsub.f32 %v4719_v5, %v1176_v20  ;;  %v1270_v37 = vsub.f32 %v4721_v33, %v1176_v20  ;;  %3973 = vpow2.f32 %v1331_v2 }
 0x52e   : > { %3975 = vpow2.f32 %v1333_v23  ;;  %v4913_v23 = vpop.f32.mrb[26].mxu1 }
 0x52f   : > { %v1335_v32 = vmul.f32 1.442695, %v1269_v16  ;;  %v1337_v46 = vmul.f32 1.442695, %v1270_v37 }
 0x530   : > { %v1179_v13 = vpop.xlane.xlu0 %1178 }
 0x531   : > { %3977 = vpow2.f32 %v1335_v32  ;;  %v1271_v8 = vsub.f32 %v4725_v6, %v1179_v13  ;;  %v1272_v57 = vsub.f32 %v4727_v10, %v1179_v13  ;;  %v1547_v10 = vpop.f32.mrb[27].mxu1 }
 0x532   : > { %3979 = vpow2.f32 %v1337_v46  ;;  %1638 = vmatprep.mubr.f32.mxu0 %v1547_v10 }
 0x533   : > { %v1339_v31 = vmul.f32 1.442695, %v1271_v8  ;;  %v1341_v9 = vmul.f32 1.442695, %v1272_v57  ;;  %v4917_v8 = vpop.f32.mrb[28].mxu1 }
 0x534   : > { %v1182_v45 = vpop.xlane.xlu1 %1181 }
 0x535   : > { %v1273_v48 = vsub.f32 %v4731_v35, %v1182_v45  ;;  %v1274_v5 = vsub.f32 %v4733_v36, %v1182_v45  ;;  %3981 = vpow2.f32 %v1339_v31 }
 0x536   : > { %3983 = vpow2.f32 %v1341_v9 }
 0x537   : > { %v1343_v33 = vmul.f32 1.442695, %v1273_v48  ;;  %v1345_v20 = vmul.f32 1.442695, %v1274_v5  ;;  %v3974_v32 = vpop.eup %3973  ;;  %v4921_v48 = vpop.f32.mrb[29].mxu1 }
 0x538   : > { %v1185_v16 = vpop.xlane.xlu0 %1184  ;;  %v3976_v13 = vpop.eup %3975 }
 0x539   : > { %3985 = vpow2.f32 %v1343_v33  ;;  %v1275_v6 = vsub.f32 %v4737_v38, %v1185_v16  ;;  %v1276_v46 = vsub.f32 %v4739_v39, %v1185_v16  ;;  %v4923_v33 = vpop.f32.mrb[30].mxu1 }
 0x53a   : > { %3987 = vpow2.f32 %v1345_v20 }
 0x53b   : > { %v3978_v35 = vpop.eup %3977  ;;  %v1347_v57 = vmul.f32 1.442695, %v1275_v6  ;;  %v1349_v2 = vmul.f32 1.442695, %v1276_v46  ;;  %v4927_v46 = vpop.f32.mrb[31].mxu1 }
 0x53c   : > { %v3980_v36 = vpop.eup %3979  ;;  %v1188_v27 = vpop.xlane.xlu1 %1187  ;;  %v3784_v37 = vpack.c.bf16 %v3978_v35, %v3974_v32 }
 0x53d   : > { %v1277_v31 = vsub.f32 %v4743_v41, %v1188_v27  ;;  %v1278_v9 = vsub.f32 %v4745_v42, %v1188_v27  ;;  %v3782_v45 = vpack.c.bf16 %v3980_v36, %v3976_v13  ;;  %3989 = vpow2.f32 %v1347_v57  ;;  %v4929_v36 = vpop.f32.mrb[32].mxu1 }
 0x53e   : > { %3991 = vpow2.f32 %v1349_v2 }
 0x53f   : > { %v1351_v38 = vmul.f32 1.442695, %v1277_v31  ;;  %v1353_v39 = vmul.f32 1.442695, %v1278_v9  ;;  %3783 = vmatprep.subr.bf16.mxu0 %v3782_v45  ;;  %v3982_v20 = vpop.eup %3981  ;;  %v4933_v31 = vpop.f32.mrb[33].mxu1 }
 0x540   : > { %3785 = vmatpush1.bf16.xpose.msra.mxu0 %v3784_v37  ;;  %v1191_v5 = vpop.xlane.xlu0 %1190  ;;  %v3984_v32 = vpop.eup %3983 }
 0x541   : > { %3993 = vpow2.f32 %v1351_v38  ;;  %v1279_v16 = vsub.f32 %v4749_v44, %v1191_v5  ;;  %v1280_v41 = vsub.f32 %v4751_v47, %v1191_v5  ;;  %v4935_v45 = vpop.f32.mrb[34].mxu1 }
 0x542   : > { %3995 = vpow2.f32 %v1353_v39 }
 0x543   : > { %v3986_v42 = vpop.eup %3985  ;;  %v1355_v6 = vmul.f32 1.442695, %v1279_v16  ;;  %v1357_v13 = vmul.f32 1.442695, %v1280_v41  ;;  %v4939_v16 = vpop.f32.mrb[35].mxu1 }
 0x544   : > { %v3988_v10 = vpop.eup %3987  ;;  %v1194_v35 = vpop.xlane.xlu1 %1193  ;;  %v3788_v57 = vpack.c.bf16 %v3986_v42, %v3982_v20 }
 0x545   : > { %v1281_v2 = vsub.f32 %v4755_v49, %v1194_v35  ;;  %v1282_v27 = vsub.f32 %v4757_v50, %v1194_v35  ;;  %v3786_v37 = vpack.c.bf16 %v3988_v10, %v3984_v32  ;;  %3997 = vpow2.f32 %v1355_v6 }
 0x546   : > { %3999 = vpow2.f32 %v1357_v13 }
 0x547   : > { %v1359_v44 = vmul.f32 1.442695, %v1281_v2  ;;  %v1361_v47 = vmul.f32 1.442695, %v1282_v27  ;;  %3787 = vmatprep.subr.bf16.mxu0 %v3786_v37  ;;  %v3990_v38 = vpop.eup %3989 }
 0x548   : > { %3789 = vmatpush1.bf16.xpose.msra.mxu0 %v3788_v57  ;;  %v1197_v9 = vpop.xlane.xlu0 %1196  ;;  %v3992_v5 = vpop.eup %3991 }
 0x549   : > { %4001 = vpow2.f32 %v1359_v44  ;;  %v1283_v39 = vsub.f32 %v4761_v52, %v1197_v9  ;;  %v1284_v49 = vsub.f32 %v4763_v53, %v1197_v9 }
 0x54a   : > { %4003 = vpow2.f32 %v1361_v47 }
 0x54b   : > { %v3994_v50 = vpop.eup %3993  ;;  %v1363_v20 = vmul.f32 1.442695, %v1283_v39  ;;  %v1365_v32 = vmul.f32 1.442695, %v1284_v49 }
 0x54c   : > { %v3996_v41 = vpop.eup %3995  ;;  %v1200_v42 = vpop.xlane.xlu1 %1199  ;;  %v3792_v6 = vpack.c.bf16 %v3994_v50, %v3990_v38 }
 0x54d   : > { %v1285_v10 = vsub.f32 %v4767_v55, %v1200_v42  ;;  %v1286_v13 = vsub.f32 %v4769_v56, %v1200_v42  ;;  %v3790_v35 = vpack.c.bf16 %v3996_v41, %v3992_v5  ;;  %4005 = vpow2.f32 %v1363_v20 }
 0x54e   : > { %4007 = vpow2.f32 %v1365_v32 }
 0x54f   : > { %v1367_v57 = vmul.f32 1.442695, %v1285_v10  ;;  %v1369_v52 = vmul.f32 1.442695, %v1286_v13  ;;  %3791 = vmatprep.subr.bf16.mxu0 %v3790_v35  ;;  %v3998_v2 = vpop.eup %3997 }
 0x550   : > { %3793 = vmatpush1.bf16.xpose.msra.mxu0 %v3792_v6  ;;  %v1203_v53 = vpop.xlane.xlu0 %1202  ;;  %v4000_v44 = vpop.eup %3999 }
 0x551   : > { %4009 = vpow2.f32 %v1367_v57  ;;  %v1287_v27 = vsub.f32 %v4773_v58, %v1203_v53  ;;  %v1288_v37 = vsub.f32 %v4775_v59, %v1203_v53 }
 0x552   : > { %4011 = vpow2.f32 %v1369_v52 }
 0x553   : > { %v4002_v47 = vpop.eup %4001  ;;  %v1371_v55 = vmul.f32 1.442695, %v1287_v27  ;;  %v1373_v56 = vmul.f32 1.442695, %v1288_v37 }
 0x554   : > { %v4004_v9 = vpop.eup %4003  ;;  %v1206_v38 = vpop.xlane.xlu1 %1205  ;;  %v3796_v39 = vpack.c.bf16 %v4002_v47, %v3998_v2 }
 0x555   : > { %v1289_v49 = vsub.f32 %v4779_v61, %v1206_v38  ;;  %v1290_v5 = vsub.f32 %v4781_v62, %v1206_v38  ;;  %v3794_v50 = vpack.c.bf16 %v4004_v9, %v4000_v44  ;;  %4013 = vpow2.f32 %v1371_v55 }
 0x556   : > { %4015 = vpow2.f32 %v1373_v56 }
 0x557   : > { %v1375_v20 = vmul.f32 1.442695, %v1289_v49  ;;  %v1377_v41 = vmul.f32 1.442695, %v1290_v5  ;;  %3795 = vmatprep.subr.bf16.mxu0 %v3794_v50  ;;  %v4006_v59 = vpop.eup %4005 }
 0x558   : > { %3797 = vmatpush1.bf16.xpose.msra.mxu0 %v3796_v39  ;;  %v1209_v58 = vpop.xlane.xlu0 %1208  ;;  %v4008_v6 = vpop.eup %4007 }
 0x559   : > { %4017 = vpow2.f32 %v1375_v20  ;;  %v1291_v32 = vsub.f32 %v4785_v3, %v1209_v58  ;;  %v1292_v42 = vsub.f32 %v4787_v7, %v1209_v58 }
 0x55a   : > { %4019 = vpow2.f32 %v1377_v41 }
 0x55b   : > { %v4010_v10 = vpop.eup %4009  ;;  %v1379_v61 = vmul.f32 1.442695, %v1291_v32  ;;  %v1381_v62 = vmul.f32 1.442695, %v1292_v42 }
 0x55c   : > { %v4012_v13 = vpop.eup %4011  ;;  %v1212_v35 = vpop.xlane.xlu1 %1211  ;;  %v3800_v57 = vpack.c.bf16 %v4010_v10, %v4006_v59 }
 0x55d   : > { %v1293_v52 = vsub.f32 %v4791_v11, %v1212_v35  ;;  %v1294_v53 = vsub.f32 %v4793_v12, %v1212_v35  ;;  %v3798_v2 = vpack.c.bf16 %v4012_v13, %v4008_v6  ;;  %4021 = vpow2.f32 %v1379_v61 }
 0x55e   : > { %4023 = vpow2.f32 %v1381_v62 }
 0x55f   : > { %v1383_v27 = vmul.f32 1.442695, %v1293_v52  ;;  %v1385_v37 = vmul.f32 1.442695, %v1294_v53  ;;  %3799 = vmatprep.subr.bf16.mxu0 %v3798_v2  ;;  %v4014_v7 = vpop.eup %4013 }
 0x560   : > { %3801 = vmatpush1.bf16.xpose.msra.mxu0 %v3800_v57  ;;  %v1215_v3 = vpop.xlane.xlu0 %1214  ;;  %v4016_v55 = vpop.eup %4015 }
 0x561   : > { %4025 = vpow2.f32 %v1383_v27  ;;  %v1295_v44 = vsub.f32 %v4797_v14, %v1215_v3  ;;  %v1296_v47 = vsub.f32 %v4799_v15, %v1215_v3 }
 0x562   : > { %4027 = vpow2.f32 %v1385_v37 }
 0x563   : > { %v4018_v9 = vpop.eup %4017  ;;  %v1387_v11 = vmul.f32 1.442695, %v1295_v44  ;;  %v1389_v12 = vmul.f32 1.442695, %v1296_v47 }
 0x564   : > { %v4020_v56 = vpop.eup %4019  ;;  %v1218_v38 = vpop.xlane.xlu1 %1217  ;;  %v3804_v39 = vpack.c.bf16 %v4018_v9, %v4014_v7 }
 0x565   : > { %v1297_v49 = vsub.f32 %v4803_v17, %v1218_v38  ;;  %v1298_v5 = vsub.f32 %v4805_v18, %v1218_v38  ;;  %v3802_v50 = vpack.c.bf16 %v4020_v56, %v4016_v55  ;;  %4029 = vpow2.f32 %v1387_v11 }
 0x566   : > { %4031 = vpow2.f32 %v1389_v12 }
 0x567   : > { %v1391_v20 = vmul.f32 1.442695, %v1297_v49  ;;  %v1393_v41 = vmul.f32 1.442695, %v1298_v5  ;;  %3803 = vmatprep.subr.bf16.mxu0 %v3802_v50  ;;  %v4022_v15 = vpop.eup %4021 }
 0x568   : > { %3805 = vmatpush1.bf16.xpose.msra.mxu0 %v3804_v39  ;;  %v1221_v14 = vpop.xlane.xlu0 %1220  ;;  %v4024_v32 = vpop.eup %4023 }
 0x569   : > { %4033 = vpow2.f32 %v1391_v20  ;;  %v1299_v58 = vsub.f32 %v4809_v19, %v1221_v14  ;;  %v1300_v59 = vsub.f32 %v4811_v0, %v1221_v14 }
 0x56a   : > { %4035 = vpow2.f32 %v1393_v41 }
 0x56b   : > { %v4026_v42 = vpop.eup %4025  ;;  %v1395_v17 = vmul.f32 1.442695, %v1299_v58  ;;  %v1397_v18 = vmul.f32 1.442695, %v1300_v59 }
 0x56c   : > { %v4028_v6 = vpop.eup %4027  ;;  %v1224_v10 = vpop.xlane.xlu1 %1223  ;;  %v3808_v61 = vpack.c.bf16 %v4026_v42, %v4022_v15 }
 0x56d   : > { %v1301_v13 = vsub.f32 %v4815_v21, %v1224_v10  ;;  %v1302_v62 = vsub.f32 %v4817_v22, %v1224_v10  ;;  %v3806_v35 = vpack.c.bf16 %v4028_v6, %v4024_v32  ;;  %4037 = vpow2.f32 %v1395_v17 }
 0x56e   : > { %4039 = vpow2.f32 %v1397_v18 }
 0x56f   : > { %v1399_v57 = vmul.f32 1.442695, %v1301_v13  ;;  %v1401_v52 = vmul.f32 1.442695, %v1302_v62  ;;  %3807 = vmatprep.subr.bf16.mxu0 %v3806_v35  ;;  %v4030_v0 = vpop.eup %4029 }
 0x570   : > { %3809 = vmatpush1.bf16.xpose.msra.mxu0 %v3808_v61  ;;  %v1227_v19 = vpop.xlane.xlu0 %1226  ;;  %v4032_v27 = vpop.eup %4031 }
 0x571   : > { %4041 = vpow2.f32 %v1399_v57  ;;  %v1303_v53 = vsub.f32 %v4821_v25, %v1227_v19  ;;  %v1304_v2 = vsub.f32 %v4823_v26, %v1227_v19 }
 0x572   : > { %4043 = vpow2.f32 %v1401_v52 }
 0x573   : > { %v4034_v37 = vpop.eup %4033  ;;  %v1403_v21 = vmul.f32 1.442695, %v1303_v53  ;;  %v1405_v22 = vmul.f32 1.442695, %v1304_v2 }
 0x574   : > { %v4036_v3 = vpop.eup %4035  ;;  %v1230_v7 = vpop.xlane.xlu1 %1229  ;;  %v3812_v44 = vpack.c.bf16 %v4034_v37, %v4030_v0 }
 0x575   : > { %v1305_v47 = vsub.f32 %v4827_v4, %v1230_v7  ;;  %v1306_v55 = vsub.f32 %v4829_v28, %v1230_v7  ;;  %v3810_v9 = vpack.c.bf16 %v4036_v3, %v4032_v27  ;;  %4045 = vpow2.f32 %v1403_v21  ;;  %v5988_v3 = vld [vmem:[#allocation23_spill] sm:$0xff]  ;;  %v5989_v7 = vld [vmem:[#allocation24_spill] sm:$0xff] }
 0x576   : > { %4047 = vpow2.f32 %v1405_v22 }
 0x577   : > { %v1407_v11 = vmul.f32 1.442695, %v1305_v47  ;;  %v1409_v56 = vmul.f32 1.442695, %v1306_v55  ;;  %3811 = vmatprep.subr.bf16.mxu0 %v3810_v9  ;;  %v4038_v26 = vpop.eup %4037 }
 0x578   : > { %3813 = vmatpush1.bf16.xpose.msra.mxu0 %v3812_v44  ;;  %v1233_v25 = vpop.xlane.xlu0 %1232  ;;  %v4040_v39 = vpop.eup %4039 }
 0x579   : > { %4049 = vpow2.f32 %v1407_v11  ;;  %v1307_v12 = vsub.f32 %v4833_v29, %v1233_v25  ;;  %v1308_v38 = vsub.f32 %v4835_v30, %v1233_v25  ;;  %v5990_v11 = vld [vmem:[#allocation25_spill] sm:$0xff]  ;;  %v5991_v25 = vld [vmem:[#allocation26_spill] sm:$0xff] }
 0x57a   : > { %4051 = vpow2.f32 %v1409_v56 }
 0x57b   : > { %v4042_v49 = vpop.eup %4041  ;;  %v1411_v4 = vmul.f32 1.442695, %v1307_v12  ;;  %v1413_v28 = vmul.f32 1.442695, %v1308_v38 }
 0x57c   : > { %v4044_v5 = vpop.eup %4043  ;;  %v1236_v50 = vpop.xlane.xlu1 %1235  ;;  %v3816_v20 = vpack.c.bf16 %v4042_v49, %v4038_v26 }
 0x57d   : > { %v1309_v41 = vsub.f32 %v4839_v34, %v1236_v50  ;;  %v1310_v14 = vsub.f32 %v4841_v24, %v1236_v50  ;;  %v3814_v15 = vpack.c.bf16 %v4044_v5, %v4040_v39  ;;  %4053 = vpow2.f32 %v1411_v4  ;;  %v5992_v50 = vld [vmem:[#allocation27_spill] sm:$0xff] }
 0x57e   : > { %4055 = vpow2.f32 %v1413_v28 }
 0x57f   : > { %v1415_v58 = vmul.f32 1.442695, %v1309_v41  ;;  %v1417_v59 = vmul.f32 1.442695, %v1310_v14  ;;  %3815 = vmatprep.subr.bf16.mxu0 %v3814_v15  ;;  %v4046_v30 = vpop.eup %4045  ;;  %v5993_v41 = vld [vmem:[#allocation28_spill] sm:$0xff] }
 0x580   : > { %3817 = vmatpush1.bf16.xpose.msra.mxu0 %v3816_v20  ;;  %v1239_v29 = vpop.xlane.xlu0 %1238  ;;  %v4048_v17 = vpop.eup %4047 }
 0x581   : > { %4057 = vpow2.f32 %v1415_v58  ;;  %v1311_v32 = vsub.f32 %v4845_v40, %v1239_v29  ;;  %v1312_v42 = vsub.f32 %v4847_v43, %v1239_v29 }
 0x582   : > { %4059 = vpow2.f32 %v1417_v59 }
 0x583   : > { %v4050_v6 = vpop.eup %4049  ;;  %v1419_v34 = vmul.f32 1.442695, %v1311_v32  ;;  %v1421_v24 = vmul.f32 1.442695, %v1312_v42  ;;  %v5994_v32 = vld [vmem:[#allocation29_spill] sm:$0xff] }
 0x584   : > { %v4052_v18 = vpop.eup %4051  ;;  %v1242_v10 = vpop.xlane.xlu1 %1241  ;;  %v3820_v61 = vpack.c.bf16 %v4050_v6, %v4046_v30 }
 0x585   : > { %v1313_v13 = vsub.f32 %v4851_v51, %v1242_v10  ;;  %v1314_v62 = vsub.f32 %v4853_v54, %v1242_v10  ;;  %v3818_v35 = vpack.c.bf16 %v4052_v18, %v4048_v17  ;;  %4061 = vpow2.f32 %v1419_v34  ;;  %v5995_v17 = vld [vmem:[#allocation30_spill] sm:$0xff] }
 0x586   : > { %4063 = vpow2.f32 %v1421_v24 }
 0x587   : > { %v1423_v57 = vmul.f32 1.442695, %v1313_v13  ;;  %v1425_v52 = vmul.f32 1.442695, %v1314_v62  ;;  %3819 = vmatprep.subr.bf16.mxu0 %v3818_v35  ;;  %v4054_v43 = vpop.eup %4053  ;;  %v5996_v35 = vld [vmem:[#allocation31_spill] sm:$0xff] }
 0x588   : > { %3821 = vmatpush1.bf16.xpose.msra.mxu0 %v3820_v61  ;;  %v1245_v40 = vpop.xlane.xlu0 %1244  ;;  %v4056_v53 = vpop.eup %4055 }
 0x589   : > { %4065 = vpow2.f32 %v1423_v57  ;;  %v1315_v19 = vsub.f32 %v4857_v60, %v1245_v40  ;;  %v1316_v0 = vsub.f32 %v4859_v63, %v1245_v40 }
 0x58a   : > { %4067 = vpow2.f32 %v1425_v52  ;;  %v5997_v52 = vld [vmem:[#allocation32_spill] sm:$0xff] }
 0x58b   : > { %v4058_v2 = vpop.eup %4057  ;;  %v1427_v51 = vmul.f32 1.442695, %v1315_v19  ;;  %v1429_v54 = vmul.f32 1.442695, %v1316_v0 }
 0x58c   : > { %v4060_v27 = vpop.eup %4059  ;;  %v1248_v37 = vpop.xlane.xlu1 %1247  ;;  %v3824_v21 = vpack.c.bf16 %v4058_v2, %v4054_v43 }
 0x58d   : > { %v1317_v22 = vsub.f32 %v5988_v3, %v1248_v37  ;;  %v1318_v44 = vsub.f32 %v5989_v7, %v1248_v37  ;;  %v3822_v47 = vpack.c.bf16 %v4060_v27, %v4056_v53  ;;  %4069 = vpow2.f32 %v1427_v51  ;;  %v5998_v51 = vld [vmem:[#allocation33_spill] sm:$0xff] }
 0x58e   : > { %4071 = vpow2.f32 %v1429_v54  ;;  %v5999_v54 = vld [vmem:[#allocation34_spill] sm:$0xff] }
 0x58f   : > { %v1431_v55 = vmul.f32 1.442695, %v1317_v22  ;;  %v1433_v9 = vmul.f32 1.442695, %v1318_v44  ;;  %3823 = vmatprep.subr.bf16.mxu0 %v3822_v47  ;;  %v4062_v63 = vpop.eup %4061 }
 0x590   : > { %3825 = vmatpush1.bf16.xpose.msra.mxu0 %v3824_v21  ;;  %v1251_v60 = vpop.xlane.xlu0 %1250  ;;  %v4064_v12 = vpop.eup %4063 }
 0x591   : > { %4073 = vpow2.f32 %v1431_v55  ;;  %v1319_v56 = vsub.f32 %v5990_v11, %v1251_v60  ;;  %v1320_v26 = vsub.f32 %v5991_v25, %v1251_v60  ;;  %v6000_v60 = vld [vmem:[#allocation35_spill] sm:$0xff] }
 0x592   : > { %4075 = vpow2.f32 %v1433_v9 }
 0x593   : > { %v4066_v38 = vpop.eup %4065  ;;  %v1435_v39 = vmul.f32 1.442695, %v1319_v56  ;;  %v1437_v4 = vmul.f32 1.442695, %v1320_v26 }
 0x594   : > { %v4068_v49 = vpop.eup %4067  ;;  %v1254_v5 = vpop.xlane.xlu1 %1253  ;;  %v3828_v28 = vpack.c.bf16 %v4066_v38, %v4062_v63 }
 0x595   : > { %v1321_v20 = vsub.f32 %v5992_v50, %v1254_v5  ;;  %v1322_v14 = vsub.f32 %v5993_v41, %v1254_v5  ;;  %v3826_v15 = vpack.c.bf16 %v4068_v49, %v4064_v12  ;;  %4077 = vpow2.f32 %v1435_v39 }
 0x596   : > { %4079 = vpow2.f32 %v1437_v4 }
 0x597   : > { %v1439_v58 = vmul.f32 1.442695, %v1321_v20  ;;  %v1441_v59 = vmul.f32 1.442695, %v1322_v14  ;;  %3827 = vmatprep.subr.bf16.mxu0 %v3826_v15  ;;  %v4070_v30 = vpop.eup %4069 }
 0x598   : > { %3829 = vmatpush1.bf16.xpose.msra.mxu0 %v3828_v28  ;;  %v1257_v29 = vpop.xlane.xlu0 %1256  ;;  %v4072_v34 = vpop.eup %4071 }
 0x599   : > { %4081 = vpow2.f32 %v1439_v58  ;;  %v1323_v42 = vsub.f32 %v5994_v32, %v1257_v29  ;;  %v1324_v6 = vsub.f32 %v5995_v17, %v1257_v29  ;;  %v1688_v17 = vstv %s3709_s23  ;;  %s4337_s23 = smov 83  }
 0x59a   : > { %4083 = vpow2.f32 %v1441_v59 }
 0x59b   : > { %v4074_v18 = vpop.eup %4073  ;;  %v1443_v24 = vmul.f32 1.442695, %v1323_v42  ;;  %v1445_v61 = vmul.f32 1.442695, %v1324_v6 }
 0x59c   : > { %v4076_v10 = vpop.eup %4075  ;;  %v1260_v13 = vpop.xlane.xlu1 %1259  ;;  %v3832_v62 = vpack.c.bf16 %v4074_v18, %v4070_v30 }
 0x59d   : > { %v1325_v57 = vsub.f32 %v5996_v35, %v1260_v13  ;;  %v1326_v40 = vsub.f32 %v5997_v52, %v1260_v13  ;;  %v3830_v43 = vpack.c.bf16 %v4076_v10, %v4072_v34  ;;  %4085 = vpow2.f32 %v1443_v24 }
 0x59e   : > { %4087 = vpow2.f32 %v1445_v61 }
 0x59f   : > { %v1447_v19 = vmul.f32 1.442695, %v1325_v57  ;;  %v1449_v0 = vmul.f32 1.442695, %v1326_v40  ;;  %3831 = vmatprep.subr.bf16.mxu0 %v3830_v43  ;;  %v4078_v2 = vpop.eup %4077 }
 0x5a0   : > { %3833 = vmatpush1.bf16.xpose.msra.mxu0 %v3832_v62  ;;  %v1263_v53 = vpop.xlane.xlu0 %1262  ;;  %v4080_v21 = vpop.eup %4079 }
 0x5a1   : > { %4089 = vpow2.f32 %v1447_v19  ;;  %v1327_v27 = vsub.f32 %v5998_v51, %v1263_v53  ;;  %v1328_v37 = vsub.f32 %v5999_v54, %v1263_v53 }
 0x5a2   : > { %4091 = vpow2.f32 %v1449_v0 }
 0x5a3   : > { %v4082_v3 = vpop.eup %4081  ;;  %v1451_v22 = vmul.f32 1.442695, %v1327_v27  ;;  %v1453_v44 = vmul.f32 1.442695, %v1328_v37  ;;  %v4106_v27 = vld [vmem:[#allocation2 + $0x10] sm:$0xff]  ;;  %v4107_v37 = vld [vmem:[#allocation2 + $0x20] sm:$0xff] }
 0x5a4   : > { %v4084_v7 = vpop.eup %4083  ;;  %v1266_v47 = vpop.xlane.xlu1 %1265  ;;  %v3836_v55 = vpack.c.bf16 %v4082_v3, %v4078_v2  ;;  %v4105_v2 = vld [vmem:[#allocation2] sm:$0xff]  ;;  %v4108_v3 = vld [vmem:[#allocation2 + $0x30] sm:$0xff] }
 0x5a5   : > { %v1329_v9 = vsub.f32 %v4899_v1, %v1266_v47  ;;  %v1330_v63 = vsub.f32 %v6000_v60, %v1266_v47  ;;  %v3834_v11 = vpack.c.bf16 %v4084_v7, %v4080_v21  ;;  %4093 = vpow2.f32 %v1451_v22  ;;  %v4109_v7 = vld [vmem:[#allocation2 + $0x8] sm:$0xff]  ;;  %v4110_v47 = vld [vmem:[#allocation2 + $0x18] sm:$0xff] }
 0x5a6   : > { %4095 = vpow2.f32 %v1453_v44 }
 0x5a7   : > { %v1455_v56 = vmul.f32 1.442695, %v1329_v9  ;;  %v1457_v25 = vmul.f32 1.442695, %v1330_v63  ;;  %3835 = vmatprep.subr.bf16.mxu0 %v3834_v11  ;;  %v4086_v26 = vpop.eup %4085  ;;  %v4111_v9 = vld [vmem:[#allocation2 + $0x28] sm:$0xff]  ;;  %v4112_v63 = vld [vmem:[#allocation2 + $0x38] sm:$0xff] }
 0x5a8   : > { %3837 = vmatpush1.bf16.xpose.msra.mxu0 %v3836_v55  ;;  %v4088_v12 = vpop.eup %4087 }
 0x5a9   : > { %4097 = vpow2.f32 %v1455_v56 }
 0x5aa   : > { %4099 = vpow2.f32 %v1457_v25 }
 0x5ab   : > { %v4090_v38 = vpop.eup %4089 }
 0x5ac   : > { %v4092_v39 = vpop.eup %4091  ;;  %v3840_v49 = vpack.c.bf16 %v4090_v38, %v4086_v26  ;;  %v1713_v38 = vld [vmem:[%s5924_s3] sm:$0xff] }
 0x5ad   : > { %v3838_v4 = vpack.c.bf16 %v4092_v39, %v4088_v12  ;;  %v4113_v39 = vld [vmem:[#allocation3] sm:$0xff] }
 0x5af   : > { %3839 = vmatprep.subr.bf16.mxu0 %v3838_v4  ;;  %v4094_v1 = vpop.eup %4093  ;;  %v1715_v4 = vld [vmem:[%s5924_s3 + $0x10] sm:$0xff] }
 0x5b0   : > { %3841 = vmatpush1.bf16.xpose.msra.mxu0 %v3840_v49  ;;  %v4096_v5 = vpop.eup %4095  ;;  %v1714_v49 = vld [vmem:[%s5924_s3 + $0x8] sm:$0xff] }
 0x5b3   : > { %v4098_v28 = vpop.eup %4097 }
 0x5b4   : > { %v4100_v50 = vpop.eup %4099  ;;  %v3844_v20 = vpack.c.bf16 %v4098_v28, %v4094_v1  ;;  %v1716_v1 = vld [vmem:[%s5924_s3 + $0x18] sm:$0xff]  ;;  %v1718_v28 = vld [vmem:[%s5924_s3 + $0x28] sm:$0xff] }
 0x5b5   : > { %v3842_v41 = vpack.c.bf16 %v4100_v50, %v4096_v5  ;;  %v1717_v5 = vld [vmem:[%s5924_s3 + $0x20] sm:$0xff]  ;;  %v1719_v50 = vld [vmem:[%s5924_s3 + $0x30] sm:$0xff] }
 0x5b7   : > { %3843 = vmatprep.subr.bf16.mxu0 %v3842_v41  ;;  %v1721_v41 = vld [vmem:[%s5924_s3 + $0x40] sm:$0xff] }
 0x5b8   : > { %3845 = vmatpush1.bf16.xpose.msra.mxu0 %v3844_v20  ;;  %v1720_v20 = vld [vmem:[%s5924_s3 + $0x38] sm:$0xff] }
 0x5bf   : > { %1639 = vmatmul.mubr.f32.vlgmr.msra.gmra.mrb[64].mxu0 %v4913_v23 }
 0x5c0   : > { %1644 = vmatprep.mubr.f32.mxu0 %v4921_v48 }
 0x5c3   : > { %1645 = vmatmul.mubr.f32.gmra.mrb[66].mxu0 %v4917_v8 }
 0x5c4   : > { %1650 = vmatprep.mubr.f32.mxu0 %v4927_v46 }
 0x5c7   : > { %1651 = vmatmul.mubr.f32.gmra.mrb[68].mxu0 %v4923_v33 }
 0x5c8   : > { %1656 = vmatprep.mubr.f32.mxu0 %v4933_v31  ;;  %v6001_v31 = vlaneseq }
 0x5ca   : > { %v4997_v30 = vshrl.u32 %v6001_v31, 7 }
 0x5cb   : > { %1657 = vmatmul.mubr.f32.gmra.mrb[70].mxu0 %v4929_v36 }
 0x5cc   : > { %1662 = vmatprep.mubr.f32.mxu0 %v4939_v16  ;;  %v5000_v36 = vsub.s32 0, %v4997_v30 }
 0x5cf   : > { %1663 = vmatmul.mubr.f32.gmra.mrb[72].mxu0 %v4935_v45 }
 0x692   : > { %v1640_v14 = vpop.f32.mrb[64].mxu0 }
 0x693   : > { %v1642_v15 = vpop.f32.mrb[65].mxu0 }
 0x696   : > { %v1646_v23 = vpop.f32.mrb[66].mxu0 }
 0x697   : > { %v1648_v58 = vpop.f32.mrb[67].mxu0 }
 0x69a   : > { %v1652_v48 = vpop.f32.mrb[68].mxu0 }
 0x69b   : > { %v1654_v59 = vpop.f32.mrb[69].mxu0 }
 0x69e   : > { %v1658_v8 = vpop.f32.mrb[70].mxu0 }
 0x69f   : > { %v1660_v29 = vpop.f32.mrb[71].mxu0 }
 0x6a2   : > { %v1664_v46 = vpop.f32.mrb[72].mxu0 }
 0x6a3   : > { %4101 = vrcp.f32 %v1664_v46  ;;  %v1666_v33 = vpop.f32.mrb[73].mxu0 }
 0x6a4   : > { %4103 = vrcp.f32 %v1666_v33 }
 0x6ad   : > { %v4102_v45 = vpop.eup %4101 }
 0x6ae   : > { %v4104_v16 = vpop.eup %4103  ;;  %v1675_v32 = vrot.slane %v4102_v45, %v5000_v36 }
 0x6af   : > { %v1679_v42 = vrot.slane %v4104_v16, %v5000_v36 }
 0x6b0   : > { %v1680_v6 = vmul.f32 %v1675_v32, %v1640_v14  ;;  %v1682_v34 = vmul.f32 %v1675_v32, %v1646_v23  ;;  %v1684_v18 = vmul.f32 %v1675_v32, %v1652_v48  ;;  %v1686_v24 = vmul.f32 %v1675_v32, %v1658_v8  ;;  %v1722_v14 = vld [vmem:[%s5924_s3 + $0x48] sm:$0xff]  ;;  %v1724_v23 = vld [vmem:[%s5924_s3 + $0x58] sm:$0xff] }
 0x6b1   : > { %v1681_v10 = vmul.f32 %v1679_v42, %v1642_v15  ;;  %v1683_v61 = vmul.f32 %v1679_v42, %v1648_v58  ;;  %v1685_v13 = vmul.f32 %v1679_v42, %v1654_v59  ;;  %v1687_v62 = vmul.f32 %v1679_v42, %v1660_v29  ;;  %v1723_v15 = vld [vmem:[%s5924_s3 + $0x50] sm:$0xff]  ;;  %v1725_v58 = vld [vmem:[%s5924_s3 + $0x60] sm:$0xff]  ;;  %v1726_v48 = vld [vmem:[%s5924_s3 + $0x68] sm:$0xff] }
 0x6b2   : > { %v1689_v35 = vmul.f32 %v1688_v17, %v1680_v6  ;;  %v1691_v57 = vmul.f32 %v1688_v17, %v1682_v34  ;;  %v1693_v52 = vmul.f32 %v1688_v17, %v1684_v18  ;;  %v1695_v40 = vmul.f32 %v1688_v17, %v1686_v24  ;;  %v1727_v59 = vld [vmem:[%s5924_s3 + $0x70] sm:$0xff]  ;;  %v1728_v8 = vld [vmem:[%s5924_s3 + $0x78] sm:$0x1] }
 0x6b3   : > { %v1690_v43 = vmul.f32 %v1688_v17, %v1681_v10  ;;  %v1692_v19 = vmul.f32 %v1688_v17, %v1683_v61  ;;  %v1694_v0 = vmul.f32 %v1688_v17, %v1685_v13  ;;  %v1696_v53 = vmul.f32 %v1688_v17, %v1687_v62 }
 0x6b4   : > { %v5008_v51 = vadd.f32 %v4105_v2, %v1689_v35  ;;  %v5010_v54 = vadd.f32 %v4106_v27, %v1691_v57  ;;  %v5012_v21 = vadd.f32 %v4107_v37, %v1693_v52  ;;  %v5014_v22 = vadd.f32 %v4108_v3, %v1695_v40 }
 0x6b5   : > { %v5016_v44 = vadd.f32 %v4109_v7, %v1690_v43  ;;  %v5018_v55 = vadd.f32 %v4110_v47, %v1692_v19  ;;  %v5020_v60 = vadd.f32 %v4111_v9, %v1694_v0  ;;  %v5022_v11 = vadd.f32 %v4112_v63, %v1696_v53 }
 0x6b6   : > { %6002 = vst [vmem:[#allocation23_spill] sm:$0xff] %v5008_v51  ;;  %6003 = vst [vmem:[#allocation24_spill] sm:$0xff] %v5010_v54  ;;  %v3848_v25 = vpack.c.bf16 %v5010_v54, %v5008_v51  ;;  %v3852_v12 = vpack.c.bf16 %v5014_v22, %v5012_v21 }
 0x6b7   : > { %6004 = vst [vmem:[#allocation25_spill] sm:$0xff] %v5012_v21  ;;  %6005 = vst [vmem:[#allocation26_spill] sm:$0xff] %v5014_v22  ;;  %v3846_v56 = vpack.c.bf16 %v5018_v55, %v5016_v44  ;;  %v3850_v26 = vpack.c.bf16 %v5022_v11, %v5020_v60 }
 0x6b8   : > { %6006 = vst [vmem:[#allocation27_spill] sm:$0xff] %v5016_v44  ;;  %6007 = vst [vmem:[#allocation28_spill] sm:$0xff] %v5018_v55 }
 0x6b9   : > { %6008 = vst [vmem:[#allocation29_spill] sm:$0xff] %v5020_v60  ;;  %6009 = vst [vmem:[#allocation30_spill] sm:$0xff] %v5022_v11  ;;  %3847 = vmatprep.subr.bf16.mxu1 %v3846_v56 }
 0x6ba   : > { %1705 = vst [vmem:[%s5026_s17] sm:$0xff] %v5008_v51  ;;  %1707 = vst [vmem:[%s5026_s17 + $0x10] sm:$0xff] %v5010_v54  ;;  %3849 = vmatpush1.bf16.msra.mxu1 %v3848_v25 }
 0x6bb   : > { %1709 = vst [vmem:[%s5026_s17 + $0x20] sm:$0xff] %v5012_v21  ;;  %1711 = vst [vmem:[%s5026_s17 + $0x30] sm:$0xff] %v5014_v22  ;;  %3851 = vmatprep.subr.bf16.mxu1 %v3850_v26 }
 0x6bc   : > { %1706 = vst [vmem:[%s5026_s17 + $0x8] sm:$0xff] %v5016_v44  ;;  %1708 = vst [vmem:[%s5026_s17 + $0x18] sm:$0xff] %v5018_v55 }
 0x6bd   : > { %1710 = vst [vmem:[%s5026_s17 + $0x28] sm:$0xff] %v5020_v60  ;;  %1712 = vst [vmem:[%s5026_s17 + $0x38] sm:$0xff] %v5022_v11 }
 0x6be   : > { %3853 = vmatpush1.bf16.msra.mxu1 %v3852_v12 }
 0x6c1   : > { %3710 = vmatmul.mubr.msk.f32.vlgmr.msra.gmra.mrb[36].mxu1 %vm432_vm0, %v1713_v38 }
 0x6c2   : > { %1847 = vmatprep.mubr.f32.mxu1 %v4113_v39 }
 0x6c5   : > { %3711 = vmatmul.mubr.msk.f32.gmra.mrb[38].mxu1 %vm432_vm0, %v1714_v49 }
 0x6c6   : > { %1853 = vmatprep.mubr.f32.mxu1 %v4113_v39 }
 0x6c9   : > { %3712 = vmatmul.mubr.msk.f32.gmra.mrb[40].mxu1 %vm432_vm0, %v1715_v4 }
 0x6ca   : > { %1859 = vmatprep.mubr.f32.mxu1 %v4113_v39 }
 0x6cd   : > { %3713 = vmatmul.mubr.msk.f32.gmra.mrb[42].mxu1 %vm432_vm0, %v1716_v1 }
 0x6ce   : > { %1865 = vmatprep.mubr.f32.mxu1 %v4113_v39 }
 0x6d1   : > { %3714 = vmatmul.mubr.msk.f32.gmra.mrb[44].mxu1 %vm432_vm0, %v1717_v5 }
 0x6d2   : > { %1871 = vmatprep.mubr.f32.mxu1 %v4113_v39 }
 0x6d5   : > { %3715 = vmatmul.mubr.msk.f32.gmra.mrb[46].mxu1 %vm432_vm0, %v1718_v28 }
 0x6d6   : > { %1877 = vmatprep.mubr.f32.mxu1 %v4113_v39 }
 0x6d9   : > { %3716 = vmatmul.mubr.msk.f32.gmra.mrb[48].mxu1 %vm432_vm0, %v1719_v50 }
 0x6da   : > { %1883 = vmatprep.mubr.f32.mxu1 %v4113_v39 }
 0x6dd   : > { %3717 = vmatmul.mubr.msk.f32.gmra.mrb[50].mxu1 %vm432_vm0, %v1720_v20 }
 0x6de   : > { %1889 = vmatprep.mubr.f32.mxu1 %v4113_v39 }
 0x6e1   : > { %3718 = vmatmul.mubr.msk.f32.gmra.mrb[52].mxu1 %vm432_vm0, %v1721_v41 }
 0x6e2   : > { %1895 = vmatprep.mubr.f32.mxu1 %v4113_v39 }
 0x6e5   : > { %3719 = vmatmul.mubr.msk.f32.gmra.mrb[54].mxu1 %vm432_vm0, %v1722_v14 }
 0x6e6   : > { %1901 = vmatprep.mubr.f32.mxu1 %v4113_v39 }
 0x6e9   : > { %3720 = vmatmul.mubr.msk.f32.gmra.mrb[56].mxu1 %vm432_vm0, %v1723_v15 }
 0x6ea   : > { %1907 = vmatprep.mubr.f32.mxu1 %v4113_v39 }
 0x6ed   : > { %3721 = vmatmul.mubr.msk.f32.gmra.mrb[58].mxu1 %vm432_vm0, %v1724_v23 }
 0x6ee   : > { %1913 = vmatprep.mubr.f32.mxu1 %v4113_v39 }
 0x6f1   : > { %3722 = vmatmul.mubr.msk.f32.gmra.mrb[60].mxu1 %vm432_vm0, %v1725_v58 }
 0x6f2   : > { %1919 = vmatprep.mubr.f32.mxu1 %v4113_v39 }
 0x6f5   : > { %3723 = vmatmul.mubr.msk.f32.gmra.mrb[62].mxu1 %vm432_vm0, %v1726_v48 }
 0x6f6   : > { %1925 = vmatprep.mubr.f32.mxu1 %v4113_v39 }
 0x6f9   : > { %3724 = vmatmul.mubr.msk.f32.gmra.mrb[64].mxu1 %vm432_vm0, %v1727_v59 }
 0x6fa   : > { %1931 = vmatprep.mubr.f32.mxu1 %v4113_v39 }
 0x6fd   : > { %3725 = vmatmul.mubr.msk.f32.gmra.mrb[66].mxu1 %vm432_vm0, %v1728_v8 }
 0x794   : > { %v1843_v29 = vpop.f32.mrb[36].mxu1 }
 0x795   : > { %1970 = vst [vmem:[#allocation3 + $0x8] sm:$0xff] %v1843_v29  ;;  %v1845_v46 = vpop.f32.mrb[37].mxu1 }
 0x796   : > { %1971 = vst [vmem:[#allocation3 + $0x10] sm:$0xff] %v1845_v46 }
 0x798   : > { %v1849_v33 = vpop.f32.mrb[38].mxu1 }
 0x799   : > { %1972 = vst [vmem:[#allocation3 + $0x28] sm:$0xff] %v1849_v33  ;;  %v1851_v45 = vpop.f32.mrb[39].mxu1 }
 0x79a   : > { %1973 = vst [vmem:[#allocation3 + $0x30] sm:$0xff] %v1851_v45 }
 0x79c   : > { %v1855_v16 = vpop.f32.mrb[40].mxu1 }
 0x79d   : > { %1974 = vst [vmem:[#allocation3 + $0x48] sm:$0xff] %v1855_v16  ;;  %v1857_v32 = vpop.f32.mrb[41].mxu1 }
 0x79e   : > { %1975 = vst [vmem:[#allocation3 + $0x50] sm:$0xff] %v1857_v32 }
 0x7a0   : > { %v1861_v42 = vpop.f32.mrb[42].mxu1 }
 0x7a1   : > { %v2040_v17 = vld [vmem:[#allocation3 + $0x23] ss:$8 sm:$0x7]  ;;  %1976 = vst [vmem:[#allocation3 + $0x68] sm:$0xff] %v1861_v42  ;;  %v1863_v6 = vpop.f32.mrb[43].mxu1 }
 0x7a2   : > { %2042 = vrot.lane.b32.xlu0 %v2040_v17, %s4328_s26  ;;  %1977 = vst [vmem:[#allocation3 + $0x70] sm:$0xff] %v1863_v6  ;;  %v2169_v18 = vld [vmem:[#allocation3 + $0x24] ss:$8 sm:$0x7] }
 0x7a3   : > { %v2292_v10 = vld [vmem:[#allocation3 + $0x25] ss:$8 sm:$0x7]  ;;  %v2415_v35 = vld [vmem:[#allocation3 + $0x26] ss:$8 sm:$0x7] }
 0x7a4   : > { %v1867_v34 = vpop.f32.mrb[44].mxu1  ;;  %v2538_v43 = vld [vmem:[#allocation3 + $0x27] ss:$8 sm:$0x7] }
 0x7a5   : > { %v2050_v24 = vld [vmem:[#allocation3 + $0x46] ss:$8 sm:$0x7]  ;;  %1978 = vst [vmem:[#allocation3 + $0x88] sm:$0xff] %v1867_v34  ;;  %v1869_v13 = vpop.f32.mrb[45].mxu1 }
 0x7a6   : > { %2171 = vrot.lane.b32.xlu0 %v2169_v18, %s4328_s26  ;;  %2052 = vrot.lane.b32.xlu1 %v2050_v24, %s4329_s10  ;;  %v2178_v61 = vld [vmem:[#allocation3 + $0x47] ss:$8 sm:$0x7]  ;;  %1979 = vst [vmem:[#allocation3 + $0x90] sm:$0xff] %v1869_v13 }
 0x7a7   : > { %v2659_v57 = vld [vmem:[#allocation3 + $0x40] ss:$8 sm:$0x7]  ;;  %v3027_v19 = vld [vmem:[#allocation3 + $0x43] ss:$8 sm:$0x7] }
 0x7a8   : > { %v1873_v62 = vpop.f32.mrb[46].mxu1  ;;  %v2781_v0 = vld [vmem:[#allocation3 + $0x41] ss:$8 sm:$0x7] }
 0x7a9   : > { %1980 = vst [vmem:[#allocation3 + $0xa8] sm:$0xff] %v1873_v62  ;;  %v1875_v52 = vpop.f32.mrb[47].mxu1  ;;  %v3150_v2 = vld [vmem:[#allocation3 + $0x44] ss:$8 sm:$0x7] }
 0x7aa   : > { %2294 = vrot.lane.b32.xlu0 %v2292_v10, %s4328_s26  ;;  %2180 = vrot.lane.b32.xlu1 %v2178_v61, %s4329_s10  ;;  %1981 = vst [vmem:[#allocation3 + $0xb0] sm:$0xff] %v1875_v52  ;;  %v2301_v3 = vld [vmem:[#allocation3 + $0x60] ss:$8 sm:$0x7] }
 0x7ab   : > { %v2904_v7 = vld [vmem:[#allocation3 + $0x42] ss:$8 sm:$0x7]  ;;  %v3273_v9 = vld [vmem:[#allocation3 + $0x45] ss:$8 sm:$0x7] }
 0x7ac   : > { %v1879_v40 = vpop.f32.mrb[48].mxu1  ;;  %v2424_v63 = vld [vmem:[#allocation3 + $0x61] ss:$8 sm:$0x7] }
 0x7ad   : > { %1982 = vst [vmem:[#allocation3 + $0xc8] sm:$0xff] %v1879_v40  ;;  %v1881_v53 = vpop.f32.mrb[49].mxu1  ;;  %v2913_v25 = vld [vmem:[#allocation3 + $0x65] ss:$8 sm:$0x7] }
 0x7ae   : > { %2417 = vrot.lane.b32.xlu0 %v2415_v35, %s4328_s26  ;;  %2661 = vrot.lane.b32.xlu1 %v2659_v57, %s4328_s26  ;;  %1983 = vst [vmem:[#allocation3 + $0xd0] sm:$0xff] %v1881_v53  ;;  %v2547_v26 = vld [vmem:[#allocation3 + $0x62] ss:$8 sm:$0x7] }
 0x7af   : > { %v3036_v38 = vld [vmem:[#allocation3 + $0x66] ss:$8 sm:$0x7]  ;;  %v2668_v49 = vld [vmem:[#allocation3 + $0x63] ss:$8 sm:$0x7] }
 0x7b0   : > { %v1885_v27 = vpop.f32.mrb[50].mxu1  ;;  %v2187_v5 = vld [vmem:[#allocation3 + $0x82] ss:$8 sm:$0x7] }
 0x7b1   : > { %1984 = vst [vmem:[#allocation3 + $0xe8] sm:$0xff] %v1885_v27  ;;  %v1887_v37 = vpop.f32.mrb[51].mxu1  ;;  %v2790_v50 = vld [vmem:[#allocation3 + $0x64] ss:$8 sm:$0x7] }
 0x7b2   : > { %2540 = vrot.lane.b32.xlu0 %v2538_v43, %s4328_s26  ;;  %3029 = vrot.lane.b32.xlu1 %v3027_v19, %s4328_s26  ;;  %1985 = vst [vmem:[#allocation3 + $0xf0] sm:$0xff] %v1887_v37  ;;  %v3159_v20 = vld [vmem:[#allocation3 + $0x67] ss:$8 sm:$0x7] }
 0x7b3   : > { %v2310_v41 = vld [vmem:[#allocation3 + $0x83] ss:$8 sm:$0x7]  ;;  %v2433_v14 = vld [vmem:[#allocation3 + $0x84] ss:$8 sm:$0x7] }
 0x7b4   : > { %v1891_v47 = vpop.f32.mrb[52].mxu1  ;;  %v2060_v15 = vld [vmem:[#allocation3 + $0x81] ss:$8 sm:$0x7] }
 0x7b5   : > { %1986 = vst [vmem:[#allocation3 + $0x108] sm:$0xff] %v1891_v47  ;;  %v1893_v56 = vpop.f32.mrb[53].mxu1  ;;  %v2556_v59 = vld [vmem:[#allocation3 + $0x85] ss:$8 sm:$0x7] }
 0x7b6   : > { %2783 = vrot.lane.b32.xlu0 %v2781_v0, %s4328_s26  ;;  %3152 = vrot.lane.b32.xlu1 %v3150_v2, %s4328_s26  ;;  %1987 = vst [vmem:[#allocation3 + $0x110] sm:$0xff] %v1893_v56  ;;  %v2677_v29 = vld [vmem:[#allocation3 + $0x86] ss:$8 sm:$0x7] }
 0x7b7   : > { %v3282_v16 = vld [vmem:[#allocation3 + $0x80] ss:$8 sm:$0x7]  ;;  %v2799_v32 = vld [vmem:[#allocation3 + $0x87] ss:$8 sm:$0x7] }
 0x7b8   : > { %v1897_v12 = vpop.f32.mrb[54].mxu1  ;;  %v3045_v42 = vld [vmem:[#allocation3 + $0xa1] ss:$8 sm:$0x7] }
 0x7b9   : > { %1988 = vst [vmem:[#allocation3 + $0x128] sm:$0xff] %v1897_v12  ;;  %v1899_v39 = vpop.f32.mrb[55].mxu1  ;;  %v2070_v17 = vld [vmem:[#allocation3 + $0xa4] ss:$8 sm:$0x7] }
 0x7ba   : > { %2906 = vrot.lane.b32.xlu0 %v2904_v7, %s4328_s26  ;;  %2303 = vrot.lane.b32.xlu1 %v2301_v3, %s4329_s10  ;;  %1989 = vst [vmem:[#allocation3 + $0x130] sm:$0xff] %v1899_v39  ;;  %v2080_v6 = vld [vmem:[#allocation3 + $0xc7] ss:$8 sm:$0x7] }
 0x7bb   : > { %v2196_v34 = vld [vmem:[#allocation3 + $0xa5] ss:$8 sm:$0x7]  ;;  %v2319_v18 = vld [vmem:[#allocation3 + $0xa6] ss:$8 sm:$0x7] }
 0x7bc   : > { %v1903_v4 = vpop.f32.mrb[56].mxu1  ;;  %v2565_v10 = vld [vmem:[#allocation3 + $0xc0] ss:$8 sm:$0x7] }
 0x7bd   : > { %1990 = vst [vmem:[#allocation3 + $0x148] sm:$0xff] %v1903_v4  ;;  %v1905_v1 = vpop.f32.mrb[57].mxu1  ;;  %v2442_v13 = vld [vmem:[#allocation3 + $0xa7] ss:$8 sm:$0x7] }
 0x7be   : > { %3275 = vrot.lane.b32.xlu0 %v3273_v9, %s4328_s26  ;;  %2426 = vrot.lane.b32.xlu1 %v2424_v63, %s4329_s10  ;;  %1991 = vst [vmem:[#allocation3 + $0x150] sm:$0xff] %v1905_v1  ;;  %v2686_v62 = vld [vmem:[#allocation3 + $0xc1] ss:$8 sm:$0x7] }
 0x7bf   : > { %v2922_v35 = vld [vmem:[#allocation3 + $0xa0] ss:$8 sm:$0x7]  ;;  %v2808_v57 = vld [vmem:[#allocation3 + $0xc2] ss:$8 sm:$0x7] }
 0x7c0   : > { %v1909_v28 = vpop.f32.mrb[58].mxu1  ;;  %v3168_v52 = vld [vmem:[#allocation3 + $0xa2] ss:$8 sm:$0x7] }
 0x7c1   : > { %1992 = vst [vmem:[#allocation3 + $0x168] sm:$0xff] %v1909_v28  ;;  %v1911_v23 = vpop.f32.mrb[59].mxu1  ;;  %v3054_v40 = vld [vmem:[#allocation3 + $0xc4] ss:$8 sm:$0x7] }
 0x7c2   : > { %2915 = vrot.lane.b32.xlu0 %v2913_v25, %s4329_s10  ;;  %2549 = vrot.lane.b32.xlu1 %v2547_v26, %s4329_s10  ;;  %1993 = vst [vmem:[#allocation3 + $0x170] sm:$0xff] %v1911_v23  ;;  %v3291_v43 = vld [vmem:[#allocation3 + $0xa3] ss:$8 sm:$0x7] }
 0x7c3   : > { %v3177_v19 = vld [vmem:[#allocation3 + $0xc5] ss:$8 sm:$0x7]  ;;  %v2931_v0 = vld [vmem:[#allocation3 + $0xc3] ss:$8 sm:$0x7] }
 0x7c4   : > { %v1915_v58 = vpop.f32.mrb[60].mxu1  ;;  %v3300_v53 = vld [vmem:[#allocation3 + $0xc6] ss:$8 sm:$0x7] }
 0x7c5   : > { %1994 = vst [vmem:[#allocation3 + $0x188] sm:$0xff] %v1915_v58  ;;  %v1917_v48 = vpop.f32.mrb[61].mxu1  ;;  %v2940_v2 = vld [vmem:[#allocation3 + $0xee] ss:$8 sm:$0x7] }
 0x7c6   : > { %3038 = vrot.lane.b32.xlu0 %v3036_v38, %s4329_s10  ;;  %2670 = vrot.lane.b32.xlu1 %v2668_v49, %s4329_s10  ;;  %1995 = vst [vmem:[#allocation3 + $0x190] sm:$0xff] %v1917_v48  ;;  %v2205_v27 = vld [vmem:[#allocation3 + $0xe0] ss:$8 sm:$0x7] }
 0x7c7   : > { %v3063_v37 = vld [vmem:[#allocation3 + $0xef] ss:$8 sm:$0x7]  ;;  %v2328_v3 = vld [vmem:[#allocation3 + $0xe1] ss:$8 sm:$0x7] }
 0x7c8   : > { %v1921_v8 = vpop.f32.mrb[62].mxu1  ;;  %v2090_v7 = vld [vmem:[#allocation3 + $0x10a] ss:$8 sm:$0x7] }
 0x7c9   : > { %1996 = vst [vmem:[#allocation3 + $0x1a8] sm:$0xff] %v1921_v8  ;;  %v1923_v46 = vpop.f32.mrb[63].mxu1  ;;  %v2451_v47 = vld [vmem:[#allocation3 + $0xe2] ss:$8 sm:$0x7] }
 0x7ca   : > { %2792 = vrot.lane.b32.xlu1 %v2790_v50, %s4329_s10  ;;  %2189 = vrot.lane.b32.xlu0 %v2187_v5, %s4330_s8  ;;  %1997 = vst [vmem:[#allocation3 + $0x1b0] sm:$0xff] %v1923_v46  ;;  %v2574_v9 = vld [vmem:[#allocation3 + $0xe3] ss:$8 sm:$0x7] }
 0x7cb   : > { %v2214_v63 = vld [vmem:[#allocation3 + $0x10b] ss:$8 sm:$0x7]  ;;  %v2695_v56 = vld [vmem:[#allocation3 + $0xec] ss:$8 sm:$0x3] }
 0x7cc   : > { %v1927_v33 = vpop.f32.mrb[64].mxu1  ;;  %v2337_v25 = vld [vmem:[#allocation3 + $0x10c] ss:$8 sm:$0x7] }
 0x7cd   : > { %1998 = vst [vmem:[#allocation3 + $0x1c8] sm:$0xff] %v1927_v33  ;;  %v1929_v45 = vpop.f32.mrb[65].mxu1  ;;  %v2817_v26 = vld [vmem:[#allocation3 + $0xed] ss:$8 sm:$0x7] }
 0x7ce   : > { %3161 = vrot.lane.b32.xlu1 %v3159_v20, %s4329_s10  ;;  %2312 = vrot.lane.b32.xlu0 %v2310_v41, %s4330_s8  ;;  %1999 = vst [vmem:[#allocation3 + $0x1d0] sm:$0xff] %v1929_v45  ;;  %v2460_v12 = vld [vmem:[#allocation3 + $0x10d] ss:$8 sm:$0x7] }
 0x7cf   : > { %v2099_v38 = vld [vmem:[#allocation3 + $0x12d] ss:$8 sm:$0x7]  ;;  %v2583_v49 = vld [vmem:[#allocation3 + $0x10e] ss:$8 sm:$0x7] }
 0x7d0   : > { %v1933_v24 = vpop.f32.mrb[66].mxu1  ;;  %v2704_v5 = vld [vmem:[#allocation3 + $0x10f] ss:$8 sm:$0x7] }
 0x7d1   : > { %2000 = vst [vmem:[#allocation3 + $0x1e8] sm:$0x1] %v1933_v24  ;;  %v1935_v61 = vpop.f32.mrb[67].mxu1  ;;  %v2223_v28 = vld [vmem:[#allocation3 + $0x12e] ss:$8 sm:$0x7] }
 0x7d2   : > { %2435 = vrot.lane.b32.xlu0 %v2433_v14, %s4330_s8  ;;  %2062 = vrot.lane.b32.xlu1 %v2060_v15, %s4330_s8  ;;  %2001 = vst [vmem:[#allocation3 + $0x1f0] sm:$0x1] %v1935_v61  ;;  %v3186_v41 = vld [vmem:[#allocation3 + $0x108] ss:$8 sm:$0x7] }
 0x7d3   : > { %v2346_v14 = vld [vmem:[#allocation3 + $0x12f] ss:$8 sm:$0x7]  ;;  %v3309_v58 = vld [vmem:[#allocation3 + $0x109] ss:$8 sm:$0x7] }
 0x7d4   : > { %v2826_v48 = vld [vmem:[#allocation3 + $0x128] ss:$8 sm:$0x7]  ;;  %v2949_v46 = vld [vmem:[#allocation3 + $0x129] ss:$8 sm:$0x7] }
 0x7d5   : > { %v2958_v61 = vld [vmem:[#allocation3 + $0x14c] ss:$8 sm:$0x7] }
 0x7d6   : > { %2558 = vrot.lane.b32.xlu0 %v2556_v59, %s4330_s8  ;;  %2679 = vrot.lane.b32.xlu1 %v2677_v29, %s4330_s8  ;;  %v2592_v59 = vld [vmem:[#allocation3 + $0x149] ss:$8 sm:$0x7] }
 0x7d9   : > { %v3348_v55 = vld [vmem:[#allocation3 + $0x1e8] ss:$8 sm:$0x7] }
 0x7da   : > { %3284 = vrot.lane.b32.xlu0 %v3282_v16, %s4329_s10  ;;  %2801 = vrot.lane.b32.xlu1 %v2799_v32, %s4330_s8  ;;  %v3072_v16 = vld [vmem:[#allocation3 + $0x12a] ss:$8 sm:$0x7] }
 0x7db   : > { %v2713_v32 = vld [vmem:[#allocation3 + $0x14a] ss:$8 sm:$0x7] }
 0x7de   : > { %3047 = vrot.lane.b32.xlu0 %v3045_v42, %s4330_s8  ;;  %2072 = vrot.lane.b32.xlu1 %v2070_v17, %s4331_s29 }
 0x7e2   : > { %2198 = vrot.lane.b32.xlu1 %v2196_v34, %s4331_s29  ;;  %2082 = vrot.lane.b32.xlu0 %v2080_v6, %s4332_s13  ;;  %v3195_v6 = vld [vmem:[#allocation3 + $0x12b] ss:$8 sm:$0x7] }
 0x7e3   : > { %v2835_v34 = vld [vmem:[#allocation3 + $0x14b] ss:$8 sm:$0x7] }
 0x7e6   : > { %2321 = vrot.lane.b32.xlu1 %v2319_v18, %s4331_s29  ;;  %2567 = vrot.lane.b32.xlu0 %v2565_v10, %s4331_s29  ;;  %v3318_v10 = vld [vmem:[#allocation3 + $0x12c] ss:$8 sm:$0x7] }
 0x7ea   : > { %2444 = vrot.lane.b32.xlu1 %v2442_v13, %s4331_s29  ;;  %2688 = vrot.lane.b32.xlu0 %v2686_v62, %s4331_s29 }
 0x7ee   : > { %2924 = vrot.lane.b32.xlu1 %v2922_v35, %s4330_s8  ;;  %2810 = vrot.lane.b32.xlu0 %v2808_v57, %s4331_s29  ;;  %v3081_v35 = vld [vmem:[#allocation3 + $0x14d] ss:$8 sm:$0x7]  ;;  %v2469_v57 = vld [vmem:[#allocation3 + $0x148] ss:$8 sm:$0x7] }
 0x7f2   : > { %3170 = vrot.lane.b32.xlu1 %v3168_v52, %s4330_s8  ;;  %3056 = vrot.lane.b32.xlu0 %v3054_v40, %s4331_s29  ;;  %v2604_v52 = vld [vmem:[#allocation3 + $0x18f] ss:$8 sm:$0x7] }
 0x7f6   : > { %3293 = vrot.lane.b32.xlu1 %v3291_v43, %s4330_s8  ;;  %3179 = vrot.lane.b32.xlu0 %v3177_v19, %s4331_s29  ;;  %v3204_v19 = vld [vmem:[#allocation3 + $0x14e] ss:$8 sm:$0x7] }
 0x7fa   : > { %2933 = vrot.lane.b32.xlu1 %v2931_v0, %s4331_s29  ;;  %3302 = vrot.lane.b32.xlu0 %v3300_v53, %s4331_s29  ;;  %v2121_v0 = vld [vmem:[#allocation3 + $0x1ae] ss:$8 sm:$0x7]  ;;  %s3739_s29 = sshll.u32 %s4411_s28, 10 }
 0x7fe   : > { %2942 = vrot.lane.b32.xlu1 %v2940_v2, %s4332_s13  ;;  %2207 = vrot.lane.b32.xlu0 %v2205_v27, %s4332_s13  ;;  %v3327_v27 = vld [vmem:[#allocation3 + $0x14f] ss:$8 sm:$0x7] }
 0x802   : > { %3065 = vrot.lane.b32.xlu1 %v3063_v37, %s4332_s13  ;;  %2330 = vrot.lane.b32.xlu0 %v2328_v3, %s4332_s13 }
 0x806   : > { %2453 = vrot.lane.b32.xlu0 %v2451_v47, %s4332_s13  ;;  %2092 = vrot.lane.b32.xlu1 %v2090_v7, %s4333_s16  ;;  %v2112_v7 = vld [vmem:[#allocation3 + $0x18b] ss:$8 sm:$0x7]  ;;  %v2244_v47 = vld [vmem:[#allocation3 + $0x1af] ss:$8 sm:$0x7] }
 0x80a   : > { %2576 = vrot.lane.b32.xlu0 %v2574_v9, %s4332_s13  ;;  %2216 = vrot.lane.b32.xlu1 %v2214_v63, %s4333_s16 }
 0x80e   : > { %2697 = vrot.lane.b32.xlu0 %v2695_v56, %s4332_s13  ;;  %2339 = vrot.lane.b32.xlu1 %v2337_v25, %s4333_s16  ;;  %v2235_v56 = vld [vmem:[#allocation3 + $0x18c] ss:$8 sm:$0x7]  ;;  %v2847_v25 = vld [vmem:[#allocation3 + $0x1a9] ss:$8 sm:$0x7] }
 0x812   : > { %2819 = vrot.lane.b32.xlu0 %v2817_v26, %s4332_s13  ;;  %2462 = vrot.lane.b32.xlu1 %v2460_v12, %s4333_s16 }
 0x814   : > { %v5173_v39 = vpop.permute.xlu0 %2042 }
 0x816   : > { %2585 = vrot.lane.b32.xlu1 %v2583_v49, %s4333_s16  ;;  %2101 = vrot.lane.b32.xlu0 %v2099_v38, %s4334_s18  ;;  %v2358_v38 = vld [vmem:[#allocation3 + $0x18d] ss:$8 sm:$0x7]  ;;  %v2970_v49 = vld [vmem:[#allocation3 + $0x1aa] ss:$8 sm:$0x7] }
 0x818   : > { %v5177_v4 = vpop.permute.xlu0 %2171  ;;  %v5179_v1 = vpop.permute.xlu1 %2052 }
 0x81a   : > { %2706 = vrot.lane.b32.xlu1 %v2704_v5, %s4333_s16  ;;  %2225 = vrot.lane.b32.xlu0 %v2223_v28, %s4334_s18 }
 0x81c   : > { %v5183_v50 = vpop.permute.xlu0 %2294  ;;  %v5185_v20 = vpop.permute.xlu1 %2180 }
 0x81e   : > { %3188 = vrot.lane.b32.xlu1 %v3186_v41, %s4332_s13  ;;  %2348 = vrot.lane.b32.xlu0 %v2346_v14, %s4334_s18  ;;  %v2481_v41 = vld [vmem:[#allocation3 + $0x18e] ss:$8 sm:$0x7]  ;;  %v3093_v14 = vld [vmem:[#allocation3 + $0x1ab] ss:$8 sm:$0x7] }
 0x820   : > { %v5189_v15 = vpop.permute.xlu0 %2417  ;;  %v5191_v23 = vpop.permute.xlu1 %2661 }
 0x822   : > { %3311 = vrot.lane.b32.xlu1 %v3309_v58, %s4332_s13  ;;  %2828 = vrot.lane.b32.xlu0 %v2826_v48, %s4333_s16  ;;  %v2367_v58 = vld [vmem:[#allocation3 + $0x1c8] ss:$8 sm:$0x7] }
 0x824   : > { %v5195_v8 = vpop.permute.xlu0 %2540  ;;  %v5197_v29 = vpop.permute.xlu1 %3029 }
 0x826   : > { %2951 = vrot.lane.b32.xlu0 %v2949_v46, %s4333_s16  ;;  %2594 = vrot.lane.b32.xlu1 %v2592_v59, %s4334_s18  ;;  %v2725_v46 = vld [vmem:[#allocation3 + $0x1a8] ss:$8 sm:$0x7] }
 0x828   : > { %v5201_v33 = vpop.permute.xlu0 %2783  ;;  %v5203_v45 = vpop.permute.xlu1 %3152 }
 0x82a   : > { %3074 = vrot.lane.b32.xlu0 %v3072_v16, %s4333_s16  ;;  %2715 = vrot.lane.b32.xlu1 %v2713_v32, %s4334_s18 }
 0x82c   : > { %v5207_v42 = vpop.permute.xlu0 %2906  ;;  %v5209_v17 = vpop.permute.xlu1 %2303 }
 0x82e   : > { %3197 = vrot.lane.b32.xlu0 %v3195_v6, %s4333_s16  ;;  %2837 = vrot.lane.b32.xlu1 %v2835_v34, %s4334_s18  ;;  %v3216_v6 = vld [vmem:[#allocation3 + $0x1ac] ss:$8 sm:$0x7]  ;;  %v2490_v34 = vld [vmem:[#allocation3 + $0x1c9] ss:$8 sm:$0x7] }
 0x830   : > { %v5213_v18 = vpop.permute.xlu0 %3275  ;;  %v5215_v24 = vpop.permute.xlu1 %2426 }
 0x832   : > { %3320 = vrot.lane.b32.xlu0 %v3318_v10, %s4333_s16  ;;  %2960 = vrot.lane.b32.xlu1 %v2958_v61, %s4334_s18 }
 0x834   : > { %v5219_v13 = vpop.permute.xlu0 %2915  ;;  %v5221_v62 = vpop.permute.xlu1 %2549 }
 0x836   : > { %3083 = vrot.lane.b32.xlu1 %v3081_v35, %s4334_s18  ;;  %2471 = vrot.lane.b32.xlu0 %v2469_v57, %s4334_s18  ;;  %v3339_v35 = vld [vmem:[#allocation3 + $0x1ad] ss:$8 sm:$0x7]  ;;  %v2613_v57 = vld [vmem:[#allocation3 + $0x1ca] ss:$8 sm:$0x7] }
 0x838   : > { %v5225_v40 = vpop.permute.xlu0 %3038  ;;  %v5227_v43 = vpop.permute.xlu1 %2670 }
 0x83a   : > { %3206 = vrot.lane.b32.xlu1 %v3204_v19, %s4334_s18  ;;  %2606 = vrot.lane.b32.xlu0 %v2604_v52, %s4328_s26 }
 0x83c   : > { %v5231_v53 = vpop.permute.xlu1 %2792  ;;  %v5233_v2 = vpop.permute.xlu0 %2189 }
 0x83e   : > { %3329 = vrot.lane.b32.xlu1 %v3327_v27, %s4334_s18  ;;  %2123 = vrot.lane.b32.xlu0 %v2121_v0, %s4329_s10  ;;  %v2856_v0 = vld [vmem:[#allocation3 + $0x1cc] ss:$8 sm:$0x7]  ;;  %v2734_v27 = vld [vmem:[#allocation3 + $0x1cb] ss:$8 sm:$0x7] }
 0x840   : > { %v5237_v37 = vpop.permute.xlu1 %3161  ;;  %v5239_v3 = vpop.permute.xlu0 %2312 }
 0x842   : > { %2114 = vrot.lane.b32.xlu1 %v2112_v7, %s4328_s26  ;;  %2246 = vrot.lane.b32.xlu0 %v2244_v47, %s4329_s10  ;;  %v3154_v7 = vrot.slane %v5203_v45, 1 }
 0x844   : > { %v5243_v9 = vpop.permute.xlu0 %2435  ;;  %v5245_v63 = vpop.permute.xlu1 %2062 }
 0x846   : > { %2237 = vrot.lane.b32.xlu1 %v2235_v56, %s4328_s26  ;;  %2849 = vrot.lane.b32.xlu0 %v2847_v25, %s4328_s26  ;;  %v2979_v25 = vld [vmem:[#allocation3 + $0x1cd] ss:$8 sm:$0x7] }
 0x848   : > { %v5249_v26 = vpop.permute.xlu0 %2558  ;;  %v5251_v12 = vpop.permute.xlu1 %2679 }
 0x84a   : > { %2360 = vrot.lane.b32.xlu1 %v2358_v38, %s4328_s26  ;;  %2972 = vrot.lane.b32.xlu0 %v2970_v49, %s4328_s26  ;;  %v3163_v38 = vrot.slane %v5237_v37, 1  ;;  %v3102_v49 = vld [vmem:[#allocation3 + $0x1ce] ss:$8 sm:$0x7] }
 0x84c   : > { %v5255_v5 = vpop.permute.xlu0 %3284  ;;  %v5257_v28 = vpop.permute.xlu1 %2801 }
 0x84e   : > { %2483 = vrot.lane.b32.xlu1 %v2481_v41, %s4328_s26  ;;  %3095 = vrot.lane.b32.xlu0 %v3093_v14, %s4328_s26  ;;  %v3155_v41 = vsel %vm2045_vm4, %v5203_v45, %v3154_v7  ;;  %v2908_v14 = vrot.slane %v5207_v42, 1 }
 0x850   : > { %v5261_v48 = vpop.permute.xlu0 %3047  ;;  %v5263_v59 = vpop.permute.xlu1 %2072  ;;  %v2909_v45 = vsel %vm2045_vm4, %v5207_v42, %v2908_v14 }
 0x852   : > { %2727 = vrot.lane.b32.xlu1 %v2725_v46, %s4328_s26  ;;  %2369 = vrot.lane.b32.xlu0 %v2367_v58, %s4329_s10  ;;  %v3277_v58 = vrot.slane %v5213_v18, 1  ;;  %v3147_v46 = vld [vmem:[#allocation3 + $0x21] ss:$8 sm:$0x7] }
 0x854   : > { %v5267_v16 = vpop.permute.xlu1 %2198  ;;  %v5269_v32 = vpop.permute.xlu0 %2082  ;;  %v3278_v7 = vsel %vm2045_vm4, %v5213_v18, %v3277_v58 }
 0x856   : > { %3218 = vrot.lane.b32.xlu1 %v3216_v6, %s4328_s26  ;;  %2492 = vrot.lane.b32.xlu0 %v2490_v34, %s4329_s10 }
 0x858   : > { %v5273_v10 = vpop.permute.xlu1 %2321  ;;  %v5275_v61 = vpop.permute.xlu0 %2567 }
 0x85a   : > { %3341 = vrot.lane.b32.xlu1 %v3339_v35, %s4328_s26  ;;  %2615 = vrot.lane.b32.xlu0 %v2613_v57, %s4329_s10  ;;  %v2917_v35 = vrot.slane %v5219_v13, 1  ;;  %v3164_v57 = vsel %vm2055_vm5, %v5237_v37, %v3163_v38  ;;  %v3031_v37 = vrot.slane %v5197_v29, 1  ;;  %v2901_v38 = vld [vmem:[#allocation3 + $0x7] ss:$8 sm:$0x7]  ;;  %s4342_s26 = smov 77  }
 0x85b   : > { %v2911_v18 = vadd.f32 %v2909_v45, %v2901_v38 }
 0x85c   : > { %v5279_v52 = vpop.permute.xlu1 %2444  ;;  %v5281_v19 = vpop.permute.xlu0 %2688  ;;  %v3032_v45 = vsel %vm2045_vm4, %v5197_v29, %v3031_v37 }
 0x85e   : > { %2858 = vrot.lane.b32.xlu1 %v2856_v0, %s4329_s10  ;;  %2736 = vrot.lane.b32.xlu0 %v2734_v27, %s4329_s10  ;;  %v3286_v0 = vrot.slane %v5255_v5, 1 }
 0x860   : > { %v2925_v47 = vpop.permute.xlu1 %2924  ;;  %v5286_v56 = vpop.permute.xlu0 %2810  ;;  %v3287_v42 = vsel %vm2055_vm5, %v5255_v5, %v3286_v0 }
 0x861   : > { %v2926_v11 = vrot.slane %v2925_v47, 1 }
 0x862   : > { %2981 = vrot.lane.b32.xlu1 %v2979_v25, %s4329_s10  ;;  %3104 = vrot.lane.b32.xlu0 %v3102_v49, %s4329_s10  ;;  %v3225_v25 = vld [vmem:[#allocation3 + $0x1cf] ss:$8 sm:$0x7]  ;;  %v3157_v49 = vadd.f32 %v3155_v41, %v3147_v46  ;;  %v3270_v41 = vld [vmem:[#allocation3 + $0x22] ss:$8 sm:$0x7]  ;;  %v2918_v46 = vsel %vm2055_vm5, %v5219_v13, %v2917_v35 }
 0x863   : > { %v3280_v58 = vadd.f32 %v3278_v7, %v3270_v41  ;;  %v2920_v13 = vadd.f32 %v2918_v46, %v2911_v18 }
 0x864   : > { %v3171_v6 = vpop.permute.xlu1 %3170  ;;  %v3057_v34 = vpop.permute.xlu0 %3056  ;;  %v3166_v44 = vadd.f32 %v3164_v57, %v3157_v49  ;;  %v2927_v57 = vsel %vm5956_vm6, %v2925_v47, %v2926_v11  ;;  %v3024_v11 = vld [vmem:[#allocation3 + $0x20] ss:$8 sm:$0x7] }
 0x865   : > { %v3172_v27 = vrot.slane %v3171_v6, 1  ;;  %v3289_v35 = vadd.f32 %v3287_v42, %v3280_v58  ;;  %v2929_v7 = vadd.f32 %v2927_v57, %v2920_v13  ;;  %v3034_v41 = vadd.f32 %v3032_v45, %v3024_v11 }
 0x866   : > { %3227 = vrot.lane.b32.xlu0 %v3225_v25, %s4329_s10 }
 0x867   : > { %v3173_v60 = vsel %vm5956_vm6, %v3171_v6, %v3172_v27  ;;  %v3040_v27 = vrot.slane %v5225_v40, 1 }
 0x868   : > { %v3294_v22 = vpop.permute.xlu1 %3293  ;;  %v3180_v21 = vpop.permute.xlu0 %3179  ;;  %v3175_v6 = vadd.f32 %v3173_v60, %v3166_v44  ;;  %v3049_v44 = vrot.slane %v5261_v48, 1 }
 0x869   : > { %v3295_v14 = vrot.slane %v3294_v22, 1  ;;  %v3181_v25 = vrot.slane %v3180_v21, 1 }
 0x86a   : > { %3350 = vrot.lane.b32.xlu0 %v3348_v55, %s4329_s10  ;;  %s4343_s10 = smov 76  }
 0x86b   : > { %v3296_v49 = vsel %vm5956_vm6, %v3294_v22, %v3295_v14  ;;  %v3182_v54 = vsel %vm2075_vm7, %v3180_v21, %v3181_v25  ;;  %v3041_v22 = vsel %vm2055_vm5, %v5225_v40, %v3040_v27  ;;  %v3058_v21 = vrot.slane %v3057_v34, 1 }
 0x86c   : > { %v5315_v51 = vadd.f32 %v3182_v54, %v3175_v6  ;;  %v2934_v5 = vpop.permute.xlu1 %2933  ;;  %v3303_v0 = vpop.permute.xlu0 %3302  ;;  %v3298_v38 = vadd.f32 %v3296_v49, %v3289_v35  ;;  %v2542_v14 = vrot.slane %v5195_v8, 1  ;;  %v3050_v25 = vsel %vm5956_vm6, %v5261_v48, %v3049_v44 }
 0x86d   : > { %v2935_v55 = vrot.slane %v2934_v5, 1  ;;  %v3304_v60 = vrot.slane %v3303_v0, 1  ;;  %v3043_v58 = vadd.f32 %v3041_v22, %v3034_v41  ;;  %v2551_v40 = vrot.slane %v5221_v62, 1 }
 0x86e   : > { %v3059_v6 = vsel %vm2075_vm7, %v3057_v34, %v3058_v21  ;;  %v2543_v48 = vsel %vm2045_vm4, %v5195_v8, %v2542_v14  ;;  %v2681_v41 = vrot.slane %v5251_v12, 1 }
 0x86f   : > { %v2936_v47 = vsel %vm2075_vm7, %v2934_v5, %v2935_v55  ;;  %v3305_v54 = vsel %vm2075_vm7, %v3303_v0, %v3304_v60  ;;  %v3052_v57 = vadd.f32 %v3050_v25, %v3043_v58  ;;  %v2663_v5 = vrot.slane %v5191_v23, 1  ;;  %v2535_v55 = vld [vmem:[#allocation3 + $0x4] ss:$8 sm:$0x7] }
 0x870   : > { %v2938_v46 = vadd.f32 %v2936_v47, %v2929_v7  ;;  %v5324_v42 = vadd.f32 %v3305_v54, %v3298_v38  ;;  %v2943_v29 = vpop.permute.xlu1 %2942  ;;  %v5326_v37 = vpop.permute.xlu0 %2207  ;;  %v2560_v0 = vrot.slane %v5249_v26, 1  ;;  %v2552_v34 = vsel %vm2055_vm5, %v5221_v62, %v2551_v40 }
 0x871   : > { %v2944_v18 = vrot.slane %v2943_v29, 7  ;;  %v3061_v44 = vadd.f32 %v3059_v6, %v3052_v57  ;;  %v2672_v60 = vrot.slane %v5227_v43, 1  ;;  %v2569_v7 = vrot.slane %v5275_v61, 1 }
 0x872   : > { %v2545_v11 = vadd.f32 %v2543_v48, %v2535_v55  ;;  %v2664_v47 = vsel %vm2045_vm4, %v5191_v23, %v2663_v5  ;;  %v2785_v54 = vrot.slane %v5201_v33, 1  ;;  %v2561_v62 = vsel %vm5956_vm6, %v5249_v26, %v2560_v0  ;;  %v2778_v0 = vld [vmem:[#allocation3 + $0x6] ss:$8 sm:$0x7] }
 0x873   : > { %v2945_v27 = vsel %vm2085_vm8, %v2944_v18, %v2943_v29  ;;  %v2656_v29 = vld [vmem:[#allocation3 + $0x5] ss:$8 sm:$0x7]  ;;  %v2673_v14 = vsel %vm2055_vm5, %v5227_v43, %v2672_v60  ;;  %v2794_v25 = vrot.slane %v5231_v53, 1  ;;  %v2570_v18 = vsel %vm2075_vm7, %v5275_v61, %v2569_v7 }
 0x874   : > { %v5334_v49 = vadd.f32 %v2945_v27, %v2938_v46  ;;  %v3066_v13 = vpop.permute.xlu1 %3065  ;;  %v5336_v35 = vpop.permute.xlu0 %2330  ;;  %v2554_v46 = vadd.f32 %v2552_v34, %v2545_v11  ;;  %v2690_v58 = vrot.slane %v5281_v19, 1  ;;  %v2666_v23 = vadd.f32 %v2664_v47, %v2656_v29 }
 0x875   : > { %v3067_v45 = vrot.slane %v3066_v13, 7  ;;  %v2786_v26 = vsel %vm2045_vm4, %v5201_v33, %v2785_v54  ;;  %v2682_v57 = vsel %vm5956_vm6, %v5251_v12, %v2681_v41  ;;  %v2803_v43 = vrot.slane %v5257_v28, 1 }
 0x876   : > { %v2563_v40 = vadd.f32 %v2561_v62, %v2554_v46  ;;  %v2675_v5 = vadd.f32 %v2673_v14, %v2666_v23  ;;  %v2795_v61 = vsel %vm2055_vm5, %v5231_v53, %v2794_v25  ;;  %v2788_v33 = vadd.f32 %v2786_v26, %v2778_v0 }
 0x877   : > { %v3068_v38 = vsel %vm2085_vm8, %v3067_v45, %v3066_v13  ;;  %v2691_v45 = vsel %vm2075_vm7, %v5281_v19, %v2690_v58 }
 0x878   : > { %v5347_v22 = vadd.f32 %v3068_v38, %v3061_v44  ;;  %v5349_v21 = vpop.permute.xlu0 %2453  ;;  %v5351_v8 = vpop.permute.xlu1 %2092  ;;  %v2572_v48 = vadd.f32 %v2570_v18, %v2563_v40  ;;  %v2812_v44 = vrot.slane %v5286_v56, 1  ;;  %v2684_v34 = vadd.f32 %v2682_v57, %v2675_v5 }
 0x879   : > { %v2804_v38 = vsel %vm5956_vm6, %v5257_v28, %v2803_v43  ;;  %v2797_v47 = vadd.f32 %v2795_v61, %v2788_v33 }
 0x87a   : > { %v2693_v53 = vadd.f32 %v2691_v45, %v2684_v34  ;;  %v2813_v19 = vsel %vm2075_vm7, %v5286_v56, %v2812_v44 }
 0x87b   : > { %v2806_v62 = vadd.f32 %v2804_v38, %v2797_v47  ;;  %v2044_v38 = vrot.slane %v5173_v39, 1 }
 0x87c   : > { %v2577_v6 = vpop.permute.xlu0 %2576  ;;  %v5365_v27 = vpop.permute.xlu1 %2216 }
 0x87d   : > { %v2578_v13 = vrot.slane %v2577_v6, 1  ;;  %v2815_v25 = vadd.f32 %v2813_v19, %v2806_v62  ;;  %v2046_v62 = vsel %vm2045_vm4, %v5173_v39, %v2044_v38 }
 0x87f   : > { %v2579_v55 = vsel %vm2085_vm8, %v2577_v6, %v2578_v13 }
 0x880   : > { %v5378_v60 = vadd.f32 %v2579_v55, %v2572_v48  ;;  %v2698_v12 = vpop.permute.xlu0 %2697  ;;  %v5380_v7 = vpop.permute.xlu1 %2339 }
 0x881   : > { %v2699_v11 = vrot.slane %v2698_v12, 7 }
 0x883   : > { %v2700_v54 = vsel %vm2085_vm8, %v2699_v11, %v2698_v12 }
 0x884   : > { %v5387_v41 = vadd.f32 %v2700_v54, %v2693_v53  ;;  %v2820_v46 = vpop.permute.xlu0 %2819  ;;  %v5389_v29 = vpop.permute.xlu1 %2462  ;;  %v2173_v54 = vrot.slane %v5177_v4, 1 }
 0x885   : > { %v2821_v14 = vrot.slane %v2820_v46, 7 }
 0x886   : > { %v2174_v39 = vsel %vm2045_vm4, %v5177_v4, %v2173_v54 }
 0x887   : > { %v2822_v18 = vsel %vm2085_vm8, %v2821_v14, %v2820_v46  ;;  %v2064_v46 = vrot.slane %v5245_v63, 1 }
 0x888   : > { %v5392_v58 = vadd.f32 %v2822_v18, %v2815_v25  ;;  %v5394_v28 = vpop.permute.xlu1 %2585  ;;  %v5396_v23 = vpop.permute.xlu0 %2101 }
 0x88c   : > { %v5398_v40 = vpop.permute.xlu1 %2706  ;;  %v5400_v56 = vpop.permute.xlu0 %2225 }
 0x890   : > { %v3189_v6 = vpop.permute.xlu1 %3188  ;;  %v5402_v26 = vpop.permute.xlu0 %2348 }
 0x891   : > { %v3190_v57 = vrot.slane %v3189_v6, 7 }
 0x893   : > { %v3191_v43 = vsel %vm2085_vm8, %v3190_v57, %v3189_v6  ;;  %v2037_v6 = vld [vmem:[#allocation3] ss:$8 sm:$0x7] }
 0x894   : > { %v3193_v13 = vadd.f32 %v3191_v43, %v5315_v51  ;;  %v3312_v5 = vpop.permute.xlu1 %3311  ;;  %v5406_v48 = vpop.permute.xlu0 %2828  ;;  %v2182_v43 = vrot.slane %v5185_v20, 1 }
 0x895   : > { %v3313_v0 = vrot.slane %v3312_v5, 7 }
 0x896   : > { %v2183_v4 = vsel %vm2055_vm5, %v5185_v20, %v2182_v43  ;;  %v2296_v20 = vrot.slane %v5183_v50, 1 }
 0x897   : > { %v3314_v61 = vsel %vm2085_vm8, %v3313_v0, %v3312_v5  ;;  %v2074_v5 = vrot.slane %v5263_v59, 1 }
 0x898   : > { %v3316_v45 = vadd.f32 %v3314_v61, %v5324_v42  ;;  %v5410_v44 = vpop.permute.xlu0 %2951  ;;  %v5412_v55 = vpop.permute.xlu1 %2594  ;;  %v2054_v42 = vrot.slane %v5179_v1, 1  ;;  %v2048_v61 = vadd.f32 %v2046_v62, %v2037_v6  ;;  %v2094_v62 = vrot.slane %v5351_v8, 7 }
 0x899   : > { %v2076_v54 = vsel %vm2075_vm7, %v5263_v59, %v2074_v5  ;;  %v2209_v6 = vrot.slane %v5326_v37, 1 }
 0x89a   : > { %v2056_v57 = vsel %vm2055_vm5, %v5179_v1, %v2054_v42 }
 0x89c   : > { %v3075_v33 = vpop.permute.xlu0 %3074  ;;  %v5414_v34 = vpop.permute.xlu1 %2715 }
 0x89d   : > { %v3076_v12 = vrot.slane %v3075_v33, 7 }
 0x89f   : > { %v3077_v51 = vsel %vm432_vm0, %v3076_v12, %v3075_v33  ;;  %v2191_v33 = vrot.slane %v5233_v2, 1  ;;  %v2084_v12 = vrot.slane %v5269_v32, 1 }
 0x8a0   : > { %v5419_v11 = vadd.f32 %v3077_v51, %v5347_v22  ;;  %v3198_v47 = vpop.permute.xlu0 %3197  ;;  %v5421_v53 = vpop.permute.xlu1 %2837  ;;  %v2058_v51 = vadd.f32 %v2056_v57, %v2048_v61  ;;  %v2103_v57 = vrot.slane %v5396_v23, 7  ;;  %v2419_v61 = vrot.slane %v5189_v15, 1 }
 0x8a1   : > { %v3199_v19 = vrot.slane %v3198_v47, 7 }
 0x8a3   : > { %v3200_v14 = vsel %vm432_vm0, %v3199_v19, %v3198_v47  ;;  %v2166_v19 = vld [vmem:[#allocation3 + $0x1] ss:$8 sm:$0x7] }
 0x8a4   : > { %v5429_v25 = vadd.f32 %v3200_v14, %v3193_v13  ;;  %v3321_v18 = vpop.permute.xlu0 %3320  ;;  %v5431_v22 = vpop.permute.xlu1 %2960  ;;  %v2066_v13 = vsel %vm5956_vm6, %v5245_v63, %v2064_v46  ;;  %v2200_v63 = vrot.slane %v5267_v16, 1  ;;  %v2176_v46 = vadd.f32 %v2174_v39, %v2166_v19 }
 0x8a5   : > { %v3322_v0 = vrot.slane %v3321_v18, 7  ;;  %v2068_v14 = vadd.f32 %v2066_v13, %v2058_v51  ;;  %v2218_v39 = vrot.slane %v5365_v27, 7  ;;  %v2210_v51 = vsel %vm2085_vm8, %v5326_v37, %v2209_v6 }
 0x8a6   : > { %v2185_v43 = vadd.f32 %v2183_v4, %v2176_v46  ;;  %v2105_v19 = vsel %vm2104_vm9, %v2103_v57, %v5396_v23  ;;  %v2227_v4 = vrot.slane %v5400_v56, 7  ;;  %v5485_v46 = vsub.s32 1, %v4997_v30 }
 0x8a7   : > { %v3323_v38 = vsel %vm432_vm0, %v3322_v0, %v3321_v18  ;;  %v2086_v18 = vsel %vm2085_vm8, %v5269_v32, %v2084_v12  ;;  %v2078_v59 = vadd.f32 %v2076_v54, %v2068_v14  ;;  %v2095_v32 = vsel %vm432_vm0, %v2094_v62, %v5351_v8 }
 0x8a8   : > { %v5444_v1 = vadd.f32 %v3323_v38, %v3316_v45  ;;  %v5446_v47 = vpop.permute.xlu1 %3083  ;;  %v5448_v42 = vpop.permute.xlu0 %2471  ;;  %v2192_v45 = vsel %vm5956_vm6, %v5233_v2, %v2191_v33  ;;  %v2201_v2 = vsel %vm2075_vm7, %v5267_v16, %v2200_v63  ;;  %v2305_v33 = vrot.slane %v5209_v17, 1 }
 0x8a9   : > { %v2194_v13 = vadd.f32 %v2192_v45, %v2185_v43  ;;  %v2088_v12 = vadd.f32 %v2086_v18, %v2078_v59  ;;  %v2428_v38 = vrot.slane %v5215_v24, 1  ;;  %v2297_v16 = vsel %vm2045_vm4, %v5183_v50, %v2296_v20  ;;  %v2289_v45 = vld [vmem:[#allocation3 + $0x2] ss:$8 sm:$0x7] }
 0x8aa   : > { %v2420_v14 = vsel %vm2045_vm4, %v5189_v15, %v2419_v61  ;;  %v2314_v37 = vrot.slane %v5239_v3, 1  ;;  %v2219_v23 = vsel %vm432_vm0, %v2218_v39, %v5365_v27  ;;  %v2306_v50 = vsel %vm2055_vm5, %v5209_v17, %v2305_v33  ;;  %v2412_v43 = vld [vmem:[#allocation3 + $0x3] ss:$8 sm:$0x7] }
 0x8ab   : > { %v2203_v8 = vadd.f32 %v2201_v2, %v2194_v13  ;;  %v2097_v54 = vadd.f32 %v2095_v32, %v2088_v12  ;;  %v2437_v18 = vrot.slane %v5243_v9, 1  ;;  %v2299_v20 = vadd.f32 %v2297_v16, %v2289_v45 }
 0x8ac   : > { %v5463_v5 = vpop.permute.xlu1 %3206  ;;  %v5465_v0 = vpop.permute.xlu0 %2606  ;;  %v2429_v59 = vsel %vm2055_vm5, %v5215_v24, %v2428_v38  ;;  %v2323_v15 = vrot.slane %v5273_v10, 1  ;;  %v2228_v61 = vsel %vm2104_vm9, %v2227_v4, %v5400_v56  ;;  %v5501_v27 = vsub.s32 2, %v4997_v30  ;;  %v2109_v24 = vld [vmem:[#allocation3 + $0x168] ss:$8 sm:$0x7] }
 0x8ad   : > { %v2212_v6 = vadd.f32 %v2210_v51, %v2203_v8  ;;  %v2107_v57 = vadd.f32 %v2105_v19, %v2097_v54  ;;  %v2422_v2 = vadd.f32 %v2420_v14, %v2412_v43  ;;  %v2332_v17 = vrot.slane %v5336_v35, 1 }
 0x8ae   : > { %v2308_v13 = vadd.f32 %v2306_v50, %v2299_v20  ;;  %v2315_v12 = vsel %vm5956_vm6, %v5239_v3, %v2314_v37  ;;  %v2438_v56 = vsel %vm5956_vm6, %v5243_v9, %v2437_v18  ;;  %v2324_v8 = vsel %vm2075_vm7, %v5273_v10, %v2323_v15  ;;  %v2232_v20 = vld [vmem:[#allocation3 + $0x169] ss:$8 sm:$0x7] }
 0x8af   : > { %v2221_v32 = vadd.f32 %v2219_v23, %v2212_v6  ;;  %v2431_v19 = vadd.f32 %v2429_v59, %v2422_v2  ;;  %v2110_v16 = vadd.f32 %v2109_v24, %v2107_v57  ;;  %v2446_v54 = vrot.slane %v5279_v52, 1 }
 0x8b0   : > { %v5482_v63 = vpop.permute.xlu1 %3329  ;;  %v2124_v62 = vpop.permute.xlu0 %2123  ;;  %v2341_v14 = vrot.slane %v5380_v7, 7  ;;  %v2317_v45 = vadd.f32 %v2315_v12, %v2308_v13  ;;  %v2333_v3 = vsel %vm2085_vm8, %v5336_v35, %v2332_v17  ;;  %v2455_v37 = vrot.slane %v5349_v21, 1 }
 0x8b1   : > { %v2125_v51 = vrot.slane %v2124_v62, 1  ;;  %v2230_v4 = vadd.f32 %v2228_v61, %v2221_v32  ;;  %v2350_v18 = vrot.slane %v5402_v26, 7  ;;  %v2440_v59 = vadd.f32 %v2438_v56, %v2431_v19 }
 0x8b2   : > { %v2326_v15 = vadd.f32 %v2324_v8, %v2317_v45  ;;  %v2447_v35 = vsel %vm2075_vm7, %v5279_v52, %v2446_v54  ;;  %v2342_v17 = vsel %vm432_vm0, %v2341_v14, %v5380_v7  ;;  %v2464_v32 = vrot.slane %v5389_v29, 7 }
 0x8b3   : > { %v2126_v10 = vsel %vm2055_vm5, %v2124_v62, %v2125_v51  ;;  %v2233_v2 = vadd.f32 %v2232_v20, %v2230_v4  ;;  %v2456_v19 = vsel %vm2085_vm8, %v5349_v21, %v2455_v37  ;;  %v2351_v52 = vsel %vm2104_vm9, %v2350_v18, %v5402_v26 }
 0x8b4   : > { %v2115_v39 = vpop.permute.xlu1 %2114  ;;  %v2247_v33 = vpop.permute.xlu0 %2246  ;;  %v2335_v13 = vadd.f32 %v2333_v3, %v2326_v15  ;;  %v2473_v7 = vrot.slane %v5448_v42, 7  ;;  %v2449_v4 = vadd.f32 %v2447_v35, %v2440_v59  ;;  %v2465_v54 = vsel %vm432_vm0, %v2464_v32, %v5389_v29 }
 0x8b5   : > { %v2116_v38 = vrot.slane %v2115_v39, 1  ;;  %v2248_v57 = vrot.slane %v2247_v33, 1  ;;  %v2587_v14 = vrot.slane %v5394_v28, 7  ;;  %v2708_v29 = vrot.slane %v5398_v40, 7 }
 0x8b6   : > { %v2458_v21 = vadd.f32 %v2456_v19, %v2449_v4 }
 0x8b7   : > { %v2117_v23 = vsel %vm2045_vm4, %v2115_v39, %v2116_v38  ;;  %v2249_v56 = vsel %vm2055_vm5, %v2247_v33, %v2248_v57  ;;  %v2355_v57 = vld [vmem:[#allocation3 + $0x16a] ss:$8 sm:$0x7] }
 0x8b8   : > { %v2119_v50 = vadd.f32 %v2117_v23, %v2110_v16  ;;  %v2238_v6 = vpop.permute.xlu1 %2237  ;;  %v5516_v9 = vpop.permute.xlu0 %2849  ;;  %v2344_v16 = vadd.f32 %v2342_v17, %v2335_v13  ;;  %v2467_v18 = vadd.f32 %v2465_v54, %v2458_v21  ;;  %v2717_v17 = vrot.slane %v5414_v34, 7 }
 0x8b9   : > { %v2239_v43 = vrot.slane %v2238_v6, 1  ;;  %v2830_v13 = vrot.slane %v5406_v48, 7 }
 0x8ba   : > { %v2128_v61 = vadd.f32 %v2126_v10, %v2119_v50  ;;  %v2353_v45 = vadd.f32 %v2351_v52, %v2344_v16  ;;  %v2596_v50 = vrot.slane %v5412_v55, 7  ;;  %v2588_v10 = vsel %vm432_vm0, %v2587_v14, %v5394_v28 }
 0x8bb   : > { %v2240_v39 = vsel %vm2045_vm4, %v2238_v6, %v2239_v43  ;;  %v2474_v6 = vsel %vm2104_vm9, %v2473_v7, %v5448_v42  ;;  %v2709_v28 = vsel %vm432_vm0, %v2708_v29, %v5398_v40  ;;  %v2718_v16 = vsel %vm2104_vm9, %v2717_v17, %v5414_v34 }
 0x8bc   : > { %v2242_v12 = vadd.f32 %v2240_v39, %v2233_v2  ;;  %v2361_v62 = vpop.permute.xlu1 %2360  ;;  %v5526_v51 = vpop.permute.xlu0 %2972  ;;  %v2133_v24 = vrot.slane %v2128_v61, %v5000_v36  ;;  %v2137_v38 = vrot.slane %v2128_v61, %v5485_v46  ;;  %v2141_v37 = vrot.slane %v2128_v61, %v5501_v27 }
 0x8bd   : > { %v2362_v23 = vrot.slane %v2361_v62, 1  ;;  %v2476_v59 = vadd.f32 %v2474_v6, %v2467_v18  ;;  %v2356_v15 = vadd.f32 %v2355_v57, %v2353_v45  ;;  %v2597_v35 = vsel %vm2104_vm9, %v2596_v50, %v5412_v55 }
 0x8be   : > { %v2251_v8 = vadd.f32 %v2249_v56, %v2242_v12  ;;  %2142 = vrot.lane.b32.xlu1 %v2133_v24, %s4335_s21  ;;  %2144 = vrot.lane.b32.xlu0 %v2137_v38, %s4335_s21  ;;  %v2590_v39 = vadd.f32 %v2588_v10, %v5378_v60  ;;  %v2478_v24 = vld [vmem:[#allocation3 + $0x16b] ss:$8 sm:$0x7]  ;;  %v2711_v4 = vadd.f32 %v2709_v28, %v5387_v41  ;;  %v3208_v10 = vrot.slane %v5463_v5, 7 }
 0x8bf   : > { %v2363_v20 = vsel %vm2045_vm4, %v2361_v62, %v2362_v23  ;;  %v2608_v62 = vrot.slane %v5465_v0, 1  ;;  %v2479_v52 = vadd.f32 %v2478_v24, %v2476_v59  ;;  %v2831_v14 = vsel %vm432_vm0, %v2830_v13, %v5406_v48 }
 0x8c0   : > { %v2484_v3 = vpop.permute.xlu1 %2483  ;;  %v5539_v26 = vpop.permute.xlu0 %3095  ;;  %v2260_v33 = vrot.slane %v2251_v8, %v5485_v46  ;;  %v2256_v42 = vrot.slane %v2251_v8, %v5000_v36  ;;  %v2365_v12 = vadd.f32 %v2363_v20, %v2356_v15  ;;  %v2599_v19 = vadd.f32 %v2597_v35, %v2590_v39 }
 0x8c1   : > { %v2485_v43 = vrot.slane %v2484_v3, 1  ;;  %v2264_v40 = vrot.slane %v2251_v8, %v5501_v27  ;;  %v2953_v23 = vrot.slane %v5410_v44, 7  ;;  %v2609_v41 = vsel %vm2045_vm4, %v5465_v0, %v2608_v62 }
 0x8c2   : > { %2146 = vrot.lane.b32.xlu1 %v2141_v37, %s4335_s21  ;;  %2267 = vrot.lane.b32.xlu0 %v2260_v33, %s4336_s22  ;;  %v2601_v37 = vld [vmem:[#allocation3 + $0x16c] ss:$8 sm:$0x7]  ;;  %v2720_v33 = vadd.f32 %v2718_v16, %v2711_v4  ;;  %v2962_v20 = vrot.slane %v5431_v22, 7  ;;  %v2833_v59 = vadd.f32 %v2831_v14, %v5392_v58  ;;  %v3209_v58 = vsel %vm2104_vm9, %v3208_v10, %v5463_v5  ;;  %s5684_s21 = scalar_lea.hbm %s5926_s5, %s3739_s29 }
 0x8c3   : > { %v2486_v38 = vsel %vm2045_vm4, %v2484_v3, %v2485_v43  ;;  %v2839_v3 = vrot.slane %v5421_v53, 7  ;;  %v2602_v50 = vadd.f32 %v2601_v37, %v2599_v19  ;;  %v2954_v17 = vsel %vm432_vm0, %v2953_v23, %v5410_v44  ;;  %v2844_v14 = vld [vmem:[#allocation3 + $0x16e] ss:$8 sm:$0x7] }
 0x8c4   : > { %v2728_v61 = vpop.permute.xlu1 %2727  ;;  %v2370_v2 = vpop.permute.xlu0 %2369  ;;  %v2488_v21 = vadd.f32 %v2486_v38, %v2479_v52  ;;  %v2963_v44 = vsel %vm2104_vm9, %v2962_v20, %v5431_v22  ;;  %v2956_v19 = vadd.f32 %v2954_v17, %v5334_v49  ;;  %v3213_v37 = vld [vmem:[#allocation3 + $0x189] ss:$8 sm:$0x7] }
 0x8c5   : > { %v2371_v32 = vrot.slane %v2370_v2, 1  ;;  %v2729_v8 = vrot.slane %v2728_v61, 1  ;;  %v2611_v0 = vadd.f32 %v2609_v41, %v2602_v50  ;;  %v2840_v15 = vsel %vm2104_vm9, %v2839_v3, %v5421_v53  ;;  %v2967_v50 = vld [vmem:[#allocation3 + $0x16f] ss:$8 sm:$0x7] }
 0x8c6   : > { %2265 = vrot.lane.b32.xlu1 %v2256_v42, %s4336_s22  ;;  %v3331_v53 = vrot.slane %v5482_v63, 7  ;;  %v2842_v24 = vadd.f32 %v2840_v15, %v2833_v59  ;;  %v3336_v15 = vld [vmem:[#allocation3 + $0x18a] ss:$8 sm:$0x7] }
 0x8c7   : > { %v2372_v55 = vsel %vm2055_vm5, %v2370_v2, %v2371_v32  ;;  %v2722_v2 = vld [vmem:[#allocation3 + $0x16d] ss:$8 sm:$0x7]  ;;  %v2730_v42 = vsel %vm2045_vm4, %v2728_v61, %v2729_v8  ;;  %v2851_v61 = vrot.slane %v5516_v9, 1 }
 0x8c8   : > { %v2374_v7 = vadd.f32 %v2372_v55, %v2365_v12  ;;  %v5563_v56 = vpop.permute.xlu1 %3218  ;;  %v2493_v60 = vpop.permute.xlu0 %2492  ;;  %v2723_v32 = vadd.f32 %v2722_v2, %v2720_v33  ;;  %v3332_v49 = vsel %vm2104_vm9, %v3331_v53, %v5482_v63 }
 0x8c9   : > { %v2494_v54 = vrot.slane %v2493_v60, 1  ;;  %v3220_v52 = vrot.slane %v5563_v56, 1  ;;  %v2852_v23 = vsel %vm2045_vm4, %v5516_v9, %v2851_v61  ;;  %v3334_v9 = vadd.f32 %v3332_v49, %v5444_v1 }
 0x8ca   : > { %v2383_v45 = vrot.slane %v2374_v7, %v5485_v46  ;;  %2269 = vrot.lane.b32.xlu1 %v2264_v40, %s4336_s22  ;;  %v2379_v48 = vrot.slane %v2374_v7, %v5000_v36  ;;  %v2387_v39 = vrot.slane %v2374_v7, %v5501_v27  ;;  %v2732_v38 = vadd.f32 %v2730_v42, %v2723_v32  ;;  %s3455_s22 = sshll.u32 %s5026_s17, 4  ;;  %s5687_s22 = int_to_ptr.vmem [resolvable:$true] %s3455_s22 }
 0x8cb   : > { %v2495_v34 = vsel %vm2055_vm5, %v2493_v60, %v2494_v54  ;;  %v3211_v60 = vadd.f32 %v3209_v58, %v5429_v25  ;;  %v2965_v54 = vadd.f32 %v2963_v44, %v2956_v19  ;;  %v2974_v25 = vrot.slane %v5526_v51, 1 }
 0x8cc   : > { %v5579_v6 = vadd.f32 %v2495_v34, %v2488_v21  ;;  %v5581_v18 = vpop.permute.xlu1 %3341  ;;  %v2616_v29 = vpop.permute.xlu0 %2615  ;;  %2390 = vrot.lane.b32.xlu0 %v2383_v45, %s4337_s23  ;;  %v3085_v21 = vrot.slane %v5446_v47, 7  ;;  %v2845_v45 = vadd.f32 %v2844_v14, %v2842_v24  ;;  %v3221_v41 = vsel %vm2045_vm4, %v5563_v56, %v3220_v52 }
 0x8cd   : > { %v2617_v57 = vrot.slane %v2616_v29, 1  ;;  %v3343_v63 = vrot.slane %v5581_v18, 1  ;;  %v2975_v56 = vsel %vm2045_vm4, %v5526_v51, %v2974_v25 }
 0x8ce   : > { %v2506_v43 = vrot.slane %v5579_v6, %v5485_v46  ;;  %2388 = vrot.lane.b32.xlu1 %v2379_v48, %s4337_s23  ;;  %v2502_v40 = vrot.slane %v5579_v6, %v5000_v36  ;;  %v2854_v33 = vadd.f32 %v2852_v23, %v2845_v45  ;;  %v3214_v48 = vadd.f32 %v3213_v37, %v3211_v60 }
 0x8cf   : > { %v2618_v35 = vsel %vm2055_vm5, %v2616_v29, %v2617_v57  ;;  %v2510_v29 = vrot.slane %v5579_v6, %v5501_v27  ;;  %v2968_v57 = vadd.f32 %v2967_v50, %v2965_v54  ;;  %v3344_v6 = vsel %vm2045_vm4, %v5581_v18, %v3343_v63 }
 0x8d0   : > { %v5595_v28 = vadd.f32 %v2618_v35, %v2611_v0  ;;  %v2859_v13 = vpop.permute.xlu1 %2858  ;;  %v2737_v12 = vpop.permute.xlu0 %2736  ;;  %2513 = vrot.lane.b32.xlu0 %v2506_v43, %s4338_s19  ;;  %v3086_v0 = vsel %vm2104_vm9, %v3085_v21, %v5446_v47  ;;  %v3223_v43 = vadd.f32 %v3221_v41, %v3214_v48  ;;  %v3337_v35 = vadd.f32 %v3336_v15, %v3334_v9 }
 0x8d1   : > { %v2738_v62 = vrot.slane %v2737_v12, 1  ;;  %v2860_v7 = vrot.slane %v2859_v13, 1  ;;  %v2977_v51 = vadd.f32 %v2975_v56, %v2968_v57 }
 0x8d2   : > { %v2629_v55 = vrot.slane %v5595_v28, %v5485_v46  ;;  %2392 = vrot.lane.b32.xlu1 %v2387_v39, %s4337_s23  ;;  %v2625_v47 = vrot.slane %v5595_v28, %v5000_v36  ;;  %v3088_v39 = vadd.f32 %v3086_v0, %v5419_v11  ;;  %v3346_v58 = vadd.f32 %v3344_v6, %v3337_v35  ;;  %v3090_v11 = vld [vmem:[#allocation3 + $0x188] ss:$8 sm:$0x7]  ;;  %s3432_s23 = scalar_lea.sflag [#allocation6], %s5003_s9 }
 0x8d3   : > { %v2739_v5 = vsel %vm2055_vm5, %v2737_v12, %v2738_v62  ;;  %v2861_v8 = vsel %vm2055_vm5, %v2859_v13, %v2860_v7  ;;  %v3097_v13 = vrot.slane %v5539_v26, 1  ;;  %v2633_v44 = vrot.slane %v5595_v28, %v5501_v27 }
 0x8d4   : > { %v5612_v4 = vadd.f32 %v2739_v5, %v2732_v38  ;;  %v2982_v22 = vpop.permute.xlu1 %2981  ;;  %v5614_v16 = vpop.permute.xlu0 %3104  ;;  %2636 = vrot.lane.b32.xlu0 %v2629_v55, %s4339_s20  ;;  %v2863_v59 = vadd.f32 %v2861_v8, %v2854_v33  ;;  %v3091_v19 = vadd.f32 %v3090_v11, %v3088_v39 }
 0x8d5   : > { %v2983_v34 = vrot.slane %v2982_v22, 1  ;;  %v3106_v62 = vrot.slane %v5614_v16, 1  ;;  %v3098_v55 = vsel %vm2045_vm4, %v5539_v26, %v3097_v13 }
 0x8d6   : > { %v2746_v3 = vrot.slane %v5612_v4, %v5000_v36  ;;  %2511 = vrot.lane.b32.xlu1 %v2502_v40, %s4338_s19  ;;  %v2754_v1 = vrot.slane %v5612_v4, %v5501_v27  ;;  %v2872_v18 = vrot.slane %v2863_v59, %v5485_v46  ;;  %v3100_v60 = vadd.f32 %v3098_v55, %v3091_v19 }
 0x8d7   : > { %v2984_v2 = vsel %vm2055_vm5, %v2982_v22, %v2983_v34  ;;  %v3107_v5 = vsel %vm2055_vm5, %v5614_v16, %v3106_v62  ;;  %v2750_v28 = vrot.slane %v5612_v4, %v5485_v46  ;;  %v2868_v26 = vrot.slane %v2863_v59, %v5000_v36 }
 0x8d8   : > { %v3228_v10 = vpop.permute.xlu0 %3227  ;;  %2755 = vrot.lane.b32.xlu0 %v2746_v3, %s4330_s8  ;;  %v2986_v53 = vadd.f32 %v2984_v2, %v2977_v51  ;;  %v3109_v22 = vadd.f32 %v3107_v5, %v3100_v60  ;;  %v2876_v49 = vrot.slane %v2863_v59, %v5501_v27 }
 0x8d9   : > { %v3229_v20 = vrot.slane %v3228_v10, 1 }
 0x8da   : > { %2515 = vrot.lane.b32.xlu1 %v2510_v29, %s4338_s19  ;;  %v2991_v52 = vrot.slane %v2986_v53, %v5000_v36  ;;  %v2999_v40 = vrot.slane %v2986_v53, %v5501_v27  ;;  %v3118_v54 = vrot.slane %v3109_v22, %v5485_v46  ;;  %v2995_v4 = vrot.slane %v2986_v53, %v5485_v46  ;;  %s4185_s19 = scalar_lea.vmem %s5687_s22, 1024 }
 0x8db   : > { %v3230_v42 = vsel %vm2055_vm5, %v3228_v10, %v3229_v20  ;;  %v3114_v23 = vrot.slane %v3109_v22, %v5000_v36  ;;  %v3122_v21 = vrot.slane %v3109_v22, %v5501_v27  ;;  %p4186_p3 = scmp.ne.s32.totalorder %s5687_s22, %s4185_s19 }
 0x8dc   : > { %v3232_v17 = vadd.f32 %v3230_v42, %v3223_v43  ;;  %2759 = vrot.lane.b32.xlu0 %v2754_v1, %s4330_s8  ;;  %v3351_v32 = vpop.permute.xlu0 %3350 }
 0x8dd   : > { %v3352_v12 = vrot.slane %v3351_v32, 1  ;;  %p4187_p4 = pnand %p4186_p3, %p4430_p5 }
 0x8de   : > { %v3241_v61 = vrot.slane %v3232_v17, %v5485_v46  ;;  %2634 = vrot.lane.b32.xlu1 %v2625_v47, %s4339_s20  ;;  %v3237_v16 = vrot.slane %v3232_v17, %v5000_v36  ;;  %v3245_v14 = vrot.slane %v3232_v17, %v5501_v27 }
 0x8df   : > { %v3353_v24 = vsel %vm2055_vm5, %v3351_v32, %v3352_v12  ;;  %p4188_p7 = pneg %p4187_p4 }
 0x8e0   : > { %v3355_v38 = vadd.f32 %v3353_v24, %v3346_v58  ;;  %2879 = vrot.lane.b32.xlu0 %v2872_v18, %s4340_s15 }
 0x8e2   : > { %v3368_v7 = vrot.slane %v3355_v38, %v5501_v27  ;;  %2638 = vrot.lane.b32.xlu1 %v2633_v44, %s4339_s20  ;;  %v3364_v25 = vrot.slane %v3355_v38, %v5485_v46  ;;  %v3360_v45 = vrot.slane %v3355_v38, %v5000_v36  ;;  %s4345_s20 = smov [#allocation11]  }
 0x8e4   : > { %3000 = vrot.lane.b32.xlu0 %v2991_v52, %s4341_s4 }
 0x8e6   : > { %2757 = vrot.lane.b32.xlu1 %v2750_v28, %s4330_s8  ;;  %s4344_s8 = smov 75  }
 0x8e8   : > { %3004 = vrot.lane.b32.xlu0 %v2999_v40, %s4341_s4 }
 0x8ea   : > { %2877 = vrot.lane.b32.xlu1 %v2868_v26, %s4340_s15 }
 0x8ec   : > { %3125 = vrot.lane.b32.xlu0 %v3118_v54, %s4342_s26 }
 0x8ee   : > { %2881 = vrot.lane.b32.xlu1 %v2876_v49, %s4340_s15  ;;  %s4189_s15 = sshll.u32 %s4345_s20, 4  ;;  %s4190_s15 = int_to_ptr.vmem [resolvable:$false] %s4189_s15 }
 0x8ef   : > { %p4192_p8 = scmp.lt.s32.totalorder %s5687_s22, %s4190_s15 }
 0x8f0   : > { %3246 = vrot.lane.b32.xlu0 %v3237_v16, %s4343_s10 }
 0x8f2   : > { %3002 = vrot.lane.b32.xlu1 %v2995_v4, %s4341_s4  ;;  %s4191_s4 = scalar_lea.vmem %s4190_s15, 2048 }
 0x8f3   : > { %p4193_p11 = scmp.lt.s32.totalorder %s4191_s4, %s4185_s19 }
 0x8f4   : > { %3250 = vrot.lane.b32.xlu0 %v3245_v14, %s4343_s10 }
 0x8f5   : > { %p4194_p13 = por %p4193_p11, %p4192_p8 }
 0x8f6   : > { %3123 = vrot.lane.b32.xlu1 %v3114_v23, %s4342_s26 }
 0x8f7   : > { %p4195_p1 = pnand %p4194_p13, %p4188_p7 }
 0x8f8   : > { %3371 = vrot.lane.b32.xlu0 %v3364_v25, %s4344_s8 }
 0x8fa   : > { %3127 = vrot.lane.b32.xlu1 %v3122_v21, %s4342_s26 }
 0x8fe   : > { %3248 = vrot.lane.b32.xlu1 %v3241_v61, %s4343_s10 }
 0x902   : > { %3369 = vrot.lane.b32.xlu1 %v3360_v45, %s4344_s8 }
 0x906   : > { %3373 = vrot.lane.b32.xlu1 %v3368_v7, %s4344_s8 }
 0x907   : > { %4198 = shalt.err (!%p4195_p1)
}
 0x908   : > { %s4199_s17 = scalar_lea.hbm %s5684_s21, 1024  ;;  %s4203_s8 = scalar_lea.hbm %s5926_s5, 2048 }
 0x909   : > { %p4200_p0 = scmp.ne.s32.totalorder %s5684_s21, %s4199_s17  ;;  %p4204_p2 = scmp.lt.u32.totalorder %s5684_s21, %s5926_s5 }
 0x90a   : > { %p4205_p12 = scmp.lt.u32.totalorder %s4203_s8, %s4199_s17  ;;  %p4207_p3 = scmp.lt.u32.totalorder %s4199_s17, %s5684_s21 }
 0x90b   : > { %p4201_p6 = pnand %p4200_p0, %p4430_p5 }
 0x90c   : > { %p4206_p10 = por %p4205_p12, %p4204_p2 }
 0x90d   : > { %p4202_p9 = pneg %p4201_p6 }
 0x90e   : > { %p4208_p4 = por %p4207_p3, %p4206_p10 }
 0x910   : > { %p4209_p7 = pnand %p4208_p4, %p4202_p9 }
 0x912   : > { %4212 = shalt.err (!%p4209_p7)
}
 0x913   : > { %s4346_s19 = smov 256   ;;  %v2003_v56 = vand.u32 127, %v6001_v31  ;;  %vm2271_vm10 = vcmask 687104   ;;  %vm2148_vm12 = vcmask 695296   ;;  %vm2394_vm15 = vcmask 678912   ;;  %s3436_s20 = sand.u32 1, %s4411_s28  }
 0x914   : > { %3866 = dma.vmem_to_hbm [thread:$0]  (%p4430_p5), %s5687_s22, 1024, %s5684_s21, %s3432_s23, %s4346_s19, %s4346_s19, %s4334_s18   ;;  %vm2517_vm5 = vcmask 670720   ;;  %vm2640_vm8 = vcmask 662528   ;;  %vm2883_vm7 = vcmask 646144  }
 0x915   : > { %v2004_v0 = vadd.s32 128, %v2003_v56  ;;  %v5727_v1 = vand.u32 15, %v2003_v56  ;;  %s5798_s21 = sld [smem:[#allocation10 + $0x2]]  ;;  %s3654_s22 = sshll.u32 %s5003_s9, 1 }
 0x916   : > { %s326_s23 = scalar_lea.vmem [#allocation12], %s3652_s14  ;;  %s3741_s4 = sshll.u32 %s4411_s28, 5 }
 0x917   : > { %v5729_v15 = vand.u32 15, %v2004_v0  ;;  %v2029_v42 = vadd.s32 4294967291, %v5727_v1  ;;  %v2157_v35 = vadd.s32 4294967292, %v5727_v1  ;;  %v2280_v47 = vadd.s32 4294967293, %v5727_v1  ;;  %s3471_s15 = sshll.u32 %s326_s23, 4  ;;  %s5827_s17 = scalar_lea.vmem [#allocation14], %s3654_s22  ;;  %s5841_s15 = int_to_ptr.vmem [resolvable:$true] %s3471_s15 }
 0x918   : > { %v2403_v32 = vadd.s32 4294967294, %v5727_v1  ;;  %v2526_v58 = vadd.s32 4294967295, %v5727_v1  ;;  %v2769_v61 = vadd.s32 1, %v5727_v1  ;;  %v2892_v16 = vadd.s32 2, %v5727_v1  ;;  %s3488_s26 = sshll.u32 %s5827_s17, 4  ;;  %s5839_s10 = scalar_lea.hbm %s5927_s6, %s3739_s29  ;;  %s5848_s26 = int_to_ptr.vmem [resolvable:$true] %s3488_s26 }
 0x919   : > { %v2030_v51 = vadd.s32 4294967291, %v5729_v15  ;;  %v2158_v31 = vadd.s32 4294967292, %v5729_v15  ;;  %v2281_v17 = vadd.s32 4294967293, %v5729_v15  ;;  %v2404_v39 = vadd.s32 4294967294, %v5729_v15  ;;  %s5846_s16 = scalar_lea.hbm %s5928_s7, %s3741_s4  ;;  %s5850_s28 = scalar_lea.sflag [#allocation13], %s3436_s20 }
 0x91a   : > { %vm2031_vm11 = vcmp.ge.s32.totalorder %v2029_v42, 0  ;;  %vm2159_vm14 = vcmp.ge.s32.totalorder %v2157_v35, 0  ;;  %v2527_v18 = vadd.s32 4294967295, %v5729_v15  ;;  %vm2282_vm2 = vcmp.ge.s32.totalorder %v2280_v47, 0  ;;  %s4213_s29 = scalar_lea.vmem %s5841_s15, 1024 }
 0x91b   : > { %vm2032_vm13 = vcmp.ge.s32.totalorder %v2030_v51, 0  ;;  %vm2160_vm0 = vcmp.ge.s32.totalorder %v2158_v31, 0  ;;  %vm2283_vm3 = vcmp.ge.s32.totalorder %v2281_v17, 0  ;;  %vm2405_vm4 = vcmp.ge.s32.totalorder %v2403_v32, 0  ;;  %p4214_p8 = scmp.ne.s32.totalorder %s5841_s15, %s4213_s29 }
 0x91c   : > { %vm2528_vm9 = vcmp.ge.s32.totalorder %v2526_v58, 0  ;;  %vm2529_vm6 = vcmp.ge.s32.totalorder %v2527_v18, 0  ;;  %v2770_v19 = vadd.s32 1, %v5729_v15  ;;  %v3138_v0 = vadd.s32 4, %v5727_v1 }
 0x91d   : > { %v3139_v51 = vadd.s32 4, %v5729_v15  ;;  %p4215_p11 = pnand %p4214_p8, %p4430_p5 }
 0x91f   : > { %p4216_p13 = pneg %p4215_p11 }
 0x930   : > { %v2143_v46 = vpop.permute.xlu1 %2142  ;;  %v2145_v27 = vpop.permute.xlu0 %2144 }
 0x931   : > { %v2149_v24 = vsel %vm2148_vm12, %v2143_v46, %v2145_v27  ;;  %v2893_v46 = vadd.s32 2, %v5729_v15 }
 0x932   : > { %v2153_v60 = vsel %vm2031_vm11, %v2149_v24, 0.0  ;;  %vm2774_vm11 = vcmp.lt.s32.totalorder %v2770_v19, 16  ;;  %v3262_v24 = vadd.s32 5, %v5729_v15 }
 0x934   : > { %v2147_v3 = vpop.permute.xlu1 %2146  ;;  %v2268_v41 = vpop.permute.xlu0 %2267 }
 0x935   : > { %v2150_v52 = vsel %vm2148_vm12, %v2145_v27, %v2147_v3  ;;  %vm6010_vm12 = vcmp.ge.s32.totalorder %v2404_v39, 0  ;;  %v3261_v39 = vadd.s32 5, %v5727_v1 }
 0x936   : > { %v2154_v4 = vsel %vm2032_vm13, %v2150_v52, 0.0  ;;  %vm2896_vm13 = vcmp.lt.s32.totalorder %v2892_v16, 16 }
 0x938   : > { %v2266_v37 = vpop.permute.xlu1 %2265 }
 0x939   : > { %v2272_v53 = vsel %vm2271_vm10, %v2266_v37, %v2268_v41 }
 0x93a   : > { %v2276_v11 = vsel %vm2159_vm14, %v2272_v53, 0.0  ;;  %vm3006_vm14 = vcmask 637952  }
 0x93b   : > { %v2278_v26 = vadd.f32 %v2276_v11, %v2153_v60 }
 0x93c   : > { %v2270_v63 = vpop.permute.xlu1 %2269 }
 0x93d   : > { %v2273_v44 = vsel %vm2271_vm10, %v2268_v41, %v2270_v63  ;;  %vm2773_vm10 = vcmp.lt.s32.totalorder %v2769_v61, 16  ;;  %v3015_v41 = vadd.s32 3, %v5727_v1 }
 0x93e   : > { %v2391_v8 = vpop.permute.xlu0 %2390  ;;  %v2277_v28 = vsel %vm2160_vm0, %v2273_v44, 0.0  ;;  %vm3129_vm0 = vcmask 629760  }
 0x93f   : > { %v2279_v25 = vadd.f32 %v2277_v28, %v2154_v4 }
 0x940   : > { %v2389_v34 = vpop.permute.xlu1 %2388 }
 0x941   : > { %v2395_v38 = vsel %vm2394_vm15, %v2389_v34, %v2391_v8 }
 0x942   : > { %v5716_v9 = vpop.permute.xlu0 %2513  ;;  %v2399_v40 = vsel %vm2282_vm2, %v2395_v38, 0.0  ;;  %vm2897_vm2 = vcmp.lt.s32.totalorder %v2893_v46, 16 }
 0x943   : > { %v2401_v21 = vadd.f32 %v2399_v40, %v2278_v26  ;;  %v3385_v40 = vstv %s5798_s21  ;;  %v4347_v26 = vmov 1966171168   ;;  %s4348_s21 = smov [#allocation12]  }
 0x944   : > { %v2393_v33 = vpop.permute.xlu1 %2392  ;;  %s4217_s22 = sshll.u32 %s4348_s21, 4  ;;  %s4218_s22 = int_to_ptr.vmem [resolvable:$false] %s4217_s22 }
 0x945   : > { %v2396_v7 = vsel %vm2394_vm15, %v2391_v8, %v2393_v33  ;;  %vm6011_vm15 = vcmask 654336   ;;  %s4219_s9 = scalar_lea.vmem %s4218_s22, 2048  ;;  %p4220_p1 = scmp.lt.s32.totalorder %s5841_s15, %s4218_s22 }
 0x946   : > { %v5718_v50 = vpop.permute.xlu0 %2636  ;;  %v2400_v14 = vsel %vm2283_vm3, %v2396_v7, 0.0  ;;  %vm3019_vm3 = vcmp.lt.s32.totalorder %v3015_v41, 16  ;;  %p4221_p0 = scmp.lt.s32.totalorder %s4219_s9, %s4213_s29 }
 0x947   : > { %v2402_v8 = vadd.f32 %v2400_v14, %v2279_v25 }
 0x948   : > { %v2512_v48 = vpop.permute.xlu1 %2511  ;;  %p4222_p6 = por %p4221_p0, %p4220_p1 }
 0x949   : > { %v2518_v5 = vsel %vm2517_vm5, %v2512_v48, %v5716_v9  ;;  %v3016_v48 = vadd.s32 3, %v5729_v15 }
 0x94a   : > { %v5720_v29 = vpop.permute.xlu0 %2755  ;;  %v2522_v23 = vsel %vm2405_vm4, %v2518_v5, 0.0  ;;  %vm3252_vm4 = vcmask 621568   ;;  %p4223_p9 = pnand %p4222_p6, %p4216_p13 }
 0x94b   : > { %v2524_v34 = vadd.f32 %v2522_v23, %v2401_v21 }
 0x94c   : > { %v2516_v10 = vpop.permute.xlu1 %2515 }
 0x94d   : > { %v2519_v54 = vsel %vm2517_vm5, %v5716_v9, %v2516_v10  ;;  %vm3020_vm5 = vcmp.lt.s32.totalorder %v3016_v48, 16 }
 0x94e   : > { %v5722_v57 = vpop.permute.xlu0 %2759  ;;  %v2523_v27 = vsel %vm6010_vm12, %v2519_v54, 0.0  ;;  %v3392_v54 = vunpack.c.l.s4 %v4347_v26 }
 0x94f   : > { %v2525_v10 = vadd.f32 %v2523_v27, %v2402_v8  ;;  %v6013_v27 = vld [vmem:[#allocation23_spill] sm:$0xff] }
 0x950   : > { %v2635_v20 = vpop.permute.xlu1 %2634  ;;  %v3393_v25 = vunpack.c.0.s8 %v3392_v54 }
 0x951   : > { %v2641_v49 = vsel %vm2640_vm8, %v2635_v20, %v5718_v50 }
 0x952   : > { %v5725_v43 = vpop.permute.xlu0 %2879  ;;  %v2645_v3 = vsel %vm2528_vm9, %v2641_v49, 0.0  ;;  %vm3375_vm9 = vcmask 613376  }
 0x953   : > { %v2647_v56 = vadd.f32 %v2645_v3, %v2524_v34  ;;  %v6016_v34 = vld [vmem:[#allocation26_spill] sm:$0xff] }
 0x954   : > { %v2639_v59 = vpop.permute.xlu1 %2638 }
 0x955   : > { %v2642_v45 = vsel %vm2640_vm8, %v5718_v50, %v2639_v59  ;;  %vm3143_vm8 = vcmp.lt.s32.totalorder %v3139_v51, 16 }
 0x956   : > { %v5731_v6 = vpop.permute.xlu0 %3000  ;;  %v2646_v33 = vsel %vm2529_vm6, %v2642_v45, 0.0  ;;  %vm6012_vm6 = vmmov %vm6011_vm15 }
 0x957   : > { %v2648_v35 = vadd.f32 %v2646_v33, %v2525_v10  ;;  %v3396_v33 = vsub.s32 %v3393_v25, %v4997_v30  ;;  %v6017_v30 = vld [vmem:[#allocation27_spill] sm:$0xff] }
 0x958   : > { %v5733_v2 = vpop.permute.xlu1 %2757 }
 0x959   : > { %v2761_v50 = vsel %vm6011_vm15, %v5720_v29, %v5733_v2 }
 0x95a   : > { %v5743_v13 = vpop.permute.xlu0 %3004  ;;  %v2767_v31 = vadd.f32 %v2761_v50, %v2647_v56 }
 0x95c   : > { %v2878_v12 = vpop.permute.xlu1 %2877 }
 0x95d   : > { %v2884_v9 = vsel %vm2883_vm7, %v2878_v12, %v5725_v43 }
 0x95e   : > { %v5753_v55 = vpop.permute.xlu0 %3125  ;;  %v2888_v59 = vsel %vm2773_vm10, %v2884_v9, 0.0  ;;  %vm3265_vm10 = vcmp.lt.s32.totalorder %v3261_v39, 16 }
 0x95f   : > { %v2890_v12 = vadd.f32 %v2888_v59, %v2767_v31 }
 0x960   : > { %v2882_v62 = vpop.permute.xlu1 %2881 }
 0x961   : > { %v2885_v29 = vsel %vm2883_vm7, %v5725_v43, %v2882_v62  ;;  %vm3142_vm7 = vcmp.lt.s32.totalorder %v3138_v0, 16  ;;  %v6018_v0 = vld [vmem:[#allocation28_spill] sm:$0xff] }
 0x962   : > { %v3247_v37 = vpop.permute.xlu0 %3246  ;;  %v2889_v43 = vsel %vm2774_vm11, %v2885_v29, 0.0  ;;  %vm3266_vm11 = vcmp.lt.s32.totalorder %v3262_v24, 16 }
 0x964   : > { %v3003_v22 = vpop.permute.xlu1 %3002 }
 0x965   : > { %v3007_v20 = vsel %vm3006_vm14, %v5731_v6, %v3003_v22  ;;  %v2762_v6 = vsel %vm6012_vm6, %v5733_v2, %v5722_v57  ;;  %v3008_v58 = vsel %vm3006_vm14, %v3003_v22, %v5743_v13 }
 0x966   : > { %v3011_v17 = vsel %vm2896_vm13, %v3007_v20, 0.0  ;;  %v3251_v32 = vpop.permute.xlu0 %3250  ;;  %v2768_v2 = vadd.f32 %v2762_v6, %v2648_v35  ;;  %v3012_v62 = vsel %vm2897_vm2, %v3008_v58, 0.0  ;;  %v6020_v35 = vld [vmem:[#allocation30_spill] sm:$0xff] }
 0x967   : > { %v3013_v53 = vadd.f32 %v3011_v17, %v2890_v12 }
 0x968   : > { %v3124_v63 = vpop.permute.xlu1 %3123  ;;  %v2891_v44 = vadd.f32 %v2889_v43, %v2768_v2 }
 0x969   : > { %v3130_v47 = vsel %vm3129_vm0, %v3124_v63, %v5753_v55  ;;  %v6015_v63 = vld [vmem:[#allocation25_spill] sm:$0xff] }
 0x96a   : > { %v3134_v18 = vsel %vm3019_vm3, %v3130_v47, 0.0  ;;  %v3372_v19 = vpop.permute.xlu0 %3371  ;;  %v3014_v5 = vadd.f32 %v3012_v62, %v2891_v44 }
 0x96b   : > { %v3136_v38 = vadd.f32 %v3134_v18, %v3013_v53 }
 0x96c   : > { %v3128_v42 = vpop.permute.xlu1 %3127 }
 0x96d   : > { %v3131_v1 = vsel %vm3129_vm0, %v5753_v55, %v3128_v42  ;;  %v6019_v42 = vld [vmem:[#allocation29_spill] sm:$0xff] }
 0x96e   : > { %v3135_v52 = vsel %vm3020_vm5, %v3131_v1, 0.0 }
 0x96f   : > { %v3137_v15 = vadd.f32 %v3135_v52, %v3014_v5 }
 0x970   : > { %v3249_v57 = vpop.permute.xlu1 %3248 }
 0x971   : > { %v3253_v61 = vsel %vm3252_vm4, %v3247_v37, %v3249_v57  ;;  %v3254_v11 = vsel %vm3252_vm4, %v3249_v57, %v3251_v32  ;;  %v6014_v37 = vld [vmem:[#allocation24_spill] sm:$0xff] }
 0x972   : > { %v3257_v13 = vsel %vm3142_vm7, %v3253_v61, 0.0  ;;  %v3258_v28 = vsel %vm3143_vm8, %v3254_v11, 0.0 }
 0x973   : > { %v3259_v60 = vadd.f32 %v3257_v13, %v3136_v38  ;;  %v3260_v4 = vadd.f32 %v3258_v28, %v3137_v15 }
 0x974   : > { %v3370_v7 = vpop.permute.xlu1 %3369 }
 0x975   : > { %v3376_v55 = vsel %vm3375_vm9, %v3370_v7, %v3372_v19 }
 0x976   : > { %v3380_v22 = vsel %vm3265_vm10, %v3376_v55, 0.0 }
 0x977   : > { %v3382_v49 = vadd.f32 %v3380_v22, %v3259_v60 }
 0x978   : > { %v3374_v16 = vpop.permute.xlu1 %3373 }
 0x979   : > { %v3386_v14 = vadd.f32 %v3385_v40, %v3382_v49  ;;  %v3377_v23 = vsel %vm3375_vm9, %v3372_v19, %v3374_v16 }
 0x97a   : > { %v3381_v21 = vsel %vm3266_vm11, %v3377_v23, 0.0 }
 0x97b   : > { %v3410_v45 = vrot.slane %v3386_v14, %v5000_v36  ;;  %v3383_v46 = vadd.f32 %v3381_v21, %v3260_v4 }
 0x97d   : > { %v3415_v3 = vadd.f32 %v3410_v45, %v6013_v27  ;;  %v3417_v41 = vadd.f32 %v3410_v45, %v6014_v37  ;;  %v3419_v8 = vadd.f32 %v3410_v45, %v6015_v63  ;;  %v3421_v9 = vadd.f32 %v3410_v45, %v6016_v34 }
 0x97e   : > { %v3387_v50 = vadd.f32 %v3385_v40, %v3383_v46 }
 0x97f   : > { %3423 = vst [vmem:[%s326_s23] sm:$0xff] %v3415_v3  ;;  %3425 = vst [vmem:[%s326_s23 + $0x10] sm:$0xff] %v3417_v41 }
 0x980   : > { %3427 = vst [vmem:[%s326_s23 + $0x20] sm:$0xff] %v3419_v8  ;;  %3429 = vst [vmem:[%s326_s23 + $0x30] sm:$0xff] %v3421_v9  ;;  %v3390_v48 = vcombine.low %v3386_v14, %v3387_v50  ;;  %v3414_v10 = vrot.slane %v3387_v50, %v5000_v36 }
 0x982   : > { %v3397_v56 = vrot.slane %v3390_v48, %v3396_v33  ;;  %v3416_v20 = vadd.f32 %v3414_v10, %v6017_v30  ;;  %v3418_v59 = vadd.f32 %v3414_v10, %v6018_v0  ;;  %v3420_v51 = vadd.f32 %v3414_v10, %v6019_v42 }
 0x983   : > { %v3422_v31 = vadd.f32 %v3414_v10, %v6020_v35 }
 0x984   : > { %3424 = vst [vmem:[%s326_s23 + $0x8] sm:$0xff] %v3416_v20  ;;  %3426 = vst [vmem:[%s326_s23 + $0x18] sm:$0xff] %v3418_v59  ;;  %v3404_v36 = vrot.slane %v3397_v56, %v3396_v33 }
 0x985   : > { %3428 = vst [vmem:[%s326_s23 + $0x28] sm:$0xff] %v3420_v51  ;;  %3430 = vst [vmem:[%s326_s23 + $0x38] sm:$0xff] %v3422_v31 }
 0x986   : > { %4226 = shalt.err (!%p4223_p9)
}
 0x987   : > { %s4227_s23 = scalar_lea.hbm %s5839_s10, 1024  ;;  %s4231_s14 = scalar_lea.hbm %s5927_s6, 2048 }
 0x988   : > { %p4228_p2 = scmp.ne.s32.totalorder %s5839_s10, %s4227_s23  ;;  %p4232_p3 = scmp.lt.u32.totalorder %s5839_s10, %s5927_s6 }
 0x989   : > { %p4233_p4 = scmp.lt.u32.totalorder %s4231_s14, %s4227_s23  ;;  %p4235_p8 = scmp.lt.u32.totalorder %s4227_s23, %s5839_s10 }
 0x98a   : > { %p4229_p12 = pnand %p4228_p2, %p4430_p5 }
 0x98b   : > { %p4234_p7 = por %p4233_p4, %p4232_p3 }
 0x98c   : > { %p4230_p10 = pneg %p4229_p12 }
 0x98d   : > { %p4236_p11 = por %p4235_p8, %p4234_p7 }
 0x98f   : > { %p4237_p13 = pnand %p4236_p11, %p4230_p10 }
 0x991   : > { %4240 = shalt.err (!%p4237_p13)
}
 0x992   : > { %3867 = dma.vmem_to_hbm [thread:$0]  (%p4430_p5), %s5841_s15, 1024, %s5839_s10, %s5850_s28, %s4346_s19, %s4346_s19, %s4334_s18  }
 0x993   : > { %3406 = vst.msk [vmem:[%s5827_s17] sm:$0x3] %vm4610_vm1, %v3404_v36  ;;  %s4241_s29 = scalar_lea.vmem %s5848_s26, 32  ;;  %s4349_s21 = smov [#allocation14]  }
 0x994   : > { %p4242_p1 = scmp.ne.s32.totalorder %s5848_s26, %s4241_s29  ;;  %s4245_s22 = sshll.u32 %s4349_s21, 4  ;;  %s4246_s22 = int_to_ptr.vmem [resolvable:$false] %s4245_s22 }
 0x995   : > { %s4247_s9 = scalar_lea.vmem %s4246_s22, 64  ;;  %p4248_p9 = scmp.lt.s32.totalorder %s5848_s26, %s4246_s22 }
 0x996   : > { %p4243_p0 = pnand %p4242_p1, %p4430_p5  ;;  %p4249_p2 = scmp.lt.s32.totalorder %s4247_s9, %s4241_s29 }
 0x998   : > { %p4244_p6 = pneg %p4243_p0  ;;  %p4250_p12 = por %p4249_p2, %p4248_p9 }
 0x99a   : > { %p4251_p10 = pnand %p4250_p12, %p4244_p6 }
 0x99c   : > { %4254 = shalt.err (!%p4251_p10)
}
 0x99d   : > { %s4255_s18 = scalar_lea.hbm %s5846_s16, 32  ;;  %s4259_s17 = scalar_lea.hbm %s5928_s7, 64 }
 0x99e   : > { %p4256_p3 = scmp.ne.s32.totalorder %s5846_s16, %s4255_s18  ;;  %p4260_p8 = scmp.lt.u32.totalorder %s5846_s16, %s5928_s7 }
 0x99f   : > { %p4261_p11 = scmp.lt.u32.totalorder %s4259_s17, %s4255_s18  ;;  %p4263_p1 = scmp.lt.u32.totalorder %s4255_s18, %s5846_s16 }
 0x9a0   : > { %p4257_p4 = pnand %p4256_p3, %p4430_p5 }
 0x9a1   : > { %p4262_p13 = por %p4261_p11, %p4260_p8 }
 0x9a2   : > { %p4258_p7 = pneg %p4257_p4 }
 0x9a3   : > { %p4264_p0 = por %p4263_p1, %p4262_p13 }
 0x9a5   : > { %p4265_p6 = pnand %p4264_p0, %p4258_p7 }
 0x9a7   : > { %4268 = shalt.err (!%p4265_p6)
}
 0x9a8   : > { %3868 = dma.vmem_to_hbm [thread:$0]  (%p4430_p5), %s5848_s26, 32, %s5846_s16, %s5850_s28  }
 0x9a9 PF: > { %p3898_p9 = scmp.ge.s32.totalorder %s4319_s27, 2  ;;  %s3500_s20 = sand.u32 1, %s4307_s24  }
 0x9aa   : > { %p6022_p2 = scmp.ne.s32.totalorder %s5961_s12, 0  ;;  %s3501_s4 = scalar_lea.sflag [#allocation6], %s3500_s20 }
 0x9ac   : > { %p3883_p12 = pnand %p3898_p9, %p6022_p2 }
 0x9ae   : > { %4298 = dma.done.wait (!%p3883_p12), %s3501_s4, 1024  }
 0x9af   : > { %4300 = vsyncadd (!%p3883_p12), %s3501_s4, 4294966272  ;;  %s6023_s14 = sadd.s32 4294967294, %s4319_s27  }
 0x9b0   : > { %s3509_s8 = sand.u32 1, %s6023_s14  }
 0x9b1   : > { %s3510_s13 = scalar_lea.sflag [#allocation13], %s3509_s8 }
 0x9b2   : > { %4302 = dma.done.wait (!%p3883_p12), %s3510_s13, 1056  }
 0x9b3   : > { %4304 = vsyncadd (!%p3883_p12), %s3510_s13, 4294966240  ;;  %s6024_s11 = sld [smem:[#allocation20_spill]]  ;;  %s6025_s26 = sld [smem:[#allocation21_spill]] }
 0x9b4   : > { %p24_p5 = scmp.ge.s32.totalorder %s4415_s30, 4   ;;  %s6026_s24 = smov %s4311_s25 }
 0x9b5   : > { %s6028_s27 = smov %s4415_s30 }
 0x9b6   :  { %26 = sbr.rel (!%p24_p5) target bundleno = 10 (0xa), region = 242 }
 0x9b9   : > { %s6027_s25 = smov %s6024_s11 }
 0x9bd   :  { %3524 = vsyncpa [#allocation5], 1 }
 0x9be   :  { %3526 = vsyncpa [#allocation5 + $0x1], 1 }
 0x9bf   :  { %3527 = vsyncpa [#allocation9], 1 }
 0x9c0   :  { %3528 = vsyncpa [#allocation6], 1 }
 0x9c1   :  { %3530 = vsyncpa [#allocation6 + $0x1], 1 }
 0x9c2   :  { %3531 = vsyncpa [#allocation13], 1 }
 0x9c3   :  { %3533 = vsyncpa [#allocation13 + $0x1], 1 }
 0x9c4   :  { %3534 = vsyncpa [#allocation7], 1 }
 0x9c5   :  { %3536 = vsyncpa [#allocation7 + $0x1], 1 }

</bundles_post_ra>
